<compile_context>
chip_gen: v6e
topology: v6e:2x2x1
jax: 0.10.0
libtpu: 0.0.40
codegen_flags: <defaults>
</compile_context>

<pallas_src>
import functools

import jax
import jax.numpy as jnp
from jax.experimental import pallas as pl
from jax.experimental.pallas import tpu as pltpu

EPS = 1e-5
PARAMS_PER_BLOCK = 20  # 6 (self-attn) + 6 (mlp) + 8 (cross-attn)


# --------------------------------------------------------------------------
# in-kernel helpers
# --------------------------------------------------------------------------
def _bf16(a):
    return a.astype(jnp.bfloat16)


def _group_norm(x, gmat, gmat_t, gamma, beta):
    """GroupNorm over one batch element.  x: (N, C) f32; gmat: (C, G); gmat_t: (G, C)."""
    n, c = x.shape
    g = gmat.shape[1]
    denom = 1.0 / float(n * (c // g))
    col_sum = jnp.sum(x, axis=0, keepdims=True)                                   # (1, C)
    col_sq = jnp.sum(x * x, axis=0, keepdims=True)                                # (1, C)
    stats = jnp.concatenate([col_sum, col_sq], axis=0)                            # (2, C)
    g_stats = jnp.dot(stats, gmat, preferred_element_type=jnp.float32) * denom    # (2, G)
    back = jnp.dot(g_stats, gmat_t, preferred_element_type=jnp.float32)           # (2, C)
    mean = back[0:1, :]
    var = jnp.maximum(back[1:2, :] - mean * mean, 0.0)   # clamp E[x^2]-E[x]^2 >= 0
    inv = jax.lax.rsqrt(var + EPS)
    return (x - mean) * inv * gamma + beta


def _softmax(s):
    s = s - jnp.max(s, axis=-1, keepdims=True)
    p = jnp.exp(s)
    return p * pl.reciprocal(jnp.sum(p, axis=-1, keepdims=True), approx=True)


# --------------------------------------------------------------------------
# fused kernel: all transformer blocks for one batch element per grid step
# --------------------------------------------------------------------------
def _transformer_kernel(n_blocks, x_ref, ctx_ref, mask_ref, gmat_ref, gmat_t_ref, *rest):
    o_ref = rest[-1]
    prefs = rest[:-1]

    x = x_ref[0]                                   # (N, C) f32 residual stream (stays in vregs/VMEM)
    gmat = gmat_ref[...]
    gmat_t = gmat_t_ref[...]
    ctx_bf = _bf16(ctx_ref[0])                     # (L, Dc) bf16, hoisted out of the block loop
    mask_bias = (mask_ref[0] - 1.0) * 1e9          # (1, L): 0 keep / -1e9 drop, hoisted
    c = x.shape[1]
    scale = 1.0 / (c ** 0.5)

    for blk in range(n_blocks):                    # static unroll over transformer blocks
        (sa_gamma, sa_beta, sa_wqkv, sa_bqkv, sa_wo, sa_bo,
         mlp_gamma, mlp_beta, mlp_w1, mlp_b1, mlp_w2, mlp_b2,
         ca_gamma, ca_beta, ca_wq, ca_bq, ca_wkv, ca_bkv, ca_wo, ca_bo) = \
            prefs[blk * PARAMS_PER_BLOCK:(blk + 1) * PARAMS_PER_BLOCK]

        # ---------------- SpatialSelfAttention ----------------
        h = _group_norm(x, gmat, gmat_t, sa_gamma[...], sa_beta[...])
        qkv = jnp.dot(_bf16(h), sa_wqkv[...],
                      preferred_element_type=jnp.float32) + sa_bqkv[...]         # (N, >=3C)
        q, k, v = qkv[:, 0:c], qkv[:, c:2 * c], qkv[:, 2 * c:3 * c]
        s = jax.lax.dot_general(_bf16(q), _bf16(k), (((1,), (1,)), ((), ())),
                                preferred_element_type=jnp.float32) * scale      # (N, N), no k.T
        p = _softmax(s)
        a = jnp.dot(_bf16(p), _bf16(v), preferred_element_type=jnp.float32)      # (N, C)
        x = x + jnp.dot(_bf16(a), sa_wo[...],
                        preferred_element_type=jnp.float32) + sa_bo[...]

        # ---------------- MLP ----------------
        h = _group_norm(x, gmat, gmat_t, mlp_gamma[...], mlp_beta[...])
        h = jnp.dot(_bf16(h), mlp_w1[...],
                    preferred_element_type=jnp.float32) + mlp_b1[...]            # (N, 4C)
        h = h * jax.nn.sigmoid(h)                                                # SiLU (f32)
        # TODO(synk): nn.Dropout omitted (inference / eval mode == identity)
        x = x + jnp.dot(_bf16(h), mlp_w2[...],
                        preferred_element_type=jnp.float32) + mlp_b2[...]

        # ---------------- SpatialCrossAttention ----------------
        h = _group_norm(x, gmat, gmat_t, ca_gamma[...], ca_beta[...])
        q = jnp.dot(_bf16(h), ca_wq[...],
                    preferred_element_type=jnp.float32) + ca_bq[...]             # (N, C)
        kv = jnp.dot(ctx_bf, ca_wkv[...],
                     preferred_element_type=jnp.float32) + ca_bkv[...]           # (L, >=2C)
        k, v = kv[:, 0:c], kv[:, c:2 * c]
        s = jax.lax.dot_general(_bf16(q), _bf16(k), (((1,), (1,)), ((), ())),
                                preferred_element_type=jnp.float32) * scale      # (N, L)
        # NOTE: a fully-masked row would give a uniform (not zero) attention row, same as before.
        p = _softmax(s + mask_bias)
        a = jnp.dot(_bf16(p), _bf16(v), preferred_element_type=jnp.float32)      # (N, C)
        x = x + jnp.dot(_bf16(a), ca_wo[...],
                        preferred_element_type=jnp.float32) + ca_bo[...]

    o_ref[0] = x


# --------------------------------------------------------------------------
# pallas_call wrapper
# --------------------------------------------------------------------------
def _replicated_spec(shape):
    rank = len(shape)
    return pl.BlockSpec(shape, lambda b, _r=rank: (0,) * _r)


def _fused_forward(x_bnc, context, mask3, gmat, gmat_t, flat_params):
    B, N, C = x_bnc.shape
    _, L, Dc = context.shape
    n_blocks = len(flat_params) // PARAMS_PER_BLOCK

    in_specs = [pl.BlockSpec((1, N, C), lambda b: (b, 0, 0)),
                pl.BlockSpec((1, L, Dc), lambda b: (b, 0, 0)),
                pl.BlockSpec((1, 1, L), lambda b: (b, 0, 0)),
                _replicated_spec(gmat.shape),
                _replicated_spec(gmat_t.shape)]
    args = [x_bnc, context, mask3, gmat, gmat_t]
    for p in flat_params:
        in_specs.append(_replicated_spec(p.shape))
        args.append(p)

    return pl.pallas_call(
        functools.partial(_transformer_kernel, n_blocks),
        out_shape=jax.ShapeDtypeStruct((B, N, C), jnp.float32),
        grid=(B,),
        in_specs=in_specs,
        out_specs=pl.BlockSpec((1, N, C), lambda b: (b, 0, 0)),
        input_output_aliases={0: 0},   # residual stream reuses x's HBM buffer
        compiler_params=pltpu.CompilerParams(dimension_semantics=("parallel",)),
    )(*args)


@jax.jit
def basic_spatial_transformer(x_nchw, context, mask, params):
    """Forward pass of BasicSpatialTransformer (inference)."""
    B, C, H, W = x_nchw.shape
    x_in = x_nchw
    x = jnp.transpose(x_nchw, (0, 2, 3, 1)).reshape(B, H * W, C)      # NCHW -> (B, N, C)
    mask3 = mask.reshape(B, 1, -1).astype(jnp.float32)
    y = _fused_forward(x, context.astype(jnp.float32), mask3,
                       params["gmat"], params["gmat_t"], params["flat"])
    y = y.reshape(B, H, W, C).transpose(0, 3, 1, 2)
    return y + x_in                                                   # outer residual


# --------------------------------------------------------------------------
# deterministic parameter construction (already in fused / padded / bf16 layout)
# --------------------------------------------------------------------------
def init_params(key, channels, context_dim, groups, n_blocks):
    C, Dc, G = channels, context_dim, groups
    gmat = jnp.eye(G, dtype=jnp.float32)[jnp.arange(C) // (C // G)]   # (C, G) one-hot channel->group
    gmat_t = jnp.transpose(gmat)                                      # precomputed: no in-kernel transpose

    def dense(k, din, dout):
        return jax.random.normal(k, (din, dout), jnp.float32) * 0.02

    def pad_lanes(w, b):
        # pad fused projection output dim up to a multiple of 128 lanes (lane-dense MXU output)
        pad = (-w.shape[1]) % 128
        if pad:
            w = jnp.pad(w, ((0, 0), (0, pad)))
            b = jnp.pad(b, ((0, 0), (0, pad)))
        return w, b

    ones_c = jnp.ones((1, C), jnp.float32)
    zeros_c = jnp.zeros((1, C), jnp.float32)

    flat = []
    for _ in range(n_blocks):
        key, *ks = jax.random.split(key, 11)
        # SpatialSelfAttention: fused q|k|v projection
        wqkv = jnp.concatenate([dense(ks[0], C, C), dense(ks[1], C, C), dense(ks[2], C, C)], axis=1)
        wqkv, bqkv = pad_lanes(wqkv, jnp.zeros((1, 3 * C), jnp.float32))
        flat += [ones_c, zeros_c,
                 wqkv.astype(jnp.bfloat16), bqkv,
                 dense(ks[3], C, C).astype(jnp.bfloat16), zeros_c]
        # MLP
        flat += [ones_c, zeros_c,
                 dense(ks[4], C, 4 * C).astype(jnp.bfloat16), jnp.zeros((1, 4 * C), jnp.float32),
                 dense(ks[5], 4 * C, C).astype(jnp.bfloat16), zeros_c]
        # SpatialCrossAttention: fused k|v projection from context
        wkv = jnp.concatenate([dense(ks[7], Dc, C), dense(ks[8], Dc, C)], axis=1)
        wkv, bkv = pad_lanes(wkv, jnp.zeros((1, 2 * C), jnp.float32))
        flat += [ones_c, zeros_c,
                 dense(ks[6], C, C).astype(jnp.bfloat16), zeros_c,
                 wkv.astype(jnp.bfloat16), bkv,
                 dense(ks[9], C, C).astype(jnp.bfloat16), zeros_c]
    return dict(gmat=gmat, gmat_t=gmat_t, flat=tuple(flat))


# --------------------------------------------------------------------------
if __name__ == "__main__":
    B, C, H, W = 2, 32, 8, 8          # channels=32, spatial 8x8 -> N=64
    Dc, L = 16, 8                     # context_dim=16, context seq len=8
    G = 8                             # GroupNorm groups
    n_blocks = 2                      # transformer_blocks=2

    key = jax.random.PRNGKey(0)
    kx, kc, kp = jax.random.split(key, 3)

    x = jax.random.normal(kx, (B, C, H, W), jnp.float32)
    context = jax.random.normal(kc, (B, L, Dc), jnp.float32)
    mask = jnp.ones((B, L), jnp.float32)

    params = init_params(kp, C, Dc, G, n_blocks)

    out = basic_spatial_transformer(x, context, mask, params)
    out = jax.block_until_ready(out)
    assert out.shape == (B, C, H, W) and out.dtype == jnp.float32
    assert bool(jnp.all(jnp.isfinite(out)))
    print("KERNEL_OK")
</pallas_src>

<mosaic_0001>
module attributes {stable_mosaic.version = 11 : i64} {
  func.func @_transformer_kernel(%arg0: i32, %arg1: memref<1x64x32xf32, #tpu.memory_space<vmem>>, %arg2: memref<1x8x16xf32, #tpu.memory_space<vmem>>, %arg3: memref<1x1x8xf32, #tpu.memory_space<vmem>>, %arg4: memref<32x8xf32, #tpu.memory_space<vmem>>, %arg5: memref<8x32xf32, #tpu.memory_space<vmem>>, %arg6: memref<1x32xf32, #tpu.memory_space<vmem>>, %arg7: memref<1x32xf32, #tpu.memory_space<vmem>>, %arg8: memref<32x128xbf16, #tpu.memory_space<vmem>>, %arg9: memref<1x128xf32, #tpu.memory_space<vmem>>, %arg10: memref<32x32xbf16, #tpu.memory_space<vmem>>, %arg11: memref<1x32xf32, #tpu.memory_space<vmem>>, %arg12: memref<1x32xf32, #tpu.memory_space<vmem>>, %arg13: memref<1x32xf32, #tpu.memory_space<vmem>>, %arg14: memref<32x128xbf16, #tpu.memory_space<vmem>>, %arg15: memref<1x128xf32, #tpu.memory_space<vmem>>, %arg16: memref<128x32xbf16, #tpu.memory_space<vmem>>, %arg17: memref<1x32xf32, #tpu.memory_space<vmem>>, %arg18: memref<1x32xf32, #tpu.memory_space<vmem>>, %arg19: memref<1x32xf32, #tpu.memory_space<vmem>>, %arg20: memref<32x32xbf16, #tpu.memory_space<vmem>>, %arg21: memref<1x32xf32, #tpu.memory_space<vmem>>, %arg22: memref<16x128xbf16, #tpu.memory_space<vmem>>, %arg23: memref<1x128xf32, #tpu.memory_space<vmem>>, %arg24: memref<32x32xbf16, #tpu.memory_space<vmem>>, %arg25: memref<1x32xf32, #tpu.memory_space<vmem>>, %arg26: memref<1x32xf32, #tpu.memory_space<vmem>>, %arg27: memref<1x32xf32, #tpu.memory_space<vmem>>, %arg28: memref<32x128xbf16, #tpu.memory_space<vmem>>, %arg29: memref<1x128xf32, #tpu.memory_space<vmem>>, %arg30: memref<32x32xbf16, #tpu.memory_space<vmem>>, %arg31: memref<1x32xf32, #tpu.memory_space<vmem>>, %arg32: memref<1x32xf32, #tpu.memory_space<vmem>>, %arg33: memref<1x32xf32, #tpu.memory_space<vmem>>, %arg34: memref<32x128xbf16, #tpu.memory_space<vmem>>, %arg35: memref<1x128xf32, #tpu.memory_space<vmem>>, %arg36: memref<128x32xbf16, #tpu.memory_space<vmem>>, %arg37: memref<1x32xf32, #tpu.memory_space<vmem>>, %arg38: memref<1x32xf32, #tpu.memory_space<vmem>>, %arg39: memref<1x32xf32, #tpu.memory_space<vmem>>, %arg40: memref<32x32xbf16, #tpu.memory_space<vmem>>, %arg41: memref<1x32xf32, #tpu.memory_space<vmem>>, %arg42: memref<16x128xbf16, #tpu.memory_space<vmem>>, %arg43: memref<1x128xf32, #tpu.memory_space<vmem>>, %arg44: memref<32x32xbf16, #tpu.memory_space<vmem>>, %arg45: memref<1x32xf32, #tpu.memory_space<vmem>>, %arg46: memref<1x64x32xf32, #tpu.memory_space<vmem>>) attributes {dimension_semantics = [#tpu.dimension_semantics<parallel>], iteration_bounds = array<i64: 2>, scalar_prefetch = 0 : i64, scratch_operands = 0 : i64, tpu.core_type = #tpu.core_type<tc>, window_params = [{transform_indices = @transform_0, window_bounds = array<i64: 1, 64, 32>}, {transform_indices = @transform_1, window_bounds = array<i64: 1, 8, 16>}, {transform_indices = @transform_2, window_bounds = array<i64: 1, 1, 8>}, {pipeline_mode = #tpu.pipeline_mode<synchronous>, transform_indices = @transform_3, window_bounds = array<i64: 32, 8>}, {pipeline_mode = #tpu.pipeline_mode<synchronous>, transform_indices = @transform_4, window_bounds = array<i64: 8, 32>}, {pipeline_mode = #tpu.pipeline_mode<synchronous>, transform_indices = @transform_5, window_bounds = array<i64: 1, 32>}, {pipeline_mode = #tpu.pipeline_mode<synchronous>, transform_indices = @transform_6, window_bounds = array<i64: 1, 32>}, {pipeline_mode = #tpu.pipeline_mode<synchronous>, transform_indices = @transform_7, window_bounds = array<i64: 32, 128>}, {pipeline_mode = #tpu.pipeline_mode<synchronous>, transform_indices = @transform_8, window_bounds = array<i64: 1, 128>}, {pipeline_mode = #tpu.pipeline_mode<synchronous>, transform_indices = @transform_9, window_bounds = array<i64: 32, 32>}, {pipeline_mode = #tpu.pipeline_mode<synchronous>, transform_indices = @transform_10, window_bounds = array<i64: 1, 32>}, {pipeline_mode = #tpu.pipeline_mode<synchronous>, transform_indices = @transform_11, window_bounds = array<i64: 1, 32>}, {pipeline_mode = #tpu.pipeline_mode<synchronous>, transform_indices = @transform_12, window_bounds = array<i64: 1, 32>}, {pipeline_mode = #tpu.pipeline_mode<synchronous>, transform_indices = @transform_13, window_bounds = array<i64: 32, 128>}, {pipeline_mode = #tpu.pipeline_mode<synchronous>, transform_indices = @transform_14, window_bounds = array<i64: 1, 128>}, {pipeline_mode = #tpu.pipeline_mode<synchronous>, transform_indices = @transform_15, window_bounds = array<i64: 128, 32>}, {pipeline_mode = #tpu.pipeline_mode<synchronous>, transform_indices = @transform_16, window_bounds = array<i64: 1, 32>}, {pipeline_mode = #tpu.pipeline_mode<synchronous>, transform_indices = @transform_17, window_bounds = array<i64: 1, 32>}, {pipeline_mode = #tpu.pipeline_mode<synchronous>, transform_indices = @transform_18, window_bounds = array<i64: 1, 32>}, {pipeline_mode = #tpu.pipeline_mode<synchronous>, transform_indices = @transform_19, window_bounds = array<i64: 32, 32>}, {pipeline_mode = #tpu.pipeline_mode<synchronous>, transform_indices = @transform_20, window_bounds = array<i64: 1, 32>}, {pipeline_mode = #tpu.pipeline_mode<synchronous>, transform_indices = @transform_21, window_bounds = array<i64: 16, 128>}, {pipeline_mode = #tpu.pipeline_mode<synchronous>, transform_indices = @transform_22, window_bounds = array<i64: 1, 128>}, {pipeline_mode = #tpu.pipeline_mode<synchronous>, transform_indices = @transform_23, window_bounds = array<i64: 32, 32>}, {pipeline_mode = #tpu.pipeline_mode<synchronous>, transform_indices = @transform_24, window_bounds = array<i64: 1, 32>}, {pipeline_mode = #tpu.pipeline_mode<synchronous>, transform_indices = @transform_25, window_bounds = array<i64: 1, 32>}, {pipeline_mode = #tpu.pipeline_mode<synchronous>, transform_indices = @transform_26, window_bounds = array<i64: 1, 32>}, {pipeline_mode = #tpu.pipeline_mode<synchronous>, transform_indices = @transform_27, window_bounds = array<i64: 32, 128>}, {pipeline_mode = #tpu.pipeline_mode<synchronous>, transform_indices = @transform_28, window_bounds = array<i64: 1, 128>}, {pipeline_mode = #tpu.pipeline_mode<synchronous>, transform_indices = @transform_29, window_bounds = array<i64: 32, 32>}, {pipeline_mode = #tpu.pipeline_mode<synchronous>, transform_indices = @transform_30, window_bounds = array<i64: 1, 32>}, {pipeline_mode = #tpu.pipeline_mode<synchronous>, transform_indices = @transform_31, window_bounds = array<i64: 1, 32>}, {pipeline_mode = #tpu.pipeline_mode<synchronous>, transform_indices = @transform_32, window_bounds = array<i64: 1, 32>}, {pipeline_mode = #tpu.pipeline_mode<synchronous>, transform_indices = @transform_33, window_bounds = array<i64: 32, 128>}, {pipeline_mode = #tpu.pipeline_mode<synchronous>, transform_indices = @transform_34, window_bounds = array<i64: 1, 128>}, {pipeline_mode = #tpu.pipeline_mode<synchronous>, transform_indices = @transform_35, window_bounds = array<i64: 128, 32>}, {pipeline_mode = #tpu.pipeline_mode<synchronous>, transform_indices = @transform_36, window_bounds = array<i64: 1, 32>}, {pipeline_mode = #tpu.pipeline_mode<synchronous>, transform_indices = @transform_37, window_bounds = array<i64: 1, 32>}, {pipeline_mode = #tpu.pipeline_mode<synchronous>, transform_indices = @transform_38, window_bounds = array<i64: 1, 32>}, {pipeline_mode = #tpu.pipeline_mode<synchronous>, transform_indices = @transform_39, window_bounds = array<i64: 32, 32>}, {pipeline_mode = #tpu.pipeline_mode<synchronous>, transform_indices = @transform_40, window_bounds = array<i64: 1, 32>}, {pipeline_mode = #tpu.pipeline_mode<synchronous>, transform_indices = @transform_41, window_bounds = array<i64: 16, 128>}, {pipeline_mode = #tpu.pipeline_mode<synchronous>, transform_indices = @transform_42, window_bounds = array<i64: 1, 128>}, {pipeline_mode = #tpu.pipeline_mode<synchronous>, transform_indices = @transform_43, window_bounds = array<i64: 32, 32>}, {pipeline_mode = #tpu.pipeline_mode<synchronous>, transform_indices = @transform_44, window_bounds = array<i64: 1, 32>}, {transform_indices = @transform_45, window_bounds = array<i64: 1, 64, 32>}]} {
    %c0 = arith.constant 0 : index
    %c0_0 = arith.constant 0 : index
    %c0_1 = arith.constant 0 : index
    %0 = vector.load %arg1[%c0, %c0_0, %c0_1] : memref<1x64x32xf32, #tpu.memory_space<vmem>>, vector<1x64x32xf32>
    %1 = vector.shape_cast %0 : vector<1x64x32xf32> to vector<64x32xf32>
    %c0_2 = arith.constant 0 : index
    %c0_3 = arith.constant 0 : index
    %2 = vector.load %arg4[%c0_2, %c0_3] : memref<32x8xf32, #tpu.memory_space<vmem>>, vector<32x8xf32>
    %c0_4 = arith.constant 0 : index
    %c0_5 = arith.constant 0 : index
    %3 = vector.load %arg5[%c0_4, %c0_5] : memref<8x32xf32, #tpu.memory_space<vmem>>, vector<8x32xf32>
    %c0_6 = arith.constant 0 : index
    %c0_7 = arith.constant 0 : index
    %c0_8 = arith.constant 0 : index
    %4 = vector.load %arg2[%c0_6, %c0_7, %c0_8] : memref<1x8x16xf32, #tpu.memory_space<vmem>>, vector<1x8x16xf32>
    %5 = vector.shape_cast %4 : vector<1x8x16xf32> to vector<8x16xf32>
    %6 = arith.truncf %5 : vector<8x16xf32> to vector<8x16xbf16>
    %c0_9 = arith.constant 0 : index
    %c0_10 = arith.constant 0 : index
    %c0_11 = arith.constant 0 : index
    %7 = vector.load %arg3[%c0_9, %c0_10, %c0_11] : memref<1x1x8xf32, #tpu.memory_space<vmem>>, vector<1x1x8xf32>
    %8 = vector.shape_cast %7 : vector<1x1x8xf32> to vector<1x8xf32>
    %cst = arith.constant 1.000000e+00 : f32
    %9 = vector.broadcast %cst : f32 to vector<1x8xf32>
    %10 = arith.subf %8, %9 : vector<1x8xf32>
    %cst_12 = arith.constant 1.000000e+09 : f32
    %11 = vector.broadcast %cst_12 : f32 to vector<1x8xf32>
    %12 = arith.mulf %10, %11 : vector<1x8xf32>
    %c0_13 = arith.constant 0 : index
    %c0_14 = arith.constant 0 : index
    %13 = vector.load %arg6[%c0_13, %c0_14] : memref<1x32xf32, #tpu.memory_space<vmem>>, vector<1x32xf32>
    %c0_15 = arith.constant 0 : index
    %c0_16 = arith.constant 0 : index
    %14 = vector.load %arg7[%c0_15, %c0_16] : memref<1x32xf32, #tpu.memory_space<vmem>>, vector<1x32xf32>
    %cst_17 = arith.constant dense<0.000000e+00> : vector<32xf32>
    %15 = vector.multi_reduction <add>, %1, %cst_17 [0] : vector<64x32xf32> to vector<32xf32>
    %16 = vector.shape_cast %15 : vector<32xf32> to vector<1x32xf32>
    %17 = arith.mulf %1, %1 : vector<64x32xf32>
    %cst_18 = arith.constant dense<0.000000e+00> : vector<32xf32>
    %18 = vector.multi_reduction <add>, %17, %cst_18 [0] : vector<64x32xf32> to vector<32xf32>
    %19 = vector.shape_cast %18 : vector<32xf32> to vector<1x32xf32>
    %20 = tpu.concatenate %16, %19 in 0 : vector<1x32xf32>, vector<1x32xf32> -> vector<2x32xf32>
    %cst_19 = arith.constant dense<0.000000e+00> : vector<2x8xf32>
    %21 = tpu.matmul %20, %2, %cst_19 {dimension_numbers = #tpu.dot_dimension_numbers<[1], [0], [0], [1], [0, 0, 1, 1], [], []>} : vector<2x32xf32>, vector<32x8xf32>, vector<2x8xf32> -> vector<2x8xf32>
    %cst_20 = arith.constant 3.906250e-03 : f32
    %22 = vector.broadcast %cst_20 : f32 to vector<2x8xf32>
    %23 = arith.mulf %21, %22 : vector<2x8xf32>
    %cst_21 = arith.constant dense<0.000000e+00> : vector<2x32xf32>
    %24 = tpu.matmul %23, %3, %cst_21 {dimension_numbers = #tpu.dot_dimension_numbers<[1], [0], [0], [1], [0, 0, 1, 1], [], []>} : vector<2x8xf32>, vector<8x32xf32>, vector<2x32xf32> -> vector<2x32xf32>
    %25 = vector.extract_strided_slice %24 {offsets = [0, 0], sizes = [1, 32], strides = [1, 1]} : vector<2x32xf32> to vector<1x32xf32>
    %26 = vector.extract_strided_slice %24 {offsets = [1, 0], sizes = [1, 32], strides = [1, 1]} : vector<2x32xf32> to vector<1x32xf32>
    %27 = arith.mulf %25, %25 : vector<1x32xf32>
    %28 = arith.subf %26, %27 : vector<1x32xf32>
    %cst_22 = arith.constant 0.000000e+00 : f32
    %29 = vector.broadcast %cst_22 : f32 to vector<1x32xf32>
    %30 = arith.maximumf %28, %29 : vector<1x32xf32>
    %cst_23 = arith.constant 9.99999974E-6 : f32
    %31 = vector.broadcast %cst_23 : f32 to vector<1x32xf32>
    %32 = arith.addf %30, %31 : vector<1x32xf32>
    %33 = math.rsqrt %32 : vector<1x32xf32>
    %34 = vector.broadcast %25 : vector<1x32xf32> to vector<64x32xf32>
    %35 = arith.subf %1, %34 : vector<64x32xf32>
    %36 = vector.broadcast %33 : vector<1x32xf32> to vector<64x32xf32>
    %37 = arith.mulf %35, %36 : vector<64x32xf32>
    %38 = vector.broadcast %13 : vector<1x32xf32> to vector<64x32xf32>
    %39 = arith.mulf %37, %38 : vector<64x32xf32>
    %40 = vector.broadcast %14 : vector<1x32xf32> to vector<64x32xf32>
    %41 = arith.addf %39, %40 : vector<64x32xf32>
    %42 = arith.truncf %41 : vector<64x32xf32> to vector<64x32xbf16>
    %c0_24 = arith.constant 0 : index
    %c0_25 = arith.constant 0 : index
    %43 = vector.load %arg8[%c0_24, %c0_25] : memref<32x128xbf16, #tpu.memory_space<vmem>>, vector<32x128xbf16>
    %cst_26 = arith.constant dense<0.000000e+00> : vector<64x128xf32>
    %44 = tpu.matmul %42, %43, %cst_26 {dimension_numbers = #tpu.dot_dimension_numbers<[1], [0], [0], [1], [0, 0, 1, 1], [], []>} : vector<64x32xbf16>, vector<32x128xbf16>, vector<64x128xf32> -> vector<64x128xf32>
    %c0_27 = arith.constant 0 : index
    %c0_28 = arith.constant 0 : index
    %45 = vector.load %arg9[%c0_27, %c0_28] : memref<1x128xf32, #tpu.memory_space<vmem>>, vector<1x128xf32>
    %46 = vector.broadcast %45 : vector<1x128xf32> to vector<64x128xf32>
    %47 = arith.addf %44, %46 : vector<64x128xf32>
    %48 = vector.extract_strided_slice %47 {offsets = [0, 0], sizes = [64, 32], strides = [1, 1]} : vector<64x128xf32> to vector<64x32xf32>
    %49 = vector.extract_strided_slice %47 {offsets = [0, 32], sizes = [64, 32], strides = [1, 1]} : vector<64x128xf32> to vector<64x32xf32>
    %50 = vector.extract_strided_slice %47 {offsets = [0, 64], sizes = [64, 32], strides = [1, 1]} : vector<64x128xf32> to vector<64x32xf32>
    %51 = arith.truncf %48 : vector<64x32xf32> to vector<64x32xbf16>
    %52 = arith.truncf %49 : vector<64x32xf32> to vector<64x32xbf16>
    %cst_29 = arith.constant dense<0.000000e+00> : vector<64x64xf32>
    %53 = tpu.matmul %51, %52, %cst_29 {dimension_numbers = #tpu.dot_dimension_numbers<[1], [1], [0], [0], [0, 0, 1, 0], [], []>} : vector<64x32xbf16>, vector<64x32xbf16>, vector<64x64xf32> -> vector<64x64xf32>
    %cst_30 = arith.constant 0.176776692 : f32
    %54 = vector.broadcast %cst_30 : f32 to vector<64x64xf32>
    %55 = arith.mulf %53, %54 : vector<64x64xf32>
    %cst_31 = arith.constant dense<0xFF800000> : vector<64xf32>
    %56 = vector.multi_reduction <maximumf>, %55, %cst_31 [1] : vector<64x64xf32> to vector<64xf32>
    %57 = vector.shape_cast %56 : vector<64xf32> to vector<64x1xf32>
    %58 = vector.broadcast %57 : vector<64x1xf32> to vector<64x64xf32>
    %59 = arith.subf %55, %58 : vector<64x64xf32>
    %60 = math.exp %59 : vector<64x64xf32>
    %cst_32 = arith.constant dense<0.000000e+00> : vector<64xf32>
    %61 = vector.multi_reduction <add>, %60, %cst_32 [1] : vector<64x64xf32> to vector<64xf32>
    %62 = vector.shape_cast %61 : vector<64xf32> to vector<64x1xf32>
    %63 = tpu.reciprocal %62 {approx = true} : vector<64x1xf32> -> vector<64x1xf32>
    %64 = vector.broadcast %63 : vector<64x1xf32> to vector<64x64xf32>
    %65 = arith.mulf %60, %64 : vector<64x64xf32>
    %66 = arith.truncf %65 : vector<64x64xf32> to vector<64x64xbf16>
    %67 = arith.truncf %50 : vector<64x32xf32> to vector<64x32xbf16>
    %cst_33 = arith.constant dense<0.000000e+00> : vector<64x32xf32>
    %68 = tpu.matmul %66, %67, %cst_33 {dimension_numbers = #tpu.dot_dimension_numbers<[1], [0], [0], [1], [0, 0, 1, 1], [], []>} : vector<64x64xbf16>, vector<64x32xbf16>, vector<64x32xf32> -> vector<64x32xf32>
    %69 = arith.truncf %68 : vector<64x32xf32> to vector<64x32xbf16>
    %c0_34 = arith.constant 0 : index
    %c0_35 = arith.constant 0 : index
    %70 = vector.load %arg10[%c0_34, %c0_35] : memref<32x32xbf16, #tpu.memory_space<vmem>>, vector<32x32xbf16>
    %cst_36 = arith.constant dense<0.000000e+00> : vector<64x32xf32>
    %71 = tpu.matmul %69, %70, %cst_36 {dimension_numbers = #tpu.dot_dimension_numbers<[1], [0], [0], [1], [0, 0, 1, 1], [], []>} : vector<64x32xbf16>, vector<32x32xbf16>, vector<64x32xf32> -> vector<64x32xf32>
    %72 = arith.addf %1, %71 : vector<64x32xf32>
    %c0_37 = arith.constant 0 : index
    %c0_38 = arith.constant 0 : index
    %73 = vector.load %arg11[%c0_37, %c0_38] : memref<1x32xf32, #tpu.memory_space<vmem>>, vector<1x32xf32>
    %74 = vector.broadcast %73 : vector<1x32xf32> to vector<64x32xf32>
    %75 = arith.addf %72, %74 : vector<64x32xf32>
    %c0_39 = arith.constant 0 : index
    %c0_40 = arith.constant 0 : index
    %76 = vector.load %arg12[%c0_39, %c0_40] : memref<1x32xf32, #tpu.memory_space<vmem>>, vector<1x32xf32>
    %c0_41 = arith.constant 0 : index
    %c0_42 = arith.constant 0 : index
    %77 = vector.load %arg13[%c0_41, %c0_42] : memref<1x32xf32, #tpu.memory_space<vmem>>, vector<1x32xf32>
    %cst_43 = arith.constant dense<0.000000e+00> : vector<32xf32>
    %78 = vector.multi_reduction <add>, %75, %cst_43 [0] : vector<64x32xf32> to vector<32xf32>
    %79 = vector.shape_cast %78 : vector<32xf32> to vector<1x32xf32>
    %80 = arith.mulf %75, %75 : vector<64x32xf32>
    %cst_44 = arith.constant dense<0.000000e+00> : vector<32xf32>
    %81 = vector.multi_reduction <add>, %80, %cst_44 [0] : vector<64x32xf32> to vector<32xf32>
    %82 = vector.shape_cast %81 : vector<32xf32> to vector<1x32xf32>
    %83 = tpu.concatenate %79, %82 in 0 : vector<1x32xf32>, vector<1x32xf32> -> vector<2x32xf32>
    %cst_45 = arith.constant dense<0.000000e+00> : vector<2x8xf32>
    %84 = tpu.matmul %83, %2, %cst_45 {dimension_numbers = #tpu.dot_dimension_numbers<[1], [0], [0], [1], [0, 0, 1, 1], [], []>} : vector<2x32xf32>, vector<32x8xf32>, vector<2x8xf32> -> vector<2x8xf32>
    %cst_46 = arith.constant 3.906250e-03 : f32
    %85 = vector.broadcast %cst_46 : f32 to vector<2x8xf32>
    %86 = arith.mulf %84, %85 : vector<2x8xf32>
    %cst_47 = arith.constant dense<0.000000e+00> : vector<2x32xf32>
    %87 = tpu.matmul %86, %3, %cst_47 {dimension_numbers = #tpu.dot_dimension_numbers<[1], [0], [0], [1], [0, 0, 1, 1], [], []>} : vector<2x8xf32>, vector<8x32xf32>, vector<2x32xf32> -> vector<2x32xf32>
    %88 = vector.extract_strided_slice %87 {offsets = [0, 0], sizes = [1, 32], strides = [1, 1]} : vector<2x32xf32> to vector<1x32xf32>
    %89 = vector.extract_strided_slice %87 {offsets = [1, 0], sizes = [1, 32], strides = [1, 1]} : vector<2x32xf32> to vector<1x32xf32>
    %90 = arith.mulf %88, %88 : vector<1x32xf32>
    %91 = arith.subf %89, %90 : vector<1x32xf32>
    %cst_48 = arith.constant 0.000000e+00 : f32
    %92 = vector.broadcast %cst_48 : f32 to vector<1x32xf32>
    %93 = arith.maximumf %91, %92 : vector<1x32xf32>
    %cst_49 = arith.constant 9.99999974E-6 : f32
    %94 = vector.broadcast %cst_49 : f32 to vector<1x32xf32>
    %95 = arith.addf %93, %94 : vector<1x32xf32>
    %96 = math.rsqrt %95 : vector<1x32xf32>
    %97 = vector.broadcast %88 : vector<1x32xf32> to vector<64x32xf32>
    %98 = arith.subf %75, %97 : vector<64x32xf32>
    %99 = vector.broadcast %96 : vector<1x32xf32> to vector<64x32xf32>
    %100 = arith.mulf %98, %99 : vector<64x32xf32>
    %101 = vector.broadcast %76 : vector<1x32xf32> to vector<64x32xf32>
    %102 = arith.mulf %100, %101 : vector<64x32xf32>
    %103 = vector.broadcast %77 : vector<1x32xf32> to vector<64x32xf32>
    %104 = arith.addf %102, %103 : vector<64x32xf32>
    %105 = arith.truncf %104 : vector<64x32xf32> to vector<64x32xbf16>
    %c0_50 = arith.constant 0 : index
    %c0_51 = arith.constant 0 : index
    %106 = vector.load %arg14[%c0_50, %c0_51] : memref<32x128xbf16, #tpu.memory_space<vmem>>, vector<32x128xbf16>
    %cst_52 = arith.constant dense<0.000000e+00> : vector<64x128xf32>
    %107 = tpu.matmul %105, %106, %cst_52 {dimension_numbers = #tpu.dot_dimension_numbers<[1], [0], [0], [1], [0, 0, 1, 1], [], []>} : vector<64x32xbf16>, vector<32x128xbf16>, vector<64x128xf32> -> vector<64x128xf32>
    %c0_53 = arith.constant 0 : index
    %c0_54 = arith.constant 0 : index
    %108 = vector.load %arg15[%c0_53, %c0_54] : memref<1x128xf32, #tpu.memory_space<vmem>>, vector<1x128xf32>
    %109 = vector.broadcast %108 : vector<1x128xf32> to vector<64x128xf32>
    %110 = arith.addf %107, %109 : vector<64x128xf32>
    %111 = arith.negf %110 : vector<64x128xf32>
    %112 = math.exp %111 : vector<64x128xf32>
    %cst_55 = arith.constant 1.000000e+00 : f32
    %113 = vector.broadcast %cst_55 : f32 to vector<64x128xf32>
    %114 = arith.addf %113, %112 : vector<64x128xf32>
    %115 = arith.divf %113, %114 : vector<64x128xf32>
    %116 = arith.mulf %110, %115 : vector<64x128xf32>
    %117 = arith.truncf %116 : vector<64x128xf32> to vector<64x128xbf16>
    %c0_56 = arith.constant 0 : index
    %c0_57 = arith.constant 0 : index
    %118 = vector.load %arg16[%c0_56, %c0_57] : memref<128x32xbf16, #tpu.memory_space<vmem>>, vector<128x32xbf16>
    %cst_58 = arith.constant dense<0.000000e+00> : vector<64x32xf32>
    %119 = tpu.matmul %117, %118, %cst_58 {dimension_numbers = #tpu.dot_dimension_numbers<[1], [0], [0], [1], [0, 0, 1, 1], [], []>} : vector<64x128xbf16>, vector<128x32xbf16>, vector<64x32xf32> -> vector<64x32xf32>
    %120 = arith.addf %75, %119 : vector<64x32xf32>
    %c0_59 = arith.constant 0 : index
    %c0_60 = arith.constant 0 : index
    %121 = vector.load %arg17[%c0_59, %c0_60] : memref<1x32xf32, #tpu.memory_space<vmem>>, vector<1x32xf32>
    %122 = vector.broadcast %121 : vector<1x32xf32> to vector<64x32xf32>
    %123 = arith.addf %120, %122 : vector<64x32xf32>
    %c0_61 = arith.constant 0 : index
    %c0_62 = arith.constant 0 : index
    %124 = vector.load %arg18[%c0_61, %c0_62] : memref<1x32xf32, #tpu.memory_space<vmem>>, vector<1x32xf32>
    %c0_63 = arith.constant 0 : index
    %c0_64 = arith.constant 0 : index
    %125 = vector.load %arg19[%c0_63, %c0_64] : memref<1x32xf32, #tpu.memory_space<vmem>>, vector<1x32xf32>
    %cst_65 = arith.constant dense<0.000000e+00> : vector<32xf32>
    %126 = vector.multi_reduction <add>, %123, %cst_65 [0] : vector<64x32xf32> to vector<32xf32>
    %127 = vector.shape_cast %126 : vector<32xf32> to vector<1x32xf32>
    %128 = arith.mulf %123, %123 : vector<64x32xf32>
    %cst_66 = arith.constant dense<0.000000e+00> : vector<32xf32>
    %129 = vector.multi_reduction <add>, %128, %cst_66 [0] : vector<64x32xf32> to vector<32xf32>
    %130 = vector.shape_cast %129 : vector<32xf32> to vector<1x32xf32>
    %131 = tpu.concatenate %127, %130 in 0 : vector<1x32xf32>, vector<1x32xf32> -> vector<2x32xf32>
    %cst_67 = arith.constant dense<0.000000e+00> : vector<2x8xf32>
    %132 = tpu.matmul %131, %2, %cst_67 {dimension_numbers = #tpu.dot_dimension_numbers<[1], [0], [0], [1], [0, 0, 1, 1], [], []>} : vector<2x32xf32>, vector<32x8xf32>, vector<2x8xf32> -> vector<2x8xf32>
    %cst_68 = arith.constant 3.906250e-03 : f32
    %133 = vector.broadcast %cst_68 : f32 to vector<2x8xf32>
    %134 = arith.mulf %132, %133 : vector<2x8xf32>
    %cst_69 = arith.constant dense<0.000000e+00> : vector<2x32xf32>
    %135 = tpu.matmul %134, %3, %cst_69 {dimension_numbers = #tpu.dot_dimension_numbers<[1], [0], [0], [1], [0, 0, 1, 1], [], []>} : vector<2x8xf32>, vector<8x32xf32>, vector<2x32xf32> -> vector<2x32xf32>
    %136 = vector.extract_strided_slice %135 {offsets = [0, 0], sizes = [1, 32], strides = [1, 1]} : vector<2x32xf32> to vector<1x32xf32>
    %137 = vector.extract_strided_slice %135 {offsets = [1, 0], sizes = [1, 32], strides = [1, 1]} : vector<2x32xf32> to vector<1x32xf32>
    %138 = arith.mulf %136, %136 : vector<1x32xf32>
    %139 = arith.subf %137, %138 : vector<1x32xf32>
    %cst_70 = arith.constant 0.000000e+00 : f32
    %140 = vector.broadcast %cst_70 : f32 to vector<1x32xf32>
    %141 = arith.maximumf %139, %140 : vector<1x32xf32>
    %cst_71 = arith.constant 9.99999974E-6 : f32
    %142 = vector.broadcast %cst_71 : f32 to vector<1x32xf32>
    %143 = arith.addf %141, %142 : vector<1x32xf32>
    %144 = math.rsqrt %143 : vector<1x32xf32>
    %145 = vector.broadcast %136 : vector<1x32xf32> to vector<64x32xf32>
    %146 = arith.subf %123, %145 : vector<64x32xf32>
    %147 = vector.broadcast %144 : vector<1x32xf32> to vector<64x32xf32>
    %148 = arith.mulf %146, %147 : vector<64x32xf32>
    %149 = vector.broadcast %124 : vector<1x32xf32> to vector<64x32xf32>
    %150 = arith.mulf %148, %149 : vector<64x32xf32>
    %151 = vector.broadcast %125 : vector<1x32xf32> to vector<64x32xf32>
    %152 = arith.addf %150, %151 : vector<64x32xf32>
    %153 = arith.truncf %152 : vector<64x32xf32> to vector<64x32xbf16>
    %c0_72 = arith.constant 0 : index
    %c0_73 = arith.constant 0 : index
    %154 = vector.load %arg20[%c0_72, %c0_73] : memref<32x32xbf16, #tpu.memory_space<vmem>>, vector<32x32xbf16>
    %cst_74 = arith.constant dense<0.000000e+00> : vector<64x32xf32>
    %155 = tpu.matmul %153, %154, %cst_74 {dimension_numbers = #tpu.dot_dimension_numbers<[1], [0], [0], [1], [0, 0, 1, 1], [], []>} : vector<64x32xbf16>, vector<32x32xbf16>, vector<64x32xf32> -> vector<64x32xf32>
    %c0_75 = arith.constant 0 : index
    %c0_76 = arith.constant 0 : index
    %156 = vector.load %arg21[%c0_75, %c0_76] : memref<1x32xf32, #tpu.memory_space<vmem>>, vector<1x32xf32>
    %157 = vector.broadcast %156 : vector<1x32xf32> to vector<64x32xf32>
    %158 = arith.addf %155, %157 : vector<64x32xf32>
    %c0_77 = arith.constant 0 : index
    %c0_78 = arith.constant 0 : index
    %159 = vector.load %arg22[%c0_77, %c0_78] : memref<16x128xbf16, #tpu.memory_space<vmem>>, vector<16x128xbf16>
    %cst_79 = arith.constant dense<0.000000e+00> : vector<8x128xf32>
    %160 = tpu.matmul %6, %159, %cst_79 {dimension_numbers = #tpu.dot_dimension_numbers<[1], [0], [0], [1], [0, 0, 1, 1], [], []>} : vector<8x16xbf16>, vector<16x128xbf16>, vector<8x128xf32> -> vector<8x128xf32>
    %c0_80 = arith.constant 0 : index
    %c0_81 = arith.constant 0 : index
    %161 = vector.load %arg23[%c0_80, %c0_81] : memref<1x128xf32, #tpu.memory_space<vmem>>, vector<1x128xf32>
    %162 = vector.broadcast %161 : vector<1x128xf32> to vector<8x128xf32>
    %163 = arith.addf %160, %162 : vector<8x128xf32>
    %164 = vector.extract_strided_slice %163 {offsets = [0, 0], sizes = [8, 32], strides = [1, 1]} : vector<8x128xf32> to vector<8x32xf32>
    %165 = vector.extract_strided_slice %163 {offsets = [0, 32], sizes = [8, 32], strides = [1, 1]} : vector<8x128xf32> to vector<8x32xf32>
    %166 = arith.truncf %158 : vector<64x32xf32> to vector<64x32xbf16>
    %167 = arith.truncf %164 : vector<8x32xf32> to vector<8x32xbf16>
    %cst_82 = arith.constant dense<0.000000e+00> : vector<64x8xf32>
    %168 = tpu.matmul %166, %167, %cst_82 {dimension_numbers = #tpu.dot_dimension_numbers<[1], [1], [0], [0], [0, 0, 1, 0], [], []>} : vector<64x32xbf16>, vector<8x32xbf16>, vector<64x8xf32> -> vector<64x8xf32>
    %cst_83 = arith.constant 0.176776692 : f32
    %169 = vector.broadcast %cst_83 : f32 to vector<64x8xf32>
    %170 = arith.mulf %168, %169 : vector<64x8xf32>
    %171 = vector.broadcast %12 : vector<1x8xf32> to vector<64x8xf32>
    %172 = arith.addf %170, %171 : vector<64x8xf32>
    %cst_84 = arith.constant dense<0xFF800000> : vector<64xf32>
    %173 = vector.multi_reduction <maximumf>, %172, %cst_84 [1] : vector<64x8xf32> to vector<64xf32>
    %174 = vector.shape_cast %173 : vector<64xf32> to vector<64x1xf32>
    %175 = vector.broadcast %174 : vector<64x1xf32> to vector<64x8xf32>
    %176 = arith.subf %172, %175 : vector<64x8xf32>
    %177 = math.exp %176 : vector<64x8xf32>
    %cst_85 = arith.constant dense<0.000000e+00> : vector<64xf32>
    %178 = vector.multi_reduction <add>, %177, %cst_85 [1] : vector<64x8xf32> to vector<64xf32>
    %179 = vector.shape_cast %178 : vector<64xf32> to vector<64x1xf32>
    %180 = tpu.reciprocal %179 {approx = true} : vector<64x1xf32> -> vector<64x1xf32>
    %181 = vector.broadcast %180 : vector<64x1xf32> to vector<64x8xf32>
    %182 = arith.mulf %177, %181 : vector<64x8xf32>
    %183 = arith.truncf %182 : vector<64x8xf32> to vector<64x8xbf16>
    %184 = arith.truncf %165 : vector<8x32xf32> to vector<8x32xbf16>
    %cst_86 = arith.constant dense<0.000000e+00> : vector<64x32xf32>
    %185 = tpu.matmul %183, %184, %cst_86 {dimension_numbers = #tpu.dot_dimension_numbers<[1], [0], [0], [1], [0, 0, 1, 1], [], []>} : vector<64x8xbf16>, vector<8x32xbf16>, vector<64x32xf32> -> vector<64x32xf32>
    %186 = arith.truncf %185 : vector<64x32xf32> to vector<64x32xbf16>
    %c0_87 = arith.constant 0 : index
    %c0_88 = arith.constant 0 : index
    %187 = vector.load %arg24[%c0_87, %c0_88] : memref<32x32xbf16, #tpu.memory_space<vmem>>, vector<32x32xbf16>
    %cst_89 = arith.constant dense<0.000000e+00> : vector<64x32xf32>
    %188 = tpu.matmul %186, %187, %cst_89 {dimension_numbers = #tpu.dot_dimension_numbers<[1], [0], [0], [1], [0, 0, 1, 1], [], []>} : vector<64x32xbf16>, vector<32x32xbf16>, vector<64x32xf32> -> vector<64x32xf32>
    %189 = arith.addf %123, %188 : vector<64x32xf32>
    %c0_90 = arith.constant 0 : index
    %c0_91 = arith.constant 0 : index
    %190 = vector.load %arg25[%c0_90, %c0_91] : memref<1x32xf32, #tpu.memory_space<vmem>>, vector<1x32xf32>
    %191 = vector.broadcast %190 : vector<1x32xf32> to vector<64x32xf32>
    %192 = arith.addf %189, %191 : vector<64x32xf32>
    %c0_92 = arith.constant 0 : index
    %c0_93 = arith.constant 0 : index
    %193 = vector.load %arg26[%c0_92, %c0_93] : memref<1x32xf32, #tpu.memory_space<vmem>>, vector<1x32xf32>
    %c0_94 = arith.constant 0 : index
    %c0_95 = arith.constant 0 : index
    %194 = vector.load %arg27[%c0_94, %c0_95] : memref<1x32xf32, #tpu.memory_space<vmem>>, vector<1x32xf32>
    %cst_96 = arith.constant dense<0.000000e+00> : vector<32xf32>
    %195 = vector.multi_reduction <add>, %192, %cst_96 [0] : vector<64x32xf32> to vector<32xf32>
    %196 = vector.shape_cast %195 : vector<32xf32> to vector<1x32xf32>
    %197 = arith.mulf %192, %192 : vector<64x32xf32>
    %cst_97 = arith.constant dense<0.000000e+00> : vector<32xf32>
    %198 = vector.multi_reduction <add>, %197, %cst_97 [0] : vector<64x32xf32> to vector<32xf32>
    %199 = vector.shape_cast %198 : vector<32xf32> to vector<1x32xf32>
    %200 = tpu.concatenate %196, %199 in 0 : vector<1x32xf32>, vector<1x32xf32> -> vector<2x32xf32>
    %cst_98 = arith.constant dense<0.000000e+00> : vector<2x8xf32>
    %201 = tpu.matmul %200, %2, %cst_98 {dimension_numbers = #tpu.dot_dimension_numbers<[1], [0], [0], [1], [0, 0, 1, 1], [], []>} : vector<2x32xf32>, vector<32x8xf32>, vector<2x8xf32> -> vector<2x8xf32>
    %cst_99 = arith.constant 3.906250e-03 : f32
    %202 = vector.broadcast %cst_99 : f32 to vector<2x8xf32>
    %203 = arith.mulf %201, %202 : vector<2x8xf32>
    %cst_100 = arith.constant dense<0.000000e+00> : vector<2x32xf32>
    %204 = tpu.matmul %203, %3, %cst_100 {dimension_numbers = #tpu.dot_dimension_numbers<[1], [0], [0], [1], [0, 0, 1, 1], [], []>} : vector<2x8xf32>, vector<8x32xf32>, vector<2x32xf32> -> vector<2x32xf32>
    %205 = vector.extract_strided_slice %204 {offsets = [0, 0], sizes = [1, 32], strides = [1, 1]} : vector<2x32xf32> to vector<1x32xf32>
    %206 = vector.extract_strided_slice %204 {offsets = [1, 0], sizes = [1, 32], strides = [1, 1]} : vector<2x32xf32> to vector<1x32xf32>
    %207 = arith.mulf %205, %205 : vector<1x32xf32>
    %208 = arith.subf %206, %207 : vector<1x32xf32>
    %cst_101 = arith.constant 0.000000e+00 : f32
    %209 = vector.broadcast %cst_101 : f32 to vector<1x32xf32>
    %210 = arith.maximumf %208, %209 : vector<1x32xf32>
    %cst_102 = arith.constant 9.99999974E-6 : f32
    %211 = vector.broadcast %cst_102 : f32 to vector<1x32xf32>
    %212 = arith.addf %210, %211 : vector<1x32xf32>
    %213 = math.rsqrt %212 : vector<1x32xf32>
    %214 = vector.broadcast %205 : vector<1x32xf32> to vector<64x32xf32>
    %215 = arith.subf %192, %214 : vector<64x32xf32>
    %216 = vector.broadcast %213 : vector<1x32xf32> to vector<64x32xf32>
    %217 = arith.mulf %215, %216 : vector<64x32xf32>
    %218 = vector.broadcast %193 : vector<1x32xf32> to vector<64x32xf32>
    %219 = arith.mulf %217, %218 : vector<64x32xf32>
    %220 = vector.broadcast %194 : vector<1x32xf32> to vector<64x32xf32>
    %221 = arith.addf %219, %220 : vector<64x32xf32>
    %222 = arith.truncf %221 : vector<64x32xf32> to vector<64x32xbf16>
    %c0_103 = arith.constant 0 : index
    %c0_104 = arith.constant 0 : index
    %223 = vector.load %arg28[%c0_103, %c0_104] : memref<32x128xbf16, #tpu.memory_space<vmem>>, vector<32x128xbf16>
    %cst_105 = arith.constant dense<0.000000e+00> : vector<64x128xf32>
    %224 = tpu.matmul %222, %223, %cst_105 {dimension_numbers = #tpu.dot_dimension_numbers<[1], [0], [0], [1], [0, 0, 1, 1], [], []>} : vector<64x32xbf16>, vector<32x128xbf16>, vector<64x128xf32> -> vector<64x128xf32>
    %c0_106 = arith.constant 0 : index
    %c0_107 = arith.constant 0 : index
    %225 = vector.load %arg29[%c0_106, %c0_107] : memref<1x128xf32, #tpu.memory_space<vmem>>, vector<1x128xf32>
    %226 = vector.broadcast %225 : vector<1x128xf32> to vector<64x128xf32>
    %227 = arith.addf %224, %226 : vector<64x128xf32>
    %228 = vector.extract_strided_slice %227 {offsets = [0, 0], sizes = [64, 32], strides = [1, 1]} : vector<64x128xf32> to vector<64x32xf32>
    %229 = vector.extract_strided_slice %227 {offsets = [0, 32], sizes = [64, 32], strides = [1, 1]} : vector<64x128xf32> to vector<64x32xf32>
    %230 = vector.extract_strided_slice %227 {offsets = [0, 64], sizes = [64, 32], strides = [1, 1]} : vector<64x128xf32> to vector<64x32xf32>
    %231 = arith.truncf %228 : vector<64x32xf32> to vector<64x32xbf16>
    %232 = arith.truncf %229 : vector<64x32xf32> to vector<64x32xbf16>
    %cst_108 = arith.constant dense<0.000000e+00> : vector<64x64xf32>
    %233 = tpu.matmul %231, %232, %cst_108 {dimension_numbers = #tpu.dot_dimension_numbers<[1], [1], [0], [0], [0, 0, 1, 0], [], []>} : vector<64x32xbf16>, vector<64x32xbf16>, vector<64x64xf32> -> vector<64x64xf32>
    %cst_109 = arith.constant 0.176776692 : f32
    %234 = vector.broadcast %cst_109 : f32 to vector<64x64xf32>
    %235 = arith.mulf %233, %234 : vector<64x64xf32>
    %cst_110 = arith.constant dense<0xFF800000> : vector<64xf32>
    %236 = vector.multi_reduction <maximumf>, %235, %cst_110 [1] : vector<64x64xf32> to vector<64xf32>
    %237 = vector.shape_cast %236 : vector<64xf32> to vector<64x1xf32>
    %238 = vector.broadcast %237 : vector<64x1xf32> to vector<64x64xf32>
    %239 = arith.subf %235, %238 : vector<64x64xf32>
    %240 = math.exp %239 : vector<64x64xf32>
    %cst_111 = arith.constant dense<0.000000e+00> : vector<64xf32>
    %241 = vector.multi_reduction <add>, %240, %cst_111 [1] : vector<64x64xf32> to vector<64xf32>
    %242 = vector.shape_cast %241 : vector<64xf32> to vector<64x1xf32>
    %243 = tpu.reciprocal %242 {approx = true} : vector<64x1xf32> -> vector<64x1xf32>
    %244 = vector.broadcast %243 : vector<64x1xf32> to vector<64x64xf32>
    %245 = arith.mulf %240, %244 : vector<64x64xf32>
    %246 = arith.truncf %245 : vector<64x64xf32> to vector<64x64xbf16>
    %247 = arith.truncf %230 : vector<64x32xf32> to vector<64x32xbf16>
    %cst_112 = arith.constant dense<0.000000e+00> : vector<64x32xf32>
    %248 = tpu.matmul %246, %247, %cst_112 {dimension_numbers = #tpu.dot_dimension_numbers<[1], [0], [0], [1], [0, 0, 1, 1], [], []>} : vector<64x64xbf16>, vector<64x32xbf16>, vector<64x32xf32> -> vector<64x32xf32>
    %249 = arith.truncf %248 : vector<64x32xf32> to vector<64x32xbf16>
    %c0_113 = arith.constant 0 : index
    %c0_114 = arith.constant 0 : index
    %250 = vector.load %arg30[%c0_113, %c0_114] : memref<32x32xbf16, #tpu.memory_space<vmem>>, vector<32x32xbf16>
    %cst_115 = arith.constant dense<0.000000e+00> : vector<64x32xf32>
    %251 = tpu.matmul %249, %250, %cst_115 {dimension_numbers = #tpu.dot_dimension_numbers<[1], [0], [0], [1], [0, 0, 1, 1], [], []>} : vector<64x32xbf16>, vector<32x32xbf16>, vector<64x32xf32> -> vector<64x32xf32>
    %252 = arith.addf %192, %251 : vector<64x32xf32>
    %c0_116 = arith.constant 0 : index
    %c0_117 = arith.constant 0 : index
    %253 = vector.load %arg31[%c0_116, %c0_117] : memref<1x32xf32, #tpu.memory_space<vmem>>, vector<1x32xf32>
    %254 = vector.broadcast %253 : vector<1x32xf32> to vector<64x32xf32>
    %255 = arith.addf %252, %254 : vector<64x32xf32>
    %c0_118 = arith.constant 0 : index
    %c0_119 = arith.constant 0 : index
    %256 = vector.load %arg32[%c0_118, %c0_119] : memref<1x32xf32, #tpu.memory_space<vmem>>, vector<1x32xf32>
    %c0_120 = arith.constant 0 : index
    %c0_121 = arith.constant 0 : index
    %257 = vector.load %arg33[%c0_120, %c0_121] : memref<1x32xf32, #tpu.memory_space<vmem>>, vector<1x32xf32>
    %cst_122 = arith.constant dense<0.000000e+00> : vector<32xf32>
    %258 = vector.multi_reduction <add>, %255, %cst_122 [0] : vector<64x32xf32> to vector<32xf32>
    %259 = vector.shape_cast %258 : vector<32xf32> to vector<1x32xf32>
    %260 = arith.mulf %255, %255 : vector<64x32xf32>
    %cst_123 = arith.constant dense<0.000000e+00> : vector<32xf32>
    %261 = vector.multi_reduction <add>, %260, %cst_123 [0] : vector<64x32xf32> to vector<32xf32>
    %262 = vector.shape_cast %261 : vector<32xf32> to vector<1x32xf32>
    %263 = tpu.concatenate %259, %262 in 0 : vector<1x32xf32>, vector<1x32xf32> -> vector<2x32xf32>
    %cst_124 = arith.constant dense<0.000000e+00> : vector<2x8xf32>
    %264 = tpu.matmul %263, %2, %cst_124 {dimension_numbers = #tpu.dot_dimension_numbers<[1], [0], [0], [1], [0, 0, 1, 1], [], []>} : vector<2x32xf32>, vector<32x8xf32>, vector<2x8xf32> -> vector<2x8xf32>
    %cst_125 = arith.constant 3.906250e-03 : f32
    %265 = vector.broadcast %cst_125 : f32 to vector<2x8xf32>
    %266 = arith.mulf %264, %265 : vector<2x8xf32>
    %cst_126 = arith.constant dense<0.000000e+00> : vector<2x32xf32>
    %267 = tpu.matmul %266, %3, %cst_126 {dimension_numbers = #tpu.dot_dimension_numbers<[1], [0], [0], [1], [0, 0, 1, 1], [], []>} : vector<2x8xf32>, vector<8x32xf32>, vector<2x32xf32> -> vector<2x32xf32>
    %268 = vector.extract_strided_slice %267 {offsets = [0, 0], sizes = [1, 32], strides = [1, 1]} : vector<2x32xf32> to vector<1x32xf32>
    %269 = vector.extract_strided_slice %267 {offsets = [1, 0], sizes = [1, 32], strides = [1, 1]} : vector<2x32xf32> to vector<1x32xf32>
    %270 = arith.mulf %268, %268 : vector<1x32xf32>
    %271 = arith.subf %269, %270 : vector<1x32xf32>
    %cst_127 = arith.constant 0.000000e+00 : f32
    %272 = vector.broadcast %cst_127 : f32 to vector<1x32xf32>
    %273 = arith.maximumf %271, %272 : vector<1x32xf32>
    %cst_128 = arith.constant 9.99999974E-6 : f32
    %274 = vector.broadcast %cst_128 : f32 to vector<1x32xf32>
    %275 = arith.addf %273, %274 : vector<1x32xf32>
    %276 = math.rsqrt %275 : vector<1x32xf32>
    %277 = vector.broadcast %268 : vector<1x32xf32> to vector<64x32xf32>
    %278 = arith.subf %255, %277 : vector<64x32xf32>
    %279 = vector.broadcast %276 : vector<1x32xf32> to vector<64x32xf32>
    %280 = arith.mulf %278, %279 : vector<64x32xf32>
    %281 = vector.broadcast %256 : vector<1x32xf32> to vector<64x32xf32>
    %282 = arith.mulf %280, %281 : vector<64x32xf32>
    %283 = vector.broadcast %257 : vector<1x32xf32> to vector<64x32xf32>
    %284 = arith.addf %282, %283 : vector<64x32xf32>
    %285 = arith.truncf %284 : vector<64x32xf32> to vector<64x32xbf16>
    %c0_129 = arith.constant 0 : index
    %c0_130 = arith.constant 0 : index
    %286 = vector.load %arg34[%c0_129, %c0_130] : memref<32x128xbf16, #tpu.memory_space<vmem>>, vector<32x128xbf16>
    %cst_131 = arith.constant dense<0.000000e+00> : vector<64x128xf32>
    %287 = tpu.matmul %285, %286, %cst_131 {dimension_numbers = #tpu.dot_dimension_numbers<[1], [0], [0], [1], [0, 0, 1, 1], [], []>} : vector<64x32xbf16>, vector<32x128xbf16>, vector<64x128xf32> -> vector<64x128xf32>
    %c0_132 = arith.constant 0 : index
    %c0_133 = arith.constant 0 : index
    %288 = vector.load %arg35[%c0_132, %c0_133] : memref<1x128xf32, #tpu.memory_space<vmem>>, vector<1x128xf32>
    %289 = vector.broadcast %288 : vector<1x128xf32> to vector<64x128xf32>
    %290 = arith.addf %287, %289 : vector<64x128xf32>
    %291 = arith.negf %290 : vector<64x128xf32>
    %292 = math.exp %291 : vector<64x128xf32>
    %cst_134 = arith.constant 1.000000e+00 : f32
    %293 = vector.broadcast %cst_134 : f32 to vector<64x128xf32>
    %294 = arith.addf %293, %292 : vector<64x128xf32>
    %295 = arith.divf %293, %294 : vector<64x128xf32>
    %296 = arith.mulf %290, %295 : vector<64x128xf32>
    %297 = arith.truncf %296 : vector<64x128xf32> to vector<64x128xbf16>
    %c0_135 = arith.constant 0 : index
    %c0_136 = arith.constant 0 : index
    %298 = vector.load %arg36[%c0_135, %c0_136] : memref<128x32xbf16, #tpu.memory_space<vmem>>, vector<128x32xbf16>
    %cst_137 = arith.constant dense<0.000000e+00> : vector<64x32xf32>
    %299 = tpu.matmul %297, %298, %cst_137 {dimension_numbers = #tpu.dot_dimension_numbers<[1], [0], [0], [1], [0, 0, 1, 1], [], []>} : vector<64x128xbf16>, vector<128x32xbf16>, vector<64x32xf32> -> vector<64x32xf32>
    %300 = arith.addf %255, %299 : vector<64x32xf32>
    %c0_138 = arith.constant 0 : index
    %c0_139 = arith.constant 0 : index
    %301 = vector.load %arg37[%c0_138, %c0_139] : memref<1x32xf32, #tpu.memory_space<vmem>>, vector<1x32xf32>
    %302 = vector.broadcast %301 : vector<1x32xf32> to vector<64x32xf32>
    %303 = arith.addf %300, %302 : vector<64x32xf32>
    %c0_140 = arith.constant 0 : index
    %c0_141 = arith.constant 0 : index
    %304 = vector.load %arg38[%c0_140, %c0_141] : memref<1x32xf32, #tpu.memory_space<vmem>>, vector<1x32xf32>
    %c0_142 = arith.constant 0 : index
    %c0_143 = arith.constant 0 : index
    %305 = vector.load %arg39[%c0_142, %c0_143] : memref<1x32xf32, #tpu.memory_space<vmem>>, vector<1x32xf32>
    %cst_144 = arith.constant dense<0.000000e+00> : vector<32xf32>
    %306 = vector.multi_reduction <add>, %303, %cst_144 [0] : vector<64x32xf32> to vector<32xf32>
    %307 = vector.shape_cast %306 : vector<32xf32> to vector<1x32xf32>
    %308 = arith.mulf %303, %303 : vector<64x32xf32>
    %cst_145 = arith.constant dense<0.000000e+00> : vector<32xf32>
    %309 = vector.multi_reduction <add>, %308, %cst_145 [0] : vector<64x32xf32> to vector<32xf32>
    %310 = vector.shape_cast %309 : vector<32xf32> to vector<1x32xf32>
    %311 = tpu.concatenate %307, %310 in 0 : vector<1x32xf32>, vector<1x32xf32> -> vector<2x32xf32>
    %cst_146 = arith.constant dense<0.000000e+00> : vector<2x8xf32>
    %312 = tpu.matmul %311, %2, %cst_146 {dimension_numbers = #tpu.dot_dimension_numbers<[1], [0], [0], [1], [0, 0, 1, 1], [], []>} : vector<2x32xf32>, vector<32x8xf32>, vector<2x8xf32> -> vector<2x8xf32>
    %cst_147 = arith.constant 3.906250e-03 : f32
    %313 = vector.broadcast %cst_147 : f32 to vector<2x8xf32>
    %314 = arith.mulf %312, %313 : vector<2x8xf32>
    %cst_148 = arith.constant dense<0.000000e+00> : vector<2x32xf32>
    %315 = tpu.matmul %314, %3, %cst_148 {dimension_numbers = #tpu.dot_dimension_numbers<[1], [0], [0], [1], [0, 0, 1, 1], [], []>} : vector<2x8xf32>, vector<8x32xf32>, vector<2x32xf32> -> vector<2x32xf32>
    %316 = vector.extract_strided_slice %315 {offsets = [0, 0], sizes = [1, 32], strides = [1, 1]} : vector<2x32xf32> to vector<1x32xf32>
    %317 = vector.extract_strided_slice %315 {offsets = [1, 0], sizes = [1, 32], strides = [1, 1]} : vector<2x32xf32> to vector<1x32xf32>
    %318 = arith.mulf %316, %316 : vector<1x32xf32>
    %319 = arith.subf %317, %318 : vector<1x32xf32>
    %cst_149 = arith.constant 0.000000e+00 : f32
    %320 = vector.broadcast %cst_149 : f32 to vector<1x32xf32>
    %321 = arith.maximumf %319, %320 : vector<1x32xf32>
    %cst_150 = arith.constant 9.99999974E-6 : f32
    %322 = vector.broadcast %cst_150 : f32 to vector<1x32xf32>
    %323 = arith.addf %321, %322 : vector<1x32xf32>
    %324 = math.rsqrt %323 : vector<1x32xf32>
    %325 = vector.broadcast %316 : vector<1x32xf32> to vector<64x32xf32>
    %326 = arith.subf %303, %325 : vector<64x32xf32>
    %327 = vector.broadcast %324 : vector<1x32xf32> to vector<64x32xf32>
    %328 = arith.mulf %326, %327 : vector<64x32xf32>
    %329 = vector.broadcast %304 : vector<1x32xf32> to vector<64x32xf32>
    %330 = arith.mulf %328, %329 : vector<64x32xf32>
    %331 = vector.broadcast %305 : vector<1x32xf32> to vector<64x32xf32>
    %332 = arith.addf %330, %331 : vector<64x32xf32>
    %333 = arith.truncf %332 : vector<64x32xf32> to vector<64x32xbf16>
    %c0_151 = arith.constant 0 : index
    %c0_152 = arith.constant 0 : index
    %334 = vector.load %arg40[%c0_151, %c0_152] : memref<32x32xbf16, #tpu.memory_space<vmem>>, vector<32x32xbf16>
    %cst_153 = arith.constant dense<0.000000e+00> : vector<64x32xf32>
    %335 = tpu.matmul %333, %334, %cst_153 {dimension_numbers = #tpu.dot_dimension_numbers<[1], [0], [0], [1], [0, 0, 1, 1], [], []>} : vector<64x32xbf16>, vector<32x32xbf16>, vector<64x32xf32> -> vector<64x32xf32>
    %c0_154 = arith.constant 0 : index
    %c0_155 = arith.constant 0 : index
    %336 = vector.load %arg41[%c0_154, %c0_155] : memref<1x32xf32, #tpu.memory_space<vmem>>, vector<1x32xf32>
    %337 = vector.broadcast %336 : vector<1x32xf32> to vector<64x32xf32>
    %338 = arith.addf %335, %337 : vector<64x32xf32>
    %c0_156 = arith.constant 0 : index
    %c0_157 = arith.constant 0 : index
    %339 = vector.load %arg42[%c0_156, %c0_157] : memref<16x128xbf16, #tpu.memory_space<vmem>>, vector<16x128xbf16>
    %cst_158 = arith.constant dense<0.000000e+00> : vector<8x128xf32>
    %340 = tpu.matmul %6, %339, %cst_158 {dimension_numbers = #tpu.dot_dimension_numbers<[1], [0], [0], [1], [0, 0, 1, 1], [], []>} : vector<8x16xbf16>, vector<16x128xbf16>, vector<8x128xf32> -> vector<8x128xf32>
    %c0_159 = arith.constant 0 : index
    %c0_160 = arith.constant 0 : index
    %341 = vector.load %arg43[%c0_159, %c0_160] : memref<1x128xf32, #tpu.memory_space<vmem>>, vector<1x128xf32>
    %342 = vector.broadcast %341 : vector<1x128xf32> to vector<8x128xf32>
    %343 = arith.addf %340, %342 : vector<8x128xf32>
    %344 = vector.extract_strided_slice %343 {offsets = [0, 0], sizes = [8, 32], strides = [1, 1]} : vector<8x128xf32> to vector<8x32xf32>
    %345 = vector.extract_strided_slice %343 {offsets = [0, 32], sizes = [8, 32], strides = [1, 1]} : vector<8x128xf32> to vector<8x32xf32>
    %346 = arith.truncf %338 : vector<64x32xf32> to vector<64x32xbf16>
    %347 = arith.truncf %344 : vector<8x32xf32> to vector<8x32xbf16>
    %cst_161 = arith.constant dense<0.000000e+00> : vector<64x8xf32>
    %348 = tpu.matmul %346, %347, %cst_161 {dimension_numbers = #tpu.dot_dimension_numbers<[1], [1], [0], [0], [0, 0, 1, 0], [], []>} : vector<64x32xbf16>, vector<8x32xbf16>, vector<64x8xf32> -> vector<64x8xf32>
    %cst_162 = arith.constant 0.176776692 : f32
    %349 = vector.broadcast %cst_162 : f32 to vector<64x8xf32>
    %350 = arith.mulf %348, %349 : vector<64x8xf32>
    %351 = vector.broadcast %12 : vector<1x8xf32> to vector<64x8xf32>
    %352 = arith.addf %350, %351 : vector<64x8xf32>
    %cst_163 = arith.constant dense<0xFF800000> : vector<64xf32>
    %353 = vector.multi_reduction <maximumf>, %352, %cst_163 [1] : vector<64x8xf32> to vector<64xf32>
    %354 = vector.shape_cast %353 : vector<64xf32> to vector<64x1xf32>
    %355 = vector.broadcast %354 : vector<64x1xf32> to vector<64x8xf32>
    %356 = arith.subf %352, %355 : vector<64x8xf32>
    %357 = math.exp %356 : vector<64x8xf32>
    %cst_164 = arith.constant dense<0.000000e+00> : vector<64xf32>
    %358 = vector.multi_reduction <add>, %357, %cst_164 [1] : vector<64x8xf32> to vector<64xf32>
    %359 = vector.shape_cast %358 : vector<64xf32> to vector<64x1xf32>
    %360 = tpu.reciprocal %359 {approx = true} : vector<64x1xf32> -> vector<64x1xf32>
    %361 = vector.broadcast %360 : vector<64x1xf32> to vector<64x8xf32>
    %362 = arith.mulf %357, %361 : vector<64x8xf32>
    %363 = arith.truncf %362 : vector<64x8xf32> to vector<64x8xbf16>
    %364 = arith.truncf %345 : vector<8x32xf32> to vector<8x32xbf16>
    %cst_165 = arith.constant dense<0.000000e+00> : vector<64x32xf32>
    %365 = tpu.matmul %363, %364, %cst_165 {dimension_numbers = #tpu.dot_dimension_numbers<[1], [0], [0], [1], [0, 0, 1, 1], [], []>} : vector<64x8xbf16>, vector<8x32xbf16>, vector<64x32xf32> -> vector<64x32xf32>
    %366 = arith.truncf %365 : vector<64x32xf32> to vector<64x32xbf16>
    %c0_166 = arith.constant 0 : index
    %c0_167 = arith.constant 0 : index
    %367 = vector.load %arg44[%c0_166, %c0_167] : memref<32x32xbf16, #tpu.memory_space<vmem>>, vector<32x32xbf16>
    %cst_168 = arith.constant dense<0.000000e+00> : vector<64x32xf32>
    %368 = tpu.matmul %366, %367, %cst_168 {dimension_numbers = #tpu.dot_dimension_numbers<[1], [0], [0], [1], [0, 0, 1, 1], [], []>} : vector<64x32xbf16>, vector<32x32xbf16>, vector<64x32xf32> -> vector<64x32xf32>
    %369 = arith.addf %303, %368 : vector<64x32xf32>
    %c0_169 = arith.constant 0 : index
    %c0_170 = arith.constant 0 : index
    %370 = vector.load %arg45[%c0_169, %c0_170] : memref<1x32xf32, #tpu.memory_space<vmem>>, vector<1x32xf32>
    %371 = vector.broadcast %370 : vector<1x32xf32> to vector<64x32xf32>
    %372 = arith.addf %369, %371 : vector<64x32xf32>
    %c0_171 = arith.constant 0 : index
    %c0_172 = arith.constant 0 : index
    %c0_173 = arith.constant 0 : index
    %373 = vector.load %arg46[%c0_171, %c0_172, %c0_173] : memref<1x64x32xf32, #tpu.memory_space<vmem>>, vector<1x64x32xf32>
    %374 = vector.shape_cast %373 : vector<1x64x32xf32> to vector<64x32xf32>
    %375 = vector.shape_cast %372 : vector<64x32xf32> to vector<1x64x32xf32>
    tpu.vector_store %arg46[%c0_171, %c0_172, %c0_173], %375 {strides = array<i32>} : memref<1x64x32xf32, #tpu.memory_space<vmem>>, vector<1x64x32xf32>,
    return
  }
  func.func @transform_0(%arg0: i32) -> (i32, i32, i32) {
    %c0_i32 = arith.constant 0 : i32
    %c0_i32_0 = arith.constant 0 : i32
    %c0_i32_1 = arith.constant 0 : i32
    return %arg0, %c0_i32, %c0_i32_0 : i32, i32, i32
  }
  func.func @transform_1(%arg0: i32) -> (i32, i32, i32) {
    %c0_i32 = arith.constant 0 : i32
    %c0_i32_0 = arith.constant 0 : i32
    %c0_i32_1 = arith.constant 0 : i32
    return %arg0, %c0_i32, %c0_i32_0 : i32, i32, i32
  }
  func.func @transform_2(%arg0: i32) -> (i32, i32, i32) {
    %c0_i32 = arith.constant 0 : i32
    %c0_i32_0 = arith.constant 0 : i32
    %c0_i32_1 = arith.constant 0 : i32
    return %arg0, %c0_i32, %c0_i32_0 : i32, i32, i32
  }
  func.func @transform_3(%arg0: i32) -> (i32, i32) {
    %c0_i32 = arith.constant 0 : i32
    %c0_i32_0 = arith.constant 0 : i32
    %c0_i32_1 = arith.constant 0 : i32
    return %c0_i32, %c0_i32_0 : i32, i32
  }
  func.func @transform_4(%arg0: i32) -> (i32, i32) {
    %c0_i32 = arith.constant 0 : i32
    %c0_i32_0 = arith.constant 0 : i32
    %c0_i32_1 = arith.constant 0 : i32
    return %c0_i32, %c0_i32_0 : i32, i32
  }
  func.func @transform_5(%arg0: i32) -> (i32, i32) {
    %c0_i32 = arith.constant 0 : i32
    %c0_i32_0 = arith.constant 0 : i32
    %c0_i32_1 = arith.constant 0 : i32
    return %c0_i32, %c0_i32_0 : i32, i32
  }
  func.func @transform_6(%arg0: i32) -> (i32, i32) {
    %c0_i32 = arith.constant 0 : i32
    %c0_i32_0 = arith.constant 0 : i32
    %c0_i32_1 = arith.constant 0 : i32
    return %c0_i32, %c0_i32_0 : i32, i32
  }
  func.func @transform_7(%arg0: i32) -> (i32, i32) {
    %c0_i32 = arith.constant 0 : i32
    %c0_i32_0 = arith.constant 0 : i32
    %c0_i32_1 = arith.constant 0 : i32
    return %c0_i32, %c0_i32_0 : i32, i32
  }
  func.func @transform_8(%arg0: i32) -> (i32, i32) {
    %c0_i32 = arith.constant 0 : i32
    %c0_i32_0 = arith.constant 0 : i32
    %c0_i32_1 = arith.constant 0 : i32
    return %c0_i32, %c0_i32_0 : i32, i32
  }
  func.func @transform_9(%arg0: i32) -> (i32, i32) {
    %c0_i32 = arith.constant 0 : i32
    %c0_i32_0 = arith.constant 0 : i32
    %c0_i32_1 = arith.constant 0 : i32
    return %c0_i32, %c0_i32_0 : i32, i32
  }
  func.func @transform_10(%arg0: i32) -> (i32, i32) {
    %c0_i32 = arith.constant 0 : i32
    %c0_i32_0 = arith.constant 0 : i32
    %c0_i32_1 = arith.constant 0 : i32
    return %c0_i32, %c0_i32_0 : i32, i32
  }
  func.func @transform_11(%arg0: i32) -> (i32, i32) {
    %c0_i32 = arith.constant 0 : i32
    %c0_i32_0 = arith.constant 0 : i32
    %c0_i32_1 = arith.constant 0 : i32
    return %c0_i32, %c0_i32_0 : i32, i32
  }
  func.func @transform_12(%arg0: i32) -> (i32, i32) {
    %c0_i32 = arith.constant 0 : i32
    %c0_i32_0 = arith.constant 0 : i32
    %c0_i32_1 = arith.constant 0 : i32
    return %c0_i32, %c0_i32_0 : i32, i32
  }
  func.func @transform_13(%arg0: i32) -> (i32, i32) {
    %c0_i32 = arith.constant 0 : i32
    %c0_i32_0 = arith.constant 0 : i32
    %c0_i32_1 = arith.constant 0 : i32
    return %c0_i32, %c0_i32_0 : i32, i32
  }
  func.func @transform_14(%arg0: i32) -> (i32, i32) {
    %c0_i32 = arith.constant 0 : i32
    %c0_i32_0 = arith.constant 0 : i32
    %c0_i32_1 = arith.constant 0 : i32
    return %c0_i32, %c0_i32_0 : i32, i32
  }
  func.func @transform_15(%arg0: i32) -> (i32, i32) {
    %c0_i32 = arith.constant 0 : i32
    %c0_i32_0 = arith.constant 0 : i32
    %c0_i32_1 = arith.constant 0 : i32
    return %c0_i32, %c0_i32_0 : i32, i32
  }
  func.func @transform_16(%arg0: i32) -> (i32, i32) {
    %c0_i32 = arith.constant 0 : i32
    %c0_i32_0 = arith.constant 0 : i32
    %c0_i32_1 = arith.constant 0 : i32
    return %c0_i32, %c0_i32_0 : i32, i32
  }
  func.func @transform_17(%arg0: i32) -> (i32, i32) {
    %c0_i32 = arith.constant 0 : i32
    %c0_i32_0 = arith.constant 0 : i32
    %c0_i32_1 = arith.constant 0 : i32
    return %c0_i32, %c0_i32_0 : i32, i32
  }
  func.func @transform_18(%arg0: i32) -> (i32, i32) {
    %c0_i32 = arith.constant 0 : i32
    %c0_i32_0 = arith.constant 0 : i32
    %c0_i32_1 = arith.constant 0 : i32
    return %c0_i32, %c0_i32_0 : i32, i32
  }
  func.func @transform_19(%arg0: i32) -> (i32, i32) {
    %c0_i32 = arith.constant 0 : i32
    %c0_i32_0 = arith.constant 0 : i32
    %c0_i32_1 = arith.constant 0 : i32
    return %c0_i32, %c0_i32_0 : i32, i32
  }
  func.func @transform_20(%arg0: i32) -> (i32, i32) {
    %c0_i32 = arith.constant 0 : i32
    %c0_i32_0 = arith.constant 0 : i32
    %c0_i32_1 = arith.constant 0 : i32
    return %c0_i32, %c0_i32_0 : i32, i32
  }
  func.func @transform_21(%arg0: i32) -> (i32, i32) {
    %c0_i32 = arith.constant 0 : i32
    %c0_i32_0 = arith.constant 0 : i32
    %c0_i32_1 = arith.constant 0 : i32
    return %c0_i32, %c0_i32_0 : i32, i32
  }
  func.func @transform_22(%arg0: i32) -> (i32, i32) {
    %c0_i32 = arith.constant 0 : i32
    %c0_i32_0 = arith.constant 0 : i32
    %c0_i32_1 = arith.constant 0 : i32
    return %c0_i32, %c0_i32_0 : i32, i32
  }
  func.func @transform_23(%arg0: i32) -> (i32, i32) {
    %c0_i32 = arith.constant 0 : i32
    %c0_i32_0 = arith.constant 0 : i32
    %c0_i32_1 = arith.constant 0 : i32
    return %c0_i32, %c0_i32_0 : i32, i32
  }
  func.func @transform_24(%arg0: i32) -> (i32, i32) {
    %c0_i32 = arith.constant 0 : i32
    %c0_i32_0 = arith.constant 0 : i32
    %c0_i32_1 = arith.constant 0 : i32
    return %c0_i32, %c0_i32_0 : i32, i32
  }
  func.func @transform_25(%arg0: i32) -> (i32, i32) {
    %c0_i32 = arith.constant 0 : i32
    %c0_i32_0 = arith.constant 0 : i32
    %c0_i32_1 = arith.constant 0 : i32
    return %c0_i32, %c0_i32_0 : i32, i32
  }
  func.func @transform_26(%arg0: i32) -> (i32, i32) {
    %c0_i32 = arith.constant 0 : i32
    %c0_i32_0 = arith.constant 0 : i32
    %c0_i32_1 = arith.constant 0 : i32
    return %c0_i32, %c0_i32_0 : i32, i32
  }
  func.func @transform_27(%arg0: i32) -> (i32, i32) {
    %c0_i32 = arith.constant 0 : i32
    %c0_i32_0 = arith.constant 0 : i32
    %c0_i32_1 = arith.constant 0 : i32
    return %c0_i32, %c0_i32_0 : i32, i32
  }
  func.func @transform_28(%arg0: i32) -> (i32, i32) {
    %c0_i32 = arith.constant 0 : i32
    %c0_i32_0 = arith.constant 0 : i32
    %c0_i32_1 = arith.constant 0 : i32
    return %c0_i32, %c0_i32_0 : i32, i32
  }
  func.func @transform_29(%arg0: i32) -> (i32, i32) {
    %c0_i32 = arith.constant 0 : i32
    %c0_i32_0 = arith.constant 0 : i32
    %c0_i32_1 = arith.constant 0 : i32
    return %c0_i32, %c0_i32_0 : i32, i32
  }
  func.func @transform_30(%arg0: i32) -> (i32, i32) {
    %c0_i32 = arith.constant 0 : i32
    %c0_i32_0 = arith.constant 0 : i32
    %c0_i32_1 = arith.constant 0 : i32
    return %c0_i32, %c0_i32_0 : i32, i32
  }
  func.func @transform_31(%arg0: i32) -> (i32, i32) {
    %c0_i32 = arith.constant 0 : i32
    %c0_i32_0 = arith.constant 0 : i32
    %c0_i32_1 = arith.constant 0 : i32
    return %c0_i32, %c0_i32_0 : i32, i32
  }
  func.func @transform_32(%arg0: i32) -> (i32, i32) {
    %c0_i32 = arith.constant 0 : i32
    %c0_i32_0 = arith.constant 0 : i32
    %c0_i32_1 = arith.constant 0 : i32
    return %c0_i32, %c0_i32_0 : i32, i32
  }
  func.func @transform_33(%arg0: i32) -> (i32, i32) {
    %c0_i32 = arith.constant 0 : i32
    %c0_i32_0 = arith.constant 0 : i32
    %c0_i32_1 = arith.constant 0 : i32
    return %c0_i32, %c0_i32_0 : i32, i32
  }
  func.func @transform_34(%arg0: i32) -> (i32, i32) {
    %c0_i32 = arith.constant 0 : i32
    %c0_i32_0 = arith.constant 0 : i32
    %c0_i32_1 = arith.constant 0 : i32
    return %c0_i32, %c0_i32_0 : i32, i32
  }
  func.func @transform_35(%arg0: i32) -> (i32, i32) {
    %c0_i32 = arith.constant 0 : i32
    %c0_i32_0 = arith.constant 0 : i32
    %c0_i32_1 = arith.constant 0 : i32
    return %c0_i32, %c0_i32_0 : i32, i32
  }
  func.func @transform_36(%arg0: i32) -> (i32, i32) {
    %c0_i32 = arith.constant 0 : i32
    %c0_i32_0 = arith.constant 0 : i32
    %c0_i32_1 = arith.constant 0 : i32
    return %c0_i32, %c0_i32_0 : i32, i32
  }
  func.func @transform_37(%arg0: i32) -> (i32, i32) {
    %c0_i32 = arith.constant 0 : i32
    %c0_i32_0 = arith.constant 0 : i32
    %c0_i32_1 = arith.constant 0 : i32
    return %c0_i32, %c0_i32_0 : i32, i32
  }
  func.func @transform_38(%arg0: i32) -> (i32, i32) {
    %c0_i32 = arith.constant 0 : i32
    %c0_i32_0 = arith.constant 0 : i32
    %c0_i32_1 = arith.constant 0 : i32
    return %c0_i32, %c0_i32_0 : i32, i32
  }
  func.func @transform_39(%arg0: i32) -> (i32, i32) {
    %c0_i32 = arith.constant 0 : i32
    %c0_i32_0 = arith.constant 0 : i32
    %c0_i32_1 = arith.constant 0 : i32
    return %c0_i32, %c0_i32_0 : i32, i32
  }
  func.func @transform_40(%arg0: i32) -> (i32, i32) {
    %c0_i32 = arith.constant 0 : i32
    %c0_i32_0 = arith.constant 0 : i32
    %c0_i32_1 = arith.constant 0 : i32
    return %c0_i32, %c0_i32_0 : i32, i32
  }
  func.func @transform_41(%arg0: i32) -> (i32, i32) {
    %c0_i32 = arith.constant 0 : i32
    %c0_i32_0 = arith.constant 0 : i32
    %c0_i32_1 = arith.constant 0 : i32
    return %c0_i32, %c0_i32_0 : i32, i32
  }
  func.func @transform_42(%arg0: i32) -> (i32, i32) {
    %c0_i32 = arith.constant 0 : i32
    %c0_i32_0 = arith.constant 0 : i32
    %c0_i32_1 = arith.constant 0 : i32
    return %c0_i32, %c0_i32_0 : i32, i32
  }
  func.func @transform_43(%arg0: i32) -> (i32, i32) {
    %c0_i32 = arith.constant 0 : i32
    %c0_i32_0 = arith.constant 0 : i32
    %c0_i32_1 = arith.constant 0 : i32
    return %c0_i32, %c0_i32_0 : i32, i32
  }
  func.func @transform_44(%arg0: i32) -> (i32, i32) {
    %c0_i32 = arith.constant 0 : i32
    %c0_i32_0 = arith.constant 0 : i32
    %c0_i32_1 = arith.constant 0 : i32
    return %c0_i32, %c0_i32_0 : i32, i32
  }
  func.func @transform_45(%arg0: i32) -> (i32, i32, i32) {
    %c0_i32 = arith.constant 0 : i32
    %c0_i32_0 = arith.constant 0 : i32
    %c0_i32_1 = arith.constant 0 : i32
    return %arg0, %c0_i32, %c0_i32_0 : i32, i32, i32
  }
}

</mosaic_0001>

<bundles_post_ra>
// kernel: basic_spatial_transformer.1
= control target key start
LH: loop header
LB: loop body
LE: loop exit
PB: predicated region body
PF: predicated region fallthrough
CT: control target
= control target key end

     0   :  { %s7147_s6 = smov 1   ;;  %s7148_s10 = smov 2   ;;  %s8441_s0 = inlined_call_operand.smem [shape: u32[46], index: -1, kind: input, shape index: {}] }
   0x1   :  { %s7207_s5 = sld [smem:[%s8441_s0]]   ;;  %s7149_s14 = smov 3  }
   0x2   :  { %s7212_s9 = sld [smem:[%s8441_s0 + %s7147_s6]]   ;;  %s7150_s18 = smov 4  }
   0x3   :  { %s7217_s13 = sld [smem:[%s8441_s0 + %s7148_s10]]   ;;  %s7151_s22 = smov 5  }
   0x4   :  { %s7222_s17 = sld [smem:[%s8441_s0 + %s7149_s14]]   ;;  %s7152_s26 = smov 6  }
   0x5   :  { %s7227_s21 = sld [smem:[%s8441_s0 + %s7150_s18]]   ;;  %s7153_s30 = smov 7  }
   0x6   :  { %s7232_s25 = sld [smem:[%s8441_s0 + %s7151_s22]]   ;;  %s7154_s4 = smov 8  }
   0x7   :  { %s7237_s29 = sld [smem:[%s8441_s0 + %s7152_s26]]   ;;  %s7155_s10 = smov 9  }
   0x8   :  { %8452 = sst [smem:[#allocation9_spill]] %s7212_s9  ;;  %s7156_s15 = smov 10  }
   0x9   :  { %8453 = sst [smem:[#allocation10_spill]] %s7217_s13  ;;  %s7157_s20 = smov 11  }
   0xa   :  { %s7242_s3 = sld [smem:[%s8441_s0 + %s7153_s30]]   ;;  %s7158_s26 = smov 12  }
   0xb   :  { %s7247_s8 = sld [smem:[%s8441_s0 + %s7154_s4]]   ;;  %s7159_s1 = smov 13  }
   0xc   :  { %s7252_s14 = sld [smem:[%s8441_s0 + %s7155_s10]]   ;;  %s7160_s7 = smov 14  }
   0xd   :  { %s7257_s19 = sld [smem:[%s8441_s0 + %s7156_s15]]   ;;  %s7161_s15 = smov 15  }
   0xe   :  { %s7262_s24 = sld [smem:[%s8441_s0 + %s7157_s20]]   ;;  %s7162_s22 = smov 16  }
   0xf   :  { %s7267_s30 = sld [smem:[%s8441_s0 + %s7158_s26]]   ;;  %s7163_s28 = smov 17  }
  0x10   :  { %s7272_s6 = sld [smem:[%s8441_s0 + %s7159_s1]]  }
  0x11   :  { %s7277_s12 = sld [smem:[%s8441_s0 + %s7160_s7]]   ;;  %s7164_s7 = smov 18  }
  0x12   :  { %s7282_s20 = sld [smem:[%s8441_s0 + %s7161_s15]]   ;;  %s7165_s15 = smov 19  }
  0x13   :  { %s7287_s27 = sld [smem:[%s8441_s0 + %s7162_s22]]   ;;  %s7166_s22 = smov 20  }
  0x14   :  { %s7292_s4 = sld [smem:[%s8441_s0 + %s7163_s28]]   ;;  %s7167_s28 = smov 21  }
  0x15   :  { %s7297_s13 = sld [smem:[%s8441_s0 + %s7164_s7]]   ;;  %s7168_s7 = smov 22  }
  0x16   :  { %s7302_s9 = sld [smem:[%s8441_s0 + %s7165_s15]]   ;;  %s7169_s15 = smov 23  }
  0x17   :  { %8454 = sst [smem:[#allocation11_spill]] %s7277_s12 }
  0x19   :  { %8455 = sst [smem:[#allocation12_spill]] %s7287_s27 }
  0x1a   :  { %8456 = sst [smem:[#allocation13_spill]] %s7292_s4 }
  0x1b   :  { %8457 = sst [smem:[#allocation14_spill]] %s7297_s13 }
  0x1c   :  { %8458 = sst [smem:[#allocation15_spill]] %s7302_s9 }
  0x1d   :  { %s7307_s27 = sld [smem:[%s8441_s0 + %s7166_s22]]   ;;  %s7170_s22 = smov 24  }
  0x1e   :  { %s7312_s4 = sld [smem:[%s8441_s0 + %s7167_s28]]   ;;  %s7171_s28 = smov 25  }
  0x1f   :  { %s7317_s13 = sld [smem:[%s8441_s0 + %s7168_s7]]   ;;  %s7172_s7 = smov 26  }
  0x20   :  { %s7322_s9 = sld [smem:[%s8441_s0 + %s7169_s15]]   ;;  %s7173_s15 = smov 27  }
  0x23   :  { %8459 = sst [smem:[#allocation16_spill]] %s7307_s27 }
  0x24   :  { %8460 = sst [smem:[#allocation17_spill]] %s7312_s4 }
  0x25   :  { %8461 = sst [smem:[#allocation18_spill]] %s7317_s13 }
  0x26   :  { %8462 = sst [smem:[#allocation19_spill]] %s7322_s9 }
  0x27   :  { %s7327_s27 = sld [smem:[%s8441_s0 + %s7170_s22]]   ;;  %s7174_s22 = smov 28  }
  0x28   :  { %s7332_s4 = sld [smem:[%s8441_s0 + %s7171_s28]]   ;;  %s7175_s28 = smov 29  }
  0x29   :  { %s7337_s13 = sld [smem:[%s8441_s0 + %s7172_s7]]   ;;  %s7176_s7 = smov 30  }
  0x2a   :  { %s7342_s9 = sld [smem:[%s8441_s0 + %s7173_s15]]   ;;  %s7177_s15 = smov 31  }
  0x2d   :  { %8463 = sst [smem:[#allocation20_spill]] %s7327_s27 }
  0x2e   :  { %8464 = sst [smem:[#allocation21_spill]] %s7332_s4 }
  0x2f   :  { %8465 = sst [smem:[#allocation22_spill]] %s7337_s13 }
  0x30   :  { %8466 = sst [smem:[#allocation23_spill]] %s7342_s9 }
  0x31   :  { %s7347_s27 = sld [smem:[%s8441_s0 + %s7174_s22]]   ;;  %s7178_s22 = smov 32  }
  0x32   :  { %s7352_s4 = sld [smem:[%s8441_s0 + %s7175_s28]]   ;;  %s7179_s28 = smov 33  }
  0x33   :  { %s7357_s13 = sld [smem:[%s8441_s0 + %s7176_s7]]   ;;  %s7180_s7 = smov 34  }
  0x34   :  { %s7362_s9 = sld [smem:[%s8441_s0 + %s7177_s15]]   ;;  %s7181_s15 = smov 35  }
  0x37   :  { %8467 = sst [smem:[#allocation24_spill]] %s7347_s27 }
  0x38   :  { %8468 = sst [smem:[#allocation25_spill]] %s7352_s4 }
  0x39   :  { %8469 = sst [smem:[#allocation26_spill]] %s7357_s13 }
  0x3a   :  { %8470 = sst [smem:[#allocation27_spill]] %s7362_s9 }
  0x3b   :  { %s7367_s27 = sld [smem:[%s8441_s0 + %s7178_s22]]   ;;  %s7182_s22 = smov 36  }
  0x3c   :  { %s7372_s4 = sld [smem:[%s8441_s0 + %s7179_s28]]   ;;  %s7183_s28 = smov 37  }
  0x3d   :  { %s7377_s13 = sld [smem:[%s8441_s0 + %s7180_s7]]   ;;  %s7184_s7 = smov 38  }
  0x3e   :  { %s7382_s9 = sld [smem:[%s8441_s0 + %s7181_s15]]   ;;  %s7185_s15 = smov 39  }
  0x41   :  { %8471 = sst [smem:[#allocation28_spill]] %s7367_s27 }
  0x42   :  { %8472 = sst [smem:[#allocation29_spill]] %s7372_s4 }
  0x43   :  { %8473 = sst [smem:[#allocation30_spill]] %s7377_s13 }
  0x44   :  { %8474 = sst [smem:[#allocation31_spill]] %s7382_s9 }
  0x45   :  { %s7387_s27 = sld [smem:[%s8441_s0 + %s7182_s22]]   ;;  %s7186_s22 = smov 40  }
  0x46   :  { %s7392_s4 = sld [smem:[%s8441_s0 + %s7183_s28]]   ;;  %s7187_s28 = smov 41  }
  0x47   :  { %s7397_s13 = sld [smem:[%s8441_s0 + %s7184_s7]]   ;;  %s7188_s7 = smov 42  }
  0x48   :  { %s7402_s9 = sld [smem:[%s8441_s0 + %s7185_s15]]   ;;  %s7189_s15 = smov 43  }
  0x4b   :  { %8475 = sst [smem:[#allocation32_spill]] %s7387_s27 }
  0x4c   :  { %8476 = sst [smem:[#allocation33_spill]] %s7392_s4 }
  0x4d   :  { %8477 = sst [smem:[#allocation34_spill]] %s7397_s13 }
  0x4e   :  { %8478 = sst [smem:[#allocation35_spill]] %s7402_s9 }
  0x4f   :  { %s7407_s27 = sld [smem:[%s8441_s0 + %s7186_s22]]   ;;  %s7190_s22 = smov 44  }
  0x50   :  { %s7412_s4 = sld [smem:[%s8441_s0 + %s7187_s28]]   ;;  %s7191_s28 = smov 45  }
  0x51   :  { %s7417_s13 = sld [smem:[%s8441_s0 + %s7188_s7]]  }
  0x52   :  { %s7422_s9 = sld [smem:[%s8441_s0 + %s7189_s15]]  }
  0x53   :  { %s7427_s12 = sld [smem:[%s8441_s0 + %s7190_s22]]  }
  0x56   :  { %8479 = sst [smem:[#allocation36_spill]] %s7412_s4 }
  0x57   :  { %s7432_s4 = sld [smem:[%s8441_s0 + %s7191_s28]]  }
  0x58   :  { %96 = vsyncpa [#allocation3], 0 }
  0x59   :  { %97 = vsyncpa [#allocation5], 0  ;;  %s7434_s7 = smov 0  }
  0x5a LB: > { %s7440_s10 = sadd.s32 4294967295, %s7145_s7   ;;  %p5954_p0 = scmp.ge.s32.totalorder %s7145_s7, 1  ;;  %s7145_s7 = sphi %s7434_s7, %s103_s7  }
  0x5b   : > { %p1094_p1 = scmp.lt.s32.totalorder %s7145_s7, 3  ;;  %p8449_p2 = scmp.eq.s32.totalorder %s7440_s10, 0 }
  0x5c   : > { %s7192_s11 = smov [#allocation4]   ;;  %s7193_s16 = smov [#allocation2]  }
  0x5d   : > { %p7445_p3 = pnand %p5954_p0, %p1094_p1  ;;  %s1232_s15 = sshll.u32 %s7192_s11, 4  ;;  %s1233_s15 = int_to_ptr.vmem [resolvable:$true] %s1232_s15 }
  0x5e   : > { %s1218_s18 = sshll.u32 %s7193_s16, 4  ;;  %s7194_s22 = smov [#allocation6]   ;;  %s1219_s18 = int_to_ptr.vmem [resolvable:$true] %s1218_s18 }
  0x5f   : > { %s8480_s0 = scalar_select %p7445_p3, 1, 0 }
  0x60   : > { %p6725_p4 = pneg %p7445_p3  ;;  %s1246_s23 = sshll.u32 %s7194_s22, 4  ;;  %s7457_s23 = int_to_ptr.vmem [resolvable:$true] %s1246_s23 }
  0x61   : > { %s7064_s28 = scalar_lea.vmem %s1233_s15, 16  ;;  %s7071_s1 = scalar_lea.vmem %s1233_s15, 32 }
  0x62   : > { %p7453_p5 = pnand %p8449_p2, %p6725_p4  ;;  %p7065_p7 = scmp.ne.s32.totalorder %s1233_s15, %s7064_s28 }
  0x63   : > { %p7072_p10 = scmp.lt.s32.totalorder %s1233_s15, %s1233_s15  ;;  %p7073_p11 = scmp.lt.s32.totalorder %s7071_s1, %s7064_s28 }
  0x64   : > { %p7055_p6 = pneg %p7453_p5 }
  0x65   : > { %p7074_p12 = por %p7073_p11, %p7072_p10 }
  0x66   : > { %p7067_p8 = pnand %p7065_p7, %p7055_p6 }
  0x68   : > { %p7068_p9 = pneg %p7067_p8 }
  0x6a   : > { %p7075_p13 = pnand %p7074_p12, %p7068_p9 }
  0x6c   : > { %7078 = shalt.err (!%p7075_p13)
}
  0x6d   : > { %6731 = dma.hbm_to_vmem [thread:$0]  (!%p7453_p5), %s7417_s13, 16, %s1233_s15, [#allocation5]  }
  0x6e   : > { %s7090_s2 = scalar_lea.vmem %s1219_s18, 16  ;;  %s7097_s11 = scalar_lea.vmem %s1219_s18, 32 }
  0x6f   : > { %p7091_p0 = scmp.ne.s32.totalorder %s1219_s18, %s7090_s2  ;;  %p7098_p7 = scmp.lt.s32.totalorder %s1219_s18, %s1219_s18 }
  0x70   : > { %p7099_p8 = scmp.lt.s32.totalorder %s7097_s11, %s7090_s2 }
  0x71   : > { %p7093_p1 = pnand %p7091_p0, %p7055_p6 }
  0x72   : > { %p7100_p2 = por %p7099_p8, %p7098_p7 }
  0x73   : > { %p7094_p4 = pneg %p7093_p1 }
  0x75   : > { %p7101_p3 = pnand %p7100_p2, %p7094_p4 }
  0x77   : > { %7104 = shalt.err (!%p7101_p3)
}
  0x78   : > { %6728 = dma.hbm_to_vmem [thread:$0]  (!%p7453_p5), %s7407_s27, 16, %s1219_s18, [#allocation3]  }
  0x79   : > { %s7116_s15 = scalar_lea.vmem %s7457_s23, 16  ;;  %s7123_s16 = scalar_lea.vmem %s7457_s23, 32 }
  0x7a   : > { %p7117_p9 = scmp.ne.s32.totalorder %s7457_s23, %s7116_s15  ;;  %p7124_p12 = scmp.lt.s32.totalorder %s7457_s23, %s7457_s23 }
  0x7b   : > { %p7125_p2 = scmp.lt.s32.totalorder %s7123_s16, %s7116_s15 }
  0x7c   : > { %p7119_p10 = pnand %p7117_p9, %p7055_p6 }
  0x7d   : > { %p7126_p3 = por %p7125_p2, %p7124_p12 }
  0x7e   : > { %p7120_p11 = pneg %p7119_p10 }
  0x80   : > { %p7127_p13 = pnand %p7126_p3, %p7120_p11 }
  0x82   : > { %7130 = shalt.err (!%p7127_p13)
}
  0x83   : > { %6734 = dma.hbm_to_vmem [thread:$0]  (!%p7453_p5), %s7427_s12, 16, %s7457_s23, [#allocation5]  }
  0x84   : > { %p8482_p0 = scmp.ne.s32.totalorder %s8480_s0, 0 }
  0x85   : > { %p8483_p1 = scmp.eq.s32.totalorder (!%p8482_p0), %s7440_s10, 0 }
  0x86   : > { %1280 = sbr.rel (%p8482_p0) target bundleno = 8620 (0x21ac), region = 200 }
  0x8b   : > { %7136 = dma.done.wait (%p8483_p1), [#allocation3], 16   ;;  %p8484_p6 = pmov %p8483_p1 }
  0x8c   : > { %p8485_p4 = pmov %p8483_p1 }
  0x8d   : > { %7138 = vsyncadd (%p8484_p6), [#allocation3], 4294967280 }
  0x8e   : > { %7140 = dma.done.wait (%p8485_p4), [#allocation5], 32   ;;  %p8486_p7 = pmov %p8483_p1 }
  0x8f   : > { %p1403_p5 = scmp.lt.s32.totalorder %s7440_s10, 1  ;;  %v7195_v0 = vmov 0.0   ;;  %vm7196_vm0 = vmmov 0   ;;  %vm1441_vm1 = vcmask 261120   ;;  %v7510_v1 = vld [vmem:[%s7222_s17 + $0x18] sm:$0xff]  ;;  %v7513_v2 = vld [vmem:[%s7222_s17 + $0x10] sm:$0xff] }
  0x90   : > { %7142 = vsyncadd (%p8486_p7), [#allocation5], 4294967264  ;;  %6321 = vmatprep.subr.mxu0 %v7195_v0  ;;  %6329 = vmatprep.mubr.msk.f32.mxu0 %vm7196_vm0, %v7195_v0  ;;  %v7517_v3 = vld [vmem:[%s7222_s17 + $0x8] sm:$0xff]  ;;  %v7553_v20 = vld [vmem:[%s7222_s17] sm:$0xff]  ;;  %vm1492_vm2 = vcmask 1040384   ;;  %vm1568_vm3 = vcmask 64512  }
  0x91   : > { %s8517_s10 = smov (!%p1403_p5, %s7440_s10), 1  ;;  %6332 = vmatprep.subr.mxu1 %v7195_v0  ;;  %6334 = vmatprep.mubr.msk.f32.mxu1 %vm7196_vm0, %v7195_v0  ;;  %s7197_s22 = smov 96   ;;  %vm1919_vm4 = vcmask 523264   ;;  %vm3176_vm5 = vcmask 130048   ;;  %vm3434_vm6 = vcmask 1043456  }
  0x92   : > { %s8451_s0 = sshll.u32 %s8517_s10, 6  ;;  %6322 = vmatpush3.msra.mxu0 %v7510_v1  ;;  %s7198_s23 = smov 64  }
  0x93   : > { %s1407_s18 = scalar_lea.vmem %s7207_s5, %s8451_s0  ;;  %6323 = vmatprep.subr.mxu0 %v7195_v0  ;;  %s8487_s26 = sld [smem:[#allocation11_spill]] }
  0x94   : > { %v7519_v4 = vld [vmem:[%s1407_s18] sm:$0xff]  ;;  %v7521_v5 = vld [vmem:[%s1407_s18 + $0x8] sm:$0xff]  ;;  %v7524_v6 = vld [vmem:[%s1407_s18 + $0x10] sm:$0xff]  ;;  %6324 = vmatpush3.msra.mxu0 %v7513_v2  ;;  %s8488_s28 = sld [smem:[#allocation12_spill]]  ;;  %s5965_s15 = sshll.u32 %s8517_s10, 3 }
  0x95   : > { %v7526_v7 = vld [vmem:[%s1407_s18 + $0x18] sm:$0xff]  ;;  %v7528_v8 = vld [vmem:[%s1407_s18 + $0x20] sm:$0xff]  ;;  %v1442_v9 = vsel %vm1441_vm1, %v7519_v4, 0.0  ;;  %v1443_v10 = vsel %vm1441_vm1, %v7521_v5, 0.0  ;;  %v1463_v11 = vmul.f32 %v7519_v4, %v7519_v4  ;;  %v1464_v12 = vmul.f32 %v7521_v5, %v7521_v5  ;;  %v7539_v13 = vld [vmem:[%s1407_s18 + $0x28] sm:$0xff]  ;;  %6325 = vmatprep.subr.mxu0 %v7195_v0  ;;  %s8489_s1 = sld [smem:[#allocation17_spill]] }
  0x96   : > { %v7541_v14 = vld [vmem:[%s1407_s18 + $0x30] sm:$0xff]  ;;  %v7543_v15 = vld [vmem:[%s1407_s18 + $0x38] sm:$0xff]  ;;  %v1444_v16 = vadd.f32 %v1443_v10, %v1442_v9  ;;  %v1445_v17 = vsel %vm1441_vm1, %v7524_v6, 0.0  ;;  %v1447_v18 = vsel %vm1441_vm1, %v7526_v7, 0.0  ;;  %v1449_v19 = vsel %vm1441_vm1, %v7528_v8, 0.0  ;;  %6326 = vmatpush3.msra.mxu0 %v7517_v3  ;;  %v7587_v9 = vld [vmem:[%s7227_s21] sm:$0xff] }
  0x97   : > { %v1451_v21 = vsel %vm1441_vm1, %v7539_v13, 0.0  ;;  %v1453_v22 = vsel %vm1441_vm1, %v7541_v14, 0.0  ;;  %v1455_v23 = vsel %vm1441_vm1, %v7543_v15, 0.0  ;;  %v1465_v24 = vmul.f32 %v7524_v6, %v7524_v6  ;;  %6327 = vmatprep.subr.mxu0 %v7195_v0  ;;  %6333 = vmatpush3.msra.mxu1 %v7587_v9  ;;  %s8490_s2 = sld [smem:[#allocation15_spill]] }
  0x98   : > { %v1446_v25 = vadd.f32 %v1445_v17, %v1444_v16  ;;  %v1466_v26 = vmul.f32 %v7526_v7, %v7526_v7  ;;  %v1467_v27 = vmul.f32 %v7528_v8, %v7528_v8  ;;  %v1468_v28 = vmul.f32 %v7539_v13, %v7539_v13  ;;  %6328 = vmatpush3.msra.mxu0 %v7553_v20  ;;  %v6801_v16 = vld [vmem:[%s7242_s3 + $0x8] sm:$0xff]   ;;  %v6802_v17 = vld [vmem:[%s7242_s3] sm:$0xff]   ;;  %s8491_s11 = sld [smem:[#allocation9_spill]] }
  0x99   : > { %v1469_v29 = vmul.f32 %v7541_v14, %v7541_v14  ;;  %v1470_v30 = vmul.f32 %v7543_v15, %v7543_v15  ;;  %v1471_v31 = vsel %vm1441_vm1, %v1463_v11, 0.0  ;;  %v1472_v32 = vsel %vm1441_vm1, %v1464_v12, 0.0  ;;  %6337 = vmatprep.subr.bf16.mxu1 %v6801_v16  ;;  %s8492_s18 = sld [smem:[#allocation13_spill]] }
  0x9a   : > { %v1448_v33 = vadd.f32 %v1447_v18, %v1446_v25  ;;  %v1473_v34 = vadd.f32 %v1472_v32, %v1471_v31  ;;  %v1474_v35 = vsel %vm1441_vm1, %v1465_v24, 0.0  ;;  %v1476_v36 = vsel %vm1441_vm1, %v1466_v26, 0.0  ;;  %s8514_s0 = sld [smem:[#allocation36_spill]] }
  0x9b   : > { %v1478_v37 = vsel %vm1441_vm1, %v1467_v27, 0.0  ;;  %v1480_v38 = vsel %vm1441_vm1, %v1468_v28, 0.0  ;;  %v1482_v39 = vsel %vm1441_vm1, %v1469_v29, 0.0  ;;  %v1484_v40 = vsel %vm1441_vm1, %v1470_v30, 0.0 }
  0x9c   : > { %v1450_v41 = vadd.f32 %v1449_v19, %v1448_v33  ;;  %v1475_v42 = vadd.f32 %v1474_v35, %v1473_v34  ;;  %v1650_v25 = vlaneseq }
  0x9e   : > { %v1452_v43 = vadd.f32 %v1451_v21, %v1450_v41  ;;  %v1477_v44 = vadd.f32 %v1476_v36, %v1475_v42  ;;  %v1651_v27 = vshrl.u32 %v1650_v25, 7  ;;  %s1411_s16 = scalar_lea.vmem %s8491_s11, %s5965_s15  ;;  %s8496_s11 = sld [smem:[#allocation10_spill]] }
  0xa0   : > { %v1454_v45 = vadd.f32 %v1453_v22, %v1452_v43  ;;  %v1479_v46 = vadd.f32 %v1478_v37, %v1477_v44  ;;  %v7593_v28 = vsub.s32 0, %v1651_v27  ;;  %v7596_v30 = vsub.s32 1, %v1651_v27  ;;  %v5971_v37 = vld [vmem:[%s7232_s25] ss:$0 sm:$0xff] }
  0xa1   : > { %v5972_v44 = vld [vmem:[%s7237_s29] ss:$0 sm:$0xff] }
  0xa2   : > { %v1456_v47 = vadd.f32 %v1455_v23, %v1454_v45  ;;  %v1481_v48 = vadd.f32 %v1480_v38, %v1479_v46 }
  0xa4   : > { %v1457_v49 = vrot.slane %v1456_v47, 4  ;;  %v1483_v50 = vadd.f32 %v1482_v39, %v1481_v48  ;;  %s1414_s15 = scalar_lea.vmem %s8496_s11, %s8517_s10  ;;  %s8502_s11 = sld [smem:[#allocation24_spill]] }
  0xa6   : > { %v1458_v51 = vadd.f32 %v1457_v49, %v1456_v47  ;;  %v1485_v52 = vadd.f32 %v1484_v40, %v1483_v50 }
  0xa8   : > { %v1459_v53 = vrot.slane %v1458_v51, 2  ;;  %v1486_v54 = vrot.slane %v1485_v52, 4 }
  0xaa   : > { %v1460_v55 = vadd.f32 %v1459_v53, %v1458_v51  ;;  %v1487_v56 = vadd.f32 %v1486_v54, %v1485_v52 }
  0xac   : > { %v1461_v57 = vrot.slane %v1460_v55, 1  ;;  %v1488_v58 = vrot.slane %v1487_v56, 2 }
  0xae   : > { %v1489_v59 = vadd.f32 %v1488_v58, %v1487_v56  ;;  %v1462_v60 = vadd.f32 %v1461_v57, %v1460_v55 }
  0xb0   : > { %v1490_v61 = vrot.slane %v1489_v59, 1 }
  0xb2   : > { %v1491_v62 = vadd.f32 %v1490_v61, %v1489_v59 }
  0xb4   : > { %v1493_v63 = vsel %vm1492_vm2, %v1462_v60, %v1491_v62 }
  0xb5   : > { %6330 = vmatmul.mubr.msk.f32.vlgmr.msra.gmra.mxu0 %vm1441_vm1, %v1493_v63 }
 0x175   : > { %v1563_v10 = vpop.f32.mrf.mxu0 }
 0x176   : > { %v1567_v11 = vmul.f32 0.00390625, %v1563_v10 }
 0x177   : > { %v6331_v12 = vpop.f32.mrf.mxu0 }
 0x178   : > { %6335 = vmatmul.mubr.msk.f32.vlgmr.msra.gmra.mxu1 %vm1568_vm3, %v1567_v11 }
 0x179   : > { %6338 = vmatpush3.bf16.msra.mxu1 %v6801_v16 }
 0x17a   : > { %6339 = vmatprep.subr.bf16.mxu1 %v6802_v17 }
 0x17d   : > { %6340 = vmatpush3.bf16.msra.mxu1 %v6802_v17 }
 0x238   : > { %v1638_v18 = vpop.f32.mrf.mxu1 }
 0x239   : > { %v1642_v19 = vmul.f32 %v1638_v18, %v1638_v18  ;;  %v1653_v29 = vrot.slane %v1638_v18, %v7593_v28 }
 0x23a   : > { %v6336_v21 = vpop.f32.mrf.mxu1 }
 0x23b   : > { %v1644_v22 = vrot.slane %v1642_v19, 7  ;;  %v1654_v32 = vsub.f32 %v7519_v4, %v1653_v29  ;;  %v1655_v34 = vsub.f32 %v7521_v5, %v1653_v29  ;;  %v1656_v35 = vsub.f32 %v7524_v6, %v1653_v29 }
 0x23c   : > { %v1657_v36 = vsub.f32 %v7526_v7, %v1653_v29  ;;  %v1658_v38 = vsub.f32 %v7528_v8, %v1653_v29  ;;  %v1659_v39 = vsub.f32 %v7539_v13, %v1653_v29  ;;  %v1660_v47 = vsub.f32 %v7541_v14, %v1653_v29 }
 0x23d   : > { %v1646_v23 = vsub.f32 %v1638_v18, %v1644_v22  ;;  %v1661_v48 = vsub.f32 %v7543_v15, %v1653_v29  ;;  %v5973_v22 = vld [vmem:[%s7247_s8] ss:$0 sm:$0xff] }
 0x23f   : > { %v1647_v24 = vmax.f32 %v1646_v23, 0.0 }
 0x241   : > { %v1648_v26 = vadd.f32 1e-05, %v1647_v24 }
 0x243   : > { %6839 = vrsqrt.f32 %v1648_v26 }
 0x250   : > { %v6840_v31 = vpop.eup %6839 }
 0x251   : > { %v1665_v33 = vrot.slane %v6840_v31, %v7596_v30 }
 0x253   : > { %v1666_v40 = vmul.f32 %v1665_v33, %v1654_v32  ;;  %v1667_v41 = vmul.f32 %v1665_v33, %v1655_v34  ;;  %v1668_v42 = vmul.f32 %v1665_v33, %v1656_v35  ;;  %v1669_v43 = vmul.f32 %v1665_v33, %v1657_v36 }
 0x254   : > { %v1670_v45 = vmul.f32 %v1665_v33, %v1658_v38  ;;  %v1671_v46 = vmul.f32 %v1665_v33, %v1659_v39  ;;  %v1672_v55 = vmul.f32 %v1665_v33, %v1660_v47  ;;  %v1673_v56 = vmul.f32 %v1665_v33, %v1661_v48 }
 0x255   : > { %v1680_v49 = vmul.f32 %v5971_v37, %v1666_v40  ;;  %v1681_v50 = vmul.f32 %v5971_v37, %v1667_v41  ;;  %v1682_v51 = vmul.f32 %v5971_v37, %v1668_v42  ;;  %v1683_v52 = vmul.f32 %v5971_v37, %v1669_v43 }
 0x256   : > { %v1684_v53 = vmul.f32 %v5971_v37, %v1670_v45  ;;  %v1685_v54 = vmul.f32 %v5971_v37, %v1671_v46  ;;  %v1686_v11 = vmul.f32 %v5971_v37, %v1672_v55  ;;  %v1687_v12 = vmul.f32 %v5971_v37, %v1673_v56 }
 0x257   : > { %v1694_v57 = vadd.f32 %v5972_v44, %v1680_v49  ;;  %v1695_v58 = vadd.f32 %v5972_v44, %v1681_v50  ;;  %v1696_v59 = vadd.f32 %v5972_v44, %v1682_v51  ;;  %v1697_v60 = vadd.f32 %v5972_v44, %v1683_v52 }
 0x258   : > { %v1698_v61 = vadd.f32 %v5972_v44, %v1684_v53  ;;  %v1699_v62 = vadd.f32 %v5972_v44, %v1685_v54  ;;  %v1700_v17 = vadd.f32 %v5972_v44, %v1686_v11  ;;  %v1701_v18 = vadd.f32 %v5972_v44, %v1687_v12 }
 0x259   : > { %v1702_v63 = vpack.c.bf16 %v1695_v58, %v1694_v57  ;;  %v1703_v10 = vpack.c.bf16 %v1697_v60, %v1696_v59 }
 0x25a   : > { %v1704_v16 = vpack.c.bf16 %v1699_v62, %v1698_v61  ;;  %v1705_v19 = vpack.c.bf16 %v1701_v18, %v1700_v17 }
 0x25b   : > { %6341 = vmatprep.mubr.msk.bf16.mxu1 %vm1441_vm1, %v1702_v63 }
 0x25c   : > { %6342 = vmatmul.mubr.msk.bf16.vlgmr.msra.gmra.mxu1 %vm1441_vm1, %v1703_v10 }
 0x25d   : > { %6345 = vmatprep.mubr.msk.bf16.mxu1 %vm1441_vm1, %v1704_v16 }
 0x264   : > { %6346 = vmatmul.mubr.msk.bf16.gmra.mxu1 %vm1441_vm1, %v1705_v19 }
 0x31c   : > { %v6343_v21 = vpop.f32.mrf.mxu1 }
 0x31d   : > { %v1784_v25 = vadd.f32 %v6343_v21, %v5973_v22 }
 0x31e   : > { %v1775_v23 = vpop.f32.mrf.mxu1 }
 0x31f   : > { %v1776_v29 = vadd.f32 %v5973_v22, %v1775_v23 }
 0x320   : > { %v6344_v24 = vpop.f32.mrf.mxu1 }
 0x321   : > { %v1787_v26 = vadd.f32 %v6344_v24, %v5973_v22 }
 0x322   : > { %v1778_v27 = vpop.f32.mrf.mxu1 }
 0x323   : > { %v7614_v31 = vpack.c.bf16 %v1787_v26, %v1784_v25  ;;  %v1779_v32 = vadd.f32 %v5973_v22, %v1778_v27 }
 0x324   : > { %v6347_v33 = vpop.f32.mrf.mxu1 }
 0x325   : > { %v7616_v34 = vpack.c.bf16 %v1779_v32, %v1776_v29  ;;  %1816 = vrot.lane.b32.xlu1 %v7614_v31, %s7197_s22  ;;  %v1800_v37 = vadd.f32 %v6347_v33, %v5973_v22 }
 0x326   : > { %v1791_v35 = vpop.f32.mrf.mxu1 }
 0x327   : > { %6357 = vmatprep.mubr.msk.bf16.mxu0 %vm1441_vm1, %v7616_v34  ;;  %v1792_v42 = vadd.f32 %v5973_v22, %v1791_v35 }
 0x328   : > { %v6348_v36 = vpop.f32.mrf.mxu1 }
 0x329   : > { %v1803_v38 = vadd.f32 %v6348_v36, %v5973_v22  ;;  %1814 = vrot.lane.b32.xlu1 %v7616_v34, %s7197_s22 }
 0x32a   : > { %v1794_v39 = vpop.f32.mrf.mxu1 }
 0x32b   : > { %v7624_v40 = vpack.c.bf16 %v1803_v38, %v1800_v37  ;;  %v1795_v41 = vadd.f32 %v5973_v22, %v1794_v39 }
 0x32d   : > { %1820 = vrot.lane.b32.xlu0 %v7624_v40, %s7197_s22  ;;  %v7628_v43 = vpack.c.bf16 %v1795_v41, %v1792_v42 }
 0x331   : > { %1818 = vrot.lane.b32.xlu0 %v7628_v43, %s7197_s22 }
 0x397   : > { %v1817_v48 = vpop.permute.xlu1 %1816 }
 0x398   : > { %v1838_v49 = vsel %vm1441_vm1, %v1817_v48, 0 }
 0x39b   : > { %v1815_v50 = vpop.permute.xlu1 %1814 }
 0x39c   : > { %v1835_v51 = vsel %vm1441_vm1, %v1815_v50, 0 }
 0x39f   : > { %v1821_v44 = vpop.permute.xlu0 %1820 }
 0x3a0   : > { %v1844_v45 = vsel %vm1441_vm1, %v1821_v44, 0  ;;  %6701 = vmatprep.subr.msk.bf16.mxu0 %vm1441_vm1, %v1821_v44 }
 0x3a1   : > { %6350 = vmatpush3.bf16.xpose.msra.mxu0 %v1844_v45 }
 0x3a3   : > { %v1819_v46 = vpop.permute.xlu0 %1818 }
 0x3a4   : > { %6702 = vmatprep.subr.msk.bf16.mxu0 %vm1441_vm1, %v1819_v46  ;;  %v1841_v47 = vsel %vm1441_vm1, %v1819_v46, 0 }
 0x3a9   : > { %6352 = vmatpush3.bf16.xpose.msra.mxu0 %v1841_v47 }
 0x3aa   : > { %6703 = vmatprep.subr.msk.bf16.mxu0 %vm1441_vm1, %v1817_v48 }
 0x3b1   : > { %6354 = vmatpush3.bf16.xpose.msra.mxu0 %v1838_v49 }
 0x3b2   : > { %6704 = vmatprep.subr.msk.bf16.mxu0 %vm1441_vm1, %v1815_v50 }
 0x3b9   : > { %6356 = vmatpush3.bf16.xpose.msra.mxu0 %v1835_v51 }
 0x3ba   : > { %6393 = vmatprep.subr.mxu0 %v7195_v0 }
 0x3c0   : > { %6358 = vmatmul.mubr.msk.bf16.vlgmr.msra.gmra.mxu0 %vm1441_vm1, %v7614_v31 }
 0x3c1   : > { %6361 = vmatprep.mubr.msk.bf16.mxu0 %vm1441_vm1, %v7628_v43  ;;  %6394 = vmatpush3.msra.mxu0 %v7510_v1 }
 0x3c2   : > { %6395 = vmatprep.subr.mxu0 %v7195_v0 }
 0x3c3   : > { %6396 = vmatpush3.msra.mxu0 %v7513_v2 }
 0x3c4   : > { %6397 = vmatprep.subr.mxu0 %v7195_v0 }
 0x3c5   : > { %6398 = vmatpush3.msra.mxu0 %v7517_v3 }
 0x3c6   : > { %6399 = vmatprep.subr.mxu0 %v7195_v0 }
 0x3c7   : > { %6400 = vmatpush3.msra.mxu0 %v7553_v20 }
 0x3c8   : > { %6362 = vmatmul.mubr.msk.bf16.gmra.mxu0 %vm1441_vm1, %v7624_v40  ;;  %6404 = vmatprep.subr.mxu0 %v7195_v0 }
 0x3c9   : > { %6401 = vmatprep.mubr.msk.f32.mxu0 %vm7196_vm0, %v7195_v0 }
 0x480   : > { %v6359_v1 = vpop.f32.mrf.mxu0 }
 0x481   : > { %v1913_v54 = vmul.f32 0.17677669, %v6359_v1 }
 0x482   : > { %v1880_v52 = vpop.f32.mrf.mxu0 }
 0x483   : > { %v1911_v53 = vmul.f32 0.17677669, %v1880_v52  ;;  %v1926_v58 = vsel %vm1919_vm4, %v1913_v54, -inf }
 0x484   : > { %v6360_v2 = vpop.f32.mrf.mxu0 }
 0x485   : > { %v1920_v3 = vsel %vm1919_vm4, %v1911_v53, -inf  ;;  %v1914_v57 = vmul.f32 0.17677669, %v6360_v2 }
 0x486   : > { %1921 = vmax.xlane.f32.xlu0 %v1920_v3  ;;  %v1883_v55 = vpop.f32.mrf.mxu0 }
 0x487   : > { %v1912_v56 = vmul.f32 0.17677669, %v1883_v55  ;;  %v1929_v10 = vsel %vm1919_vm4, %v1914_v57, -inf }
 0x488   : > { %v6363_v20 = vpop.f32.mrf.mxu0 }
 0x489   : > { %v1923_v59 = vsel %vm1919_vm4, %v1912_v56, -inf  ;;  %v1917_v63 = vmul.f32 0.17677669, %v6363_v20 }
 0x48a   : > { %1927 = vmax.xlane.f32.xlu0 %v1926_v58  ;;  %1924 = vmax.xlane.f32.xlu1 %v1923_v59  ;;  %v1896_v60 = vpop.f32.mrf.mxu0 }
 0x48b   : > { %v1915_v61 = vmul.f32 0.17677669, %v1896_v60  ;;  %v1938_v18 = vsel %vm1919_vm4, %v1917_v63, -inf }
 0x48c   : > { %v6364_v62 = vpop.f32.mrf.mxu0 }
 0x48d   : > { %v1932_v11 = vsel %vm1919_vm4, %v1915_v61, -inf  ;;  %v1918_v17 = vmul.f32 0.17677669, %v6364_v62 }
 0x48e   : > { %1930 = vmax.xlane.f32.xlu0 %v1929_v10  ;;  %1933 = vmax.xlane.f32.xlu1 %v1932_v11  ;;  %v1899_v12 = vpop.f32.mrf.mxu0 }
 0x48f   : > { %v1916_v16 = vmul.f32 0.17677669, %v1899_v12  ;;  %v1941_v21 = vsel %vm1919_vm4, %v1918_v17, -inf }
 0x491   : > { %v1935_v19 = vsel %vm1919_vm4, %v1916_v16, -inf }
 0x492   : > { %1939 = vmax.xlane.f32.xlu1 %v1938_v18  ;;  %1936 = vmax.xlane.f32.xlu0 %v1935_v19 }
 0x496   : > { %1942 = vmax.xlane.f32.xlu0 %v1941_v21 }
 0x4a3   : > { %2018 = vrot.lane.b32.xlu1 %v7624_v40, %s7198_s23 }
 0x50f   : > { %v1922_v22 = vpop.xlane.xlu0 %1921 }
 0x510   : > { %v1944_v23 = vsub.f32 %v1911_v53, %v1922_v22 }
 0x512   : > { %v1952_v27 = vmul.f32 1.442695, %v1944_v23 }
 0x513   : > { %v1928_v24 = vpop.xlane.xlu0 %1927  ;;  %v1925_v25 = vpop.xlane.xlu1 %1924 }
 0x514   : > { %v1946_v26 = vsub.f32 %v1913_v54, %v1928_v24  ;;  %v1945_v32 = vsub.f32 %v1912_v56, %v1925_v25 }
 0x516   : > { %v1956_v29 = vmul.f32 1.442695, %v1946_v26  ;;  %v1954_v37 = vmul.f32 1.442695, %v1945_v32 }
 0x517   : > { %v1931_v33 = vpop.xlane.xlu0 %1930  ;;  %v1934_v35 = vpop.xlane.xlu1 %1933 }
 0x518   : > { %6841 = vpow2.f32 %v1956_v29  ;;  %v1947_v36 = vsub.f32 %v1914_v57, %v1931_v33  ;;  %v1948_v39 = vsub.f32 %v1915_v61, %v1934_v35 }
 0x519   : > { %6843 = vpow2.f32 %v1952_v27 }
 0x51a   : > { %v1958_v38 = vmul.f32 1.442695, %v1947_v36  ;;  %v1960_v44 = vmul.f32 1.442695, %v1948_v39 }
 0x51b   : > { %v1940_v41 = vpop.xlane.xlu1 %1939  ;;  %v1937_v42 = vpop.xlane.xlu0 %1936 }
 0x51c   : > { %6845 = vpow2.f32 %v1958_v38  ;;  %v1950_v40 = vsub.f32 %v1917_v63, %v1940_v41  ;;  %v1949_v46 = vsub.f32 %v1916_v16, %v1937_v42 }
 0x51d   : > { %6847 = vpow2.f32 %v1954_v37 }
 0x51e   : > { %v1964_v45 = vmul.f32 1.442695, %v1950_v40  ;;  %v1962_v50 = vmul.f32 1.442695, %v1949_v46 }
 0x51f   : > { %v2019_v47 = vpop.permute.xlu1 %2018  ;;  %v1943_v48 = vpop.xlane.xlu0 %1942 }
 0x520   : > { %6849 = vpow2.f32 %v1964_v45  ;;  %v1951_v49 = vsub.f32 %v1918_v17, %v1943_v48  ;;  %6365 = vmatprep.subr.bf16.mxu1 %v2019_v47  ;;  %v6804_v48 = vld [vmem:[%s7252_s14] sm:$0xff]  }
 0x521   : > { %6366 = vmatpush3.bf16.msra.mxu1 %v2019_v47  ;;  %6851 = vpow2.f32 %v1960_v44  ;;  %v6803_v47 = vld [vmem:[%s7252_s14 + $0x8] sm:$0xff]  }
 0x522   : > { %v1966_v51 = vmul.f32 1.442695, %v1951_v49 }
 0x524   : > { %6853 = vpow2.f32 %v1966_v51 }
 0x525   : > { %v6842_v1 = vpop.eup %6841  ;;  %6855 = vpow2.f32 %v1962_v50 }
 0x526   : > { %v1974_v52 = vsel %vm1919_vm4, %v6842_v1, 0.0  ;;  %v6844_v53 = vpop.eup %6843 }
 0x527   : > { %1975 = vadd.xlane.f32.xlu1 %v1974_v52  ;;  %v1968_v54 = vsel %vm1919_vm4, %v6844_v53, 0.0 }
 0x529   : > { %v6846_v2 = vpop.eup %6845 }
 0x52a   : > { %v1977_v3 = vsel %vm1919_vm4, %v6846_v2, 0.0  ;;  %v6848_v55 = vpop.eup %6847 }
 0x52b   : > { %1969 = vadd.xlane.f32.xlu1 %v1968_v54  ;;  %1978 = vadd.xlane.f32.xlu0 %v1977_v3  ;;  %v1971_v57 = vsel %vm1919_vm4, %v6848_v55, 0.0 }
 0x52d   : > { %v7670_v56 = vpop.eup %6849 }
 0x52e   : > { %v1986_v20 = vsel %vm1919_vm4, %v7670_v56, 0.0  ;;  %v6852_v58 = vpop.eup %6851 }
 0x52f   : > { %1987 = vadd.xlane.f32.xlu1 %v1986_v20  ;;  %1972 = vadd.xlane.f32.xlu0 %v1971_v57  ;;  %v1980_v60 = vsel %vm1919_vm4, %v6852_v58, 0.0 }
 0x531   : > { %v6854_v59 = vpop.eup %6853 }
 0x532   : > { %v1989_v61 = vsel %vm1919_vm4, %v6854_v59, 0.0  ;;  %v6856_v62 = vpop.eup %6855 }
 0x533   : > { %1981 = vadd.xlane.f32.xlu1 %v1980_v60  ;;  %1990 = vadd.xlane.f32.xlu0 %v1989_v61  ;;  %v1983_v63 = vsel %vm1919_vm4, %v6856_v62, 0.0  ;;  %v5994_v61 = vld [vmem:[%s7257_s19] ss:$0 sm:$0xff] }
 0x537   : > { %1984 = vadd.xlane.f32.xlu0 %v1983_v63 }
 0x544   : > { %2014 = vrot.lane.b32.xlu1 %v7614_v31, %s7198_s23 }
 0x548   : > { %2012 = vrot.lane.b32.xlu1 %v7616_v34, %s7198_s23 }
 0x54d   : > { %2016 = vrot.lane.b32.xlu0 %v7628_v43, %s7198_s23 }
 0x5b0   : > { %v1976_v10 = vpop.xlane.xlu1 %1975 }
 0x5b4   : > { %v1970_v11 = vpop.xlane.xlu1 %1969  ;;  %v1979_v12 = vpop.xlane.xlu0 %1978 }
 0x5b5   : > { %6857 = vrcp.f32 %v1970_v11 }
 0x5b8   : > { %v1988_v16 = vpop.xlane.xlu1 %1987  ;;  %v1973_v17 = vpop.xlane.xlu0 %1972 }
 0x5b9   : > { %6859 = vrcp.f32 %v1973_v17 }
 0x5ba   : > { %6861 = vrcp.f32 %v1979_v12 }
 0x5bb   : > { %6863 = vrcp.f32 %v1976_v10 }
 0x5bc   : > { %v1982_v18 = vpop.xlane.xlu1 %1981  ;;  %v1991_v19 = vpop.xlane.xlu0 %1990 }
 0x5bd   : > { %6865 = vrcp.f32 %v1982_v18 }
 0x5c0   : > { %v1985_v21 = vpop.xlane.xlu0 %1984  ;;  %v2015_v31 = vpop.permute.xlu1 %2014 }
 0x5c1   : > { %6867 = vrcp.f32 %v1985_v21 }
 0x5c2   : > { %6869 = vrcp.f32 %v1991_v19  ;;  %v6858_v22 = vpop.eup %6857 }
 0x5c3   : > { %6871 = vrcp.f32 %v1988_v16  ;;  %v2000_v24 = vmul.f32 %v6858_v22, %v6844_v53 }
 0x5c4   : > { %v2017_v34 = vpop.permute.xlu0 %2016  ;;  %v2013_v27 = vpop.permute.xlu1 %2012 }
 0x5c5   : > { %6367 = vmatprep.subr.bf16.mxu1 %v2017_v34 }
 0x5c6   : > { %6368 = vmatpush3.bf16.msra.mxu1 %v2017_v34  ;;  %v6860_v43 = vpop.eup %6859 }
 0x5c7   : > { %6369 = vmatprep.subr.bf16.mxu1 %v2015_v31  ;;  %v6862_v23 = vpop.eup %6861  ;;  %v2001_v25 = vmul.f32 %v6860_v43, %v6848_v55 }
 0x5c8   : > { %v6864_v26 = vpop.eup %6863  ;;  %v2003_v32 = vmul.f32 %v6862_v23, %v6846_v2 }
 0x5c9   : > { %v2008_v29 = vpack.c.bf16 %v2001_v25, %v2000_v24  ;;  %v2002_v35 = vmul.f32 %v6864_v26, %v6842_v1 }
 0x5ca   : > { %6370 = vmatpush3.bf16.msra.mxu1 %v2015_v31  ;;  %v6866_v33 = vpop.eup %6865 }
 0x5cb   : > { %6371 = vmatprep.subr.bf16.mxu1 %v2013_v27  ;;  %6373 = vmatprep.mubr.msk.bf16.mxu1 %vm1919_vm4, %v2008_v29  ;;  %v2009_v37 = vpack.c.bf16 %v2003_v32, %v2002_v35  ;;  %v2004_v38 = vmul.f32 %v6866_v33, %v6852_v58 }
 0x5ce   : > { %v6868_v36 = vpop.eup %6867  ;;  %6372 = vmatpush3.bf16.msra.mxu1 %v2013_v27 }
 0x5cf   : > { %v2005_v39 = vmul.f32 %v6868_v36, %v6856_v62  ;;  %v6870_v41 = vpop.eup %6869  ;;  %6381 = vmatprep.subr.bf16.mxu1 %v6803_v47 }
 0x5d0   : > { %v6872_v40 = vpop.eup %6871  ;;  %v2007_v44 = vmul.f32 %v6870_v41, %v6854_v59 }
 0x5d1   : > { %6374 = vmatmul.mubr.msk.bf16.vlgmr.msra.gmra.mxu1 %vm1919_vm4, %v2009_v37  ;;  %v2010_v42 = vpack.c.bf16 %v2005_v39, %v2004_v38  ;;  %v2006_v45 = vmul.f32 %v6872_v40, %v7670_v56 }
 0x5d2   : > { %6382 = vmatpush3.bf16.msra.mxu1 %v6803_v47 }
 0x5d3   : > { %6377 = vmatprep.mubr.msk.bf16.mxu1 %vm1919_vm4, %v2010_v42  ;;  %v2011_v46 = vpack.c.bf16 %v2007_v44, %v2006_v45  ;;  %6383 = vmatprep.subr.bf16.mxu1 %v6804_v48 }
 0x5d6   : > { %6384 = vmatpush3.bf16.msra.mxu1 %v6804_v48 }
 0x5d9   : > { %6378 = vmatmul.mubr.msk.bf16.gmra.mxu1 %vm1919_vm4, %v2011_v46 }
 0x691   : > { %v6375_v49 = vpop.f32.mrf.mxu1 }
 0x693   : > { %v2070_v50 = vpop.f32.mrf.mxu1 }
 0x695   : > { %v6376_v51 = vpop.f32.mrf.mxu1 }
 0x696   : > { %v2102_v53 = vpack.c.bf16 %v6376_v51, %v6375_v49 }
 0x697   : > { %v2073_v1 = vpop.f32.mrf.mxu1 }
 0x698   : > { %v2101_v52 = vpack.c.bf16 %v2073_v1, %v2070_v50 }
 0x699   : > { %v6379_v2 = vpop.f32.mrf.mxu1 }
 0x69a   : > { %6385 = vmatprep.mubr.msk.bf16.mxu1 %vm1441_vm1, %v2101_v52 }
 0x69b   : > { %v2086_v54 = vpop.f32.mrf.mxu1  ;;  %6386 = vmatmul.mubr.msk.bf16.vlgmr.msra.gmra.mxu1 %vm1441_vm1, %v2102_v53 }
 0x69d   : > { %v6380_v3 = vpop.f32.mrf.mxu1 }
 0x69e   : > { %v2104_v20 = vpack.c.bf16 %v6380_v3, %v6379_v2 }
 0x69f   : > { %v2089_v55 = vpop.f32.mrf.mxu1 }
 0x6a0   : > { %v2103_v56 = vpack.c.bf16 %v2089_v55, %v2086_v54 }
 0x6a2   : > { %6389 = vmatprep.mubr.msk.bf16.mxu1 %vm1441_vm1, %v2103_v56 }
 0x6a3   : > { %6390 = vmatmul.mubr.msk.bf16.gmra.mxu1 %vm1441_vm1, %v2104_v20 }
 0x75b   : > { %v6387_v57 = vpop.f32.mrf.mxu1 }
 0x75c   : > { %v2200_v59 = vadd.f32 %v6387_v57, %v7524_v6 }
 0x75d   : > { %v2167_v58 = vpop.f32.mrf.mxu1 }
 0x75e   : > { %v2198_v60 = vadd.f32 %v2167_v58, %v7519_v4  ;;  %v7701_v12 = vadd.f32 %v5994_v61, %v2200_v59 }
 0x75f   : > { %v6388_v62 = vpop.f32.mrf.mxu1 }
 0x760   : > { %v7698_v63 = vadd.f32 %v5994_v61, %v2198_v60  ;;  %v2201_v10 = vadd.f32 %v6388_v62, %v7526_v7  ;;  %v2246_v21 = vmul.f32 %v7701_v12, %v7701_v12  ;;  %v2226_v23 = vsel %vm1441_vm1, %v7701_v12, 0.0 }
 0x761   : > { %v2170_v11 = vpop.f32.mrf.mxu1 }
 0x762   : > { %v2199_v16 = vadd.f32 %v2170_v11, %v7521_v5  ;;  %v2244_v18 = vmul.f32 %v7698_v63, %v7698_v63  ;;  %v7706_v19 = vadd.f32 %v5994_v61, %v2201_v10  ;;  %v2223_v7 = vsel %vm1441_vm1, %v7698_v63, 0.0 }
 0x763   : > { %v6391_v17 = vpop.f32.mrf.mxu1  ;;  %v2255_v33 = vsel %vm1441_vm1, %v2246_v21, 0.0 }
 0x764   : > { %v7708_v6 = vadd.f32 %v5994_v61, %v2199_v16  ;;  %v2204_v22 = vadd.f32 %v6391_v17, %v7541_v14  ;;  %v2247_v26 = vmul.f32 %v7706_v19, %v7706_v19  ;;  %v2228_v36 = vsel %vm1441_vm1, %v7706_v19, 0.0 }
 0x765   : > { %v2183_v4 = vpop.f32.mrf.mxu1 }
 0x766   : > { %v2202_v31 = vadd.f32 %v2183_v4, %v7528_v8  ;;  %v2224_v5 = vsel %vm1441_vm1, %v7708_v6, 0.0  ;;  %v2245_v34 = vmul.f32 %v7708_v6, %v7708_v6  ;;  %v2252_v8 = vsel %vm1441_vm1, %v2244_v18, 0.0 }
 0x767   : > { %v6392_v43 = vpop.f32.mrf.mxu1  ;;  %v2225_v24 = vadd.f32 %v2224_v5, %v2223_v7  ;;  %v7732_v37 = vadd.f32 %v5994_v61, %v2204_v22  ;;  %v2257_v40 = vsel %vm1441_vm1, %v2247_v26, 0.0 }
 0x768   : > { %v7722_v25 = vadd.f32 %v5994_v61, %v2202_v31  ;;  %v2253_v27 = vsel %vm1441_vm1, %v2245_v34, 0.0  ;;  %v2205_v29 = vadd.f32 %v6392_v43, %v7543_v15 }
 0x769   : > { %v2186_v32 = vpop.f32.mrf.mxu1  ;;  %v2227_v14 = vadd.f32 %v2226_v23, %v2225_v24  ;;  %v2254_v35 = vadd.f32 %v2253_v27, %v2252_v8  ;;  %v2250_v48 = vmul.f32 %v7732_v37, %v7732_v37  ;;  %v2234_v52 = vsel %vm1441_vm1, %v7732_v37, 0.0  ;;  %v6805_v23 = vld [vmem:[%s7272_s6 + $0x8] sm:$0xff]   ;;  %v6806_v24 = vld [vmem:[%s7272_s6] sm:$0xff]  }
 0x76a   : > { %v2248_v38 = vmul.f32 %v7722_v25, %v7722_v25  ;;  %v2203_v39 = vadd.f32 %v2186_v32, %v7539_v13  ;;  %v2230_v15 = vsel %vm1441_vm1, %v7722_v25, 0.0  ;;  %v7740_v44 = vadd.f32 %v5994_v61, %v2205_v29 }
 0x76b   : > { %v2256_v41 = vadd.f32 %v2255_v33, %v2254_v35  ;;  %v2229_v42 = vadd.f32 %v2228_v36, %v2227_v14  ;;  %v2263_v55 = vsel %vm1441_vm1, %v2250_v48, 0.0 }
 0x76c   : > { %v7742_v45 = vadd.f32 %v5994_v61, %v2203_v39  ;;  %v2259_v49 = vsel %vm1441_vm1, %v2248_v38, 0.0  ;;  %v2251_v53 = vmul.f32 %v7740_v44, %v7740_v44  ;;  %v2236_v56 = vsel %vm1441_vm1, %v7740_v44, 0.0 }
 0x76d   : > { %v2231_v46 = vadd.f32 %v2230_v15, %v2229_v42  ;;  %v2258_v47 = vadd.f32 %v2257_v40, %v2256_v41  ;;  %v5997_v15 = vld [vmem:[%s7262_s24] ss:$0 sm:$0xff] }
 0x76e   : > { %v2232_v13 = vsel %vm1441_vm1, %v7742_v45, 0.0  ;;  %v2249_v50 = vmul.f32 %v7742_v45, %v7742_v45  ;;  %v2265_v58 = vsel %vm1441_vm1, %v2251_v53, 0.0 }
 0x76f   : > { %v2260_v51 = vadd.f32 %v2259_v49, %v2258_v47  ;;  %v2233_v1 = vadd.f32 %v2232_v13, %v2231_v46 }
 0x770   : > { %v2261_v2 = vsel %vm1441_vm1, %v2249_v50, 0.0 }
 0x771   : > { %v2235_v54 = vadd.f32 %v2234_v52, %v2233_v1  ;;  %v2262_v3 = vadd.f32 %v2261_v2, %v2260_v51  ;;  %v5998_v51 = vld [vmem:[%s7267_s30] ss:$0 sm:$0xff] }
 0x773   : > { %v2237_v20 = vadd.f32 %v2236_v56, %v2235_v54  ;;  %v2264_v57 = vadd.f32 %v2263_v55, %v2262_v3 }
 0x775   : > { %v2238_v59 = vrot.slane %v2237_v20, 4  ;;  %v2266_v60 = vadd.f32 %v2265_v58, %v2264_v57 }
 0x777   : > { %v2239_v61 = vadd.f32 %v2238_v59, %v2237_v20  ;;  %v2267_v62 = vrot.slane %v2266_v60, 4 }
 0x779   : > { %v2240_v10 = vrot.slane %v2239_v61, 2  ;;  %v2268_v11 = vadd.f32 %v2267_v62, %v2266_v60 }
 0x77b   : > { %v2241_v16 = vadd.f32 %v2240_v10, %v2239_v61  ;;  %v2269_v17 = vrot.slane %v2268_v11, 2 }
 0x77d   : > { %v2242_v18 = vrot.slane %v2241_v16, 1  ;;  %v2270_v4 = vadd.f32 %v2269_v17, %v2268_v11 }
 0x77f   : > { %v2271_v21 = vrot.slane %v2270_v4, 1  ;;  %v2243_v31 = vadd.f32 %v2242_v18, %v2241_v16 }
 0x781   : > { %v2272_v7 = vadd.f32 %v2271_v21, %v2270_v4 }
 0x783   : > { %v2273_v5 = vsel %vm1492_vm2, %v2243_v31, %v2272_v7 }
 0x784   : > { %6402 = vmatmul.mubr.msk.f32.vlgmr.msra.gmra.mxu0 %vm1441_vm1, %v2273_v5 }
 0x785   : > { %6405 = vmatpush3.msra.mxu0 %v7587_v9  ;;  %6406 = vmatprep.mubr.msk.f32.mxu0 %vm7196_vm0, %v7195_v0 }
 0x786   : > { %6409 = vmatprep.subr.bf16.mxu0 %v6805_v23 }
 0x844   : > { %v2343_v34 = vpop.f32.mrf.mxu0 }
 0x845   : > { %v2347_v22 = vmul.f32 0.00390625, %v2343_v34 }
 0x846   : > { %v6403_v43 = vpop.f32.mrf.mxu0 }
 0x847   : > { %6407 = vmatmul.mubr.msk.f32.vlgmr.msra.gmra.mxu0 %vm1568_vm3, %v2347_v22  ;;  %v6807_v22 = vld [vmem:[%s7282_s20 + $0x38] sm:$0xff]   ;;  %v6808_v43 = vld [vmem:[%s7282_s20 + $0x30] sm:$0xff]  }
 0x848   : > { %6410 = vmatpush3.bf16.msra.mxu0 %v6805_v23  ;;  %6421 = vmatprep.subr.bf16.mxu1 %v6807_v22  ;;  %v6809_v23 = vld [vmem:[%s7282_s20 + $0x28] sm:$0xff]  }
 0x849   : > { %6411 = vmatprep.subr.bf16.mxu0 %v6806_v24  ;;  %6422 = vmatpush3.bf16.msra.mxu1 %v6807_v22 }
 0x84a   : > { %6423 = vmatprep.subr.bf16.mxu1 %v6808_v43 }
 0x84c   : > { %6412 = vmatpush3.bf16.msra.mxu0 %v6806_v24  ;;  %v6811_v24 = vld [vmem:[%s7282_s20 + $0x18] sm:$0xff]  }
 0x84d   : > { %6456 = vmatprep.subr.mxu0 %v7195_v0  ;;  %6424 = vmatpush3.bf16.msra.mxu1 %v6808_v43 }
 0x84e   : > { %6425 = vmatprep.subr.bf16.mxu1 %v6809_v23 }
 0x851   : > { %6426 = vmatpush3.bf16.msra.mxu1 %v6809_v23 }
 0x907   : > { %v2417_v8 = vpop.f32.mrf.mxu0 }
 0x908   : > { %v2421_v26 = vmul.f32 %v2417_v8, %v2417_v8  ;;  %v2432_v35 = vrot.slane %v2417_v8, %v7593_v28 }
 0x909   : > { %v6408_v27 = vpop.f32.mrf.mxu0 }
 0x90a   : > { %v2423_v29 = vrot.slane %v2421_v26, 7  ;;  %v2433_v38 = vsub.f32 %v7698_v63, %v2432_v35  ;;  %v2434_v41 = vsub.f32 %v7708_v6, %v2432_v35  ;;  %v2435_v42 = vsub.f32 %v7701_v12, %v2432_v35  ;;  %v6813_v26 = vld [vmem:[%s7282_s20 + $0x8] sm:$0xff]   ;;  %v6814_v27 = vld [vmem:[%s7282_s20] sm:$0xff]  }
 0x90b   : > { %v2436_v40 = vsub.f32 %v7706_v19, %v2432_v35  ;;  %v2437_v46 = vsub.f32 %v7722_v25, %v2432_v35  ;;  %v2438_v47 = vsub.f32 %v7742_v45, %v2432_v35  ;;  %v2439_v53 = vsub.f32 %v7732_v37, %v2432_v35 }
 0x90c   : > { %v2425_v32 = vsub.f32 %v2417_v8, %v2423_v29  ;;  %v2440_v2 = vsub.f32 %v7740_v44, %v2432_v35  ;;  %v6812_v8 = vld [vmem:[%s7282_s20 + $0x10] sm:$0xff]   ;;  %v5999_v29 = vld [vmem:[%s8487_s26] ss:$0 sm:$0xff]  ;;  %s8493_s26 = sld [smem:[#allocation14_spill]] }
 0x90e   : > { %v2426_v33 = vmax.f32 %v2425_v32, 0.0 }
 0x910   : > { %v2427_v14 = vadd.f32 1e-05, %v2426_v33 }
 0x912   : > { %6873 = vrsqrt.f32 %v2427_v14 }
 0x91f   : > { %v6874_v36 = vpop.eup %6873 }
 0x920   : > { %v2444_v39 = vrot.slane %v6874_v36, %v7596_v30 }
 0x922   : > { %v2445_v48 = vmul.f32 %v2444_v39, %v2433_v38  ;;  %v2446_v49 = vmul.f32 %v2444_v39, %v2434_v41  ;;  %v2447_v13 = vmul.f32 %v2444_v39, %v2435_v42  ;;  %v2448_v50 = vmul.f32 %v2444_v39, %v2436_v40 }
 0x923   : > { %v2449_v1 = vmul.f32 %v2444_v39, %v2437_v46  ;;  %v2450_v52 = vmul.f32 %v2444_v39, %v2438_v47  ;;  %v2451_v58 = vmul.f32 %v2444_v39, %v2439_v53  ;;  %v2452_v59 = vmul.f32 %v2444_v39, %v2440_v2 }
 0x924   : > { %v2459_v54 = vmul.f32 %v5997_v15, %v2445_v48  ;;  %v2460_v3 = vmul.f32 %v5997_v15, %v2446_v49  ;;  %v2461_v55 = vmul.f32 %v5997_v15, %v2447_v13  ;;  %v2462_v56 = vmul.f32 %v5997_v15, %v2448_v50 }
 0x925   : > { %v2463_v20 = vmul.f32 %v5997_v15, %v2449_v1  ;;  %v2464_v57 = vmul.f32 %v5997_v15, %v2450_v52  ;;  %v2465_v4 = vmul.f32 %v5997_v15, %v2451_v58  ;;  %v2466_v21 = vmul.f32 %v5997_v15, %v2452_v59 }
 0x926   : > { %v2473_v60 = vadd.f32 %v5998_v51, %v2459_v54  ;;  %v2474_v61 = vadd.f32 %v5998_v51, %v2460_v3  ;;  %v2475_v62 = vadd.f32 %v5998_v51, %v2461_v55  ;;  %v2476_v10 = vadd.f32 %v5998_v51, %v2462_v56 }
 0x927   : > { %v2477_v11 = vadd.f32 %v5998_v51, %v2463_v20  ;;  %v2478_v16 = vadd.f32 %v5998_v51, %v2464_v57  ;;  %v2479_v7 = vadd.f32 %v5998_v51, %v2465_v4  ;;  %v2480_v5 = vadd.f32 %v5998_v51, %v2466_v21 }
 0x928   : > { %v2481_v17 = vpack.c.bf16 %v2474_v61, %v2473_v60  ;;  %v2482_v18 = vpack.c.bf16 %v2476_v10, %v2475_v62 }
 0x929   : > { %v2483_v31 = vpack.c.bf16 %v2478_v16, %v2477_v11  ;;  %v2484_v34 = vpack.c.bf16 %v2480_v5, %v2479_v7 }
 0x92a   : > { %6413 = vmatprep.mubr.msk.bf16.mxu0 %vm1441_vm1, %v2481_v17 }
 0x92b   : > { %6414 = vmatmul.mubr.msk.bf16.vlgmr.msra.gmra.mxu0 %vm1441_vm1, %v2482_v18 }
 0x92c   : > { %6417 = vmatprep.mubr.msk.bf16.mxu0 %vm1441_vm1, %v2483_v31  ;;  %6457 = vmatpush3.msra.mxu0 %v7587_v9  ;;  %v6810_v9 = vld [vmem:[%s7282_s20 + $0x20] sm:$0xff]  }
 0x92d   : > { %6427 = vmatprep.subr.bf16.mxu1 %v6810_v9 }
 0x92e   : > { %6428 = vmatpush3.bf16.msra.mxu1 %v6810_v9 }
 0x92f   : > { %6429 = vmatprep.subr.bf16.mxu1 %v6811_v24 }
 0x932   : > { %6430 = vmatpush3.bf16.msra.mxu1 %v6811_v24 }
 0x933   : > { %6418 = vmatmul.mubr.msk.bf16.gmra.mxu0 %vm1441_vm1, %v2484_v34  ;;  %6431 = vmatprep.subr.bf16.mxu1 %v6812_v8 }
 0x934   : > { %6458 = vmatprep.mubr.msk.f32.mxu0 %vm7196_vm0, %v7195_v0 }
 0x936   : > { %6432 = vmatpush3.bf16.msra.mxu1 %v6812_v8 }
 0x937   : > { %6433 = vmatprep.subr.bf16.mxu1 %v6813_v26 }
 0x93a   : > { %6434 = vmatpush3.bf16.msra.mxu1 %v6813_v26 }
 0x93b   : > { %6435 = vmatprep.subr.bf16.mxu1 %v6814_v27 }
 0x93e   : > { %6436 = vmatpush3.bf16.msra.mxu1 %v6814_v27 }
 0x93f   : > { %6445 = vmatprep.subr.mxu1 %v7195_v0 }
 0x9eb   : > { %v6415_v32 = vpop.f32.mrf.mxu0 }
 0x9ec   : > { %v2563_v33 = vadd.f32 %v6415_v32, %v5999_v29  ;;  %v7802_v32 = vld [vmem:[%s7222_s17 + $0x18] sm:$0xff] }
 0x9ed   : > { %v2554_v14 = vpop.f32.mrf.mxu0 }
 0x9ee   : > { %v6008_v35 = vmul.f32 -1.442695, %v2563_v33  ;;  %v2555_v36 = vadd.f32 %v5999_v29, %v2554_v14 }
 0x9ef   : > { %v6416_v38 = vpop.f32.mrf.mxu0 }
 0x9f0   : > { %v6006_v39 = vmul.f32 -1.442695, %v2555_v36  ;;  %v2566_v41 = vadd.f32 %v6416_v38, %v5999_v29  ;;  %6875 = vpow2.f32 %v6008_v35 }
 0x9f1   : > { %v2557_v42 = vpop.f32.mrf.mxu0 }
 0x9f2   : > { %6877 = vpow2.f32 %v6006_v39  ;;  %v6009_v40 = vmul.f32 -1.442695, %v2566_v41  ;;  %v2558_v15 = vadd.f32 %v5999_v29, %v2557_v42  ;;  %v7813_v42 = vld [vmem:[%s7222_s17 + $0x8] sm:$0xff] }
 0x9f3   : > { %v6419_v46 = vpop.f32.mrf.mxu0 }
 0x9f4   : > { %6879 = vpow2.f32 %v6009_v40  ;;  %v6007_v47 = vmul.f32 -1.442695, %v2558_v15  ;;  %v7798_v48 = vadd.f32 %v6419_v46, %v5999_v29 }
 0x9f5   : > { %v2570_v49 = vpop.f32.mrf.mxu0 }
 0x9f6   : > { %6881 = vpow2.f32 %v6007_v47  ;;  %v6012_v13 = vmul.f32 -1.442695, %v7798_v48  ;;  %v2571_v50 = vadd.f32 %v5999_v29, %v2570_v49 }
 0x9f7   : > { %v6420_v51 = vpop.f32.mrf.mxu0 }
 0x9f8   : > { %v6010_v1 = vmul.f32 -1.442695, %v2571_v50  ;;  %v2582_v52 = vadd.f32 %v6420_v51, %v5999_v29  ;;  %6883 = vpow2.f32 %v6012_v13  ;;  %v6022_v13 = vld [vmem:[%s8488_s28] ss:$0 sm:$0xff]  ;;  %s8494_s28 = sld [smem:[#allocation18_spill]] }
 0x9f9   : > { %v2573_v53 = vpop.f32.mrf.mxu0 }
 0x9fa   : > { %6885 = vpow2.f32 %v6010_v1  ;;  %v6013_v2 = vmul.f32 -1.442695, %v2582_v52  ;;  %v2574_v54 = vadd.f32 %v5999_v29, %v2573_v53 }
 0x9fc   : > { %6887 = vpow2.f32 %v6013_v2  ;;  %v6011_v3 = vmul.f32 -1.442695, %v2574_v54 }
 0x9fd   : > { %v6876_v55 = vpop.eup %6875 }
 0x9fe   : > { %6889 = vpow2.f32 %v6011_v3  ;;  %v2611_v58 = vadd.f32 1.0, %v6876_v55 }
 0x9ff   : > { %v6878_v56 = vpop.eup %6877 }
 0xa00   : > { %v2609_v20 = vadd.f32 1.0, %v6878_v56 }
 0xa01   : > { %v6880_v57 = vpop.eup %6879 }
 0xa02   : > { %v2612_v59 = vadd.f32 1.0, %v6880_v57  ;;  %6891 = vrcp.f32 %v2609_v20 }
 0xa03   : > { %v6882_v60 = vpop.eup %6881 }
 0xa04   : > { %6893 = vrcp.f32 %v2612_v59  ;;  %v2610_v61 = vadd.f32 1.0, %v6882_v60 }
 0xa05   : > { %6895 = vrcp.f32 %v2611_v58  ;;  %v6884_v62 = vpop.eup %6883 }
 0xa06   : > { %6897 = vrcp.f32 %v2610_v61  ;;  %v2615_v17 = vadd.f32 1.0, %v6884_v62 }
 0xa07   : > { %v6886_v10 = vpop.eup %6885 }
 0xa08   : > { %v2613_v11 = vadd.f32 1.0, %v6886_v10 }
 0xa09   : > { %v6888_v16 = vpop.eup %6887 }
 0xa0a   : > { %v2616_v18 = vadd.f32 1.0, %v6888_v16  ;;  %6899 = vrcp.f32 %v2613_v11 }
 0xa0b   : > { %v6890_v4 = vpop.eup %6889 }
 0xa0c   : > { %6901 = vrcp.f32 %v2616_v18  ;;  %v2614_v21 = vadd.f32 1.0, %v6890_v4 }
 0xa0d   : > { %6903 = vrcp.f32 %v2615_v17 }
 0xa0e   : > { %6905 = vrcp.f32 %v2614_v21 }
 0xa0f   : > { %v6892_v31 = vpop.eup %6891 }
 0xa10   : > { %v2633_v43 = vmul.f32 %v6892_v31, %v2555_v36 }
 0xa11   : > { %v6894_v7 = vpop.eup %6893 }
 0xa12   : > { %v6896_v5 = vpop.eup %6895  ;;  %v2636_v22 = vmul.f32 %v6894_v7, %v2566_v41 }
 0xa13   : > { %v6898_v34 = vpop.eup %6897  ;;  %v2635_v9 = vmul.f32 %v6896_v5, %v2563_v33  ;;  %v7807_v33 = vld [vmem:[%s7222_s17 + $0x10] sm:$0xff] }
 0xa14   : > { %v2634_v23 = vmul.f32 %v6898_v34, %v2558_v15  ;;  %v7818_v15 = vld [vmem:[%s7222_s17] sm:$0xff] }
 0xa15   : > { %v2642_v8 = vpack.c.bf16 %v2636_v22, %v2635_v9 }
 0xa16   : > { %v2641_v24 = vpack.c.bf16 %v2634_v23, %v2633_v43 }
 0xa17   : > { %v6900_v26 = vpop.eup %6899 }
 0xa18   : > { %6437 = vmatprep.mubr.bf16.mxu1 %v2641_v24  ;;  %v2637_v36 = vmul.f32 %v6900_v26, %v2571_v50 }
 0xa19   : > { %v6902_v27 = vpop.eup %6901  ;;  %6438 = vmatmul.mubr.bf16.vlgmr.msra.gmra.mxu1 %v2642_v8 }
 0xa1a   : > { %v6904_v29 = vpop.eup %6903  ;;  %6446 = vmatpush3.msra.mxu1 %v7802_v32  ;;  %v2640_v35 = vmul.f32 %v6902_v27, %v2582_v52 }
 0xa1b   : > { %v6906_v14 = vpop.eup %6905  ;;  %6447 = vmatprep.subr.mxu1 %v7195_v0  ;;  %v2639_v39 = vmul.f32 %v6904_v29, %v7798_v48 }
 0xa1c   : > { %v2638_v38 = vmul.f32 %v6906_v14, %v2574_v54  ;;  %6448 = vmatpush3.msra.mxu1 %v7807_v33 }
 0xa1d   : > { %6449 = vmatprep.subr.mxu1 %v7195_v0  ;;  %v2644_v40 = vpack.c.bf16 %v2640_v35, %v2639_v39 }
 0xa1e   : > { %v2643_v41 = vpack.c.bf16 %v2638_v38, %v2637_v36  ;;  %6450 = vmatpush3.msra.mxu1 %v7813_v42 }
 0xa1f   : > { %6451 = vmatprep.subr.mxu1 %v7195_v0 }
 0xa20   : > { %6441 = vmatprep.mubr.bf16.mxu1 %v2643_v41  ;;  %6452 = vmatpush3.msra.mxu1 %v7818_v15 }
 0xa21   : > { %6442 = vmatmul.mubr.bf16.gmra.mxu1 %v2644_v40  ;;  %6473 = vmatprep.subr.bf16.mxu1 %v7195_v0 }
 0xa22   : > { %6453 = vmatprep.mubr.msk.f32.mxu1 %vm7196_vm0, %v7195_v0 }
 0xad9   : > { %v6439_v46 = vpop.f32.mrf.mxu1 }
 0xada   : > { %v2776_v48 = vadd.f32 %v6439_v46, %v7701_v12 }
 0xadb   : > { %v2743_v47 = vpop.f32.mrf.mxu1 }
 0xadc   : > { %v2774_v49 = vadd.f32 %v2743_v47, %v7698_v63  ;;  %v7830_v53 = vadd.f32 %v6022_v13, %v2776_v48 }
 0xadd   : > { %v6440_v50 = vpop.f32.mrf.mxu1 }
 0xade   : > { %v7827_v51 = vadd.f32 %v6022_v13, %v2774_v49  ;;  %v2777_v1 = vadd.f32 %v6440_v50, %v7706_v19  ;;  %v2822_v56 = vmul.f32 %v7830_v53, %v7830_v53  ;;  %v2802_v60 = vsel %vm1441_vm1, %v7830_v53, 0.0 }
 0xadf   : > { %v2746_v52 = vpop.f32.mrf.mxu1 }
 0xae0   : > { %v2775_v2 = vadd.f32 %v2746_v52, %v7708_v6  ;;  %v2820_v3 = vmul.f32 %v7827_v51, %v7827_v51  ;;  %v7835_v55 = vadd.f32 %v6022_v13, %v2777_v1  ;;  %v2799_v19 = vsel %vm1441_vm1, %v7827_v51, 0.0 }
 0xae1   : > { %v6443_v54 = vpop.f32.mrf.mxu1  ;;  %v2831_v18 = vsel %vm1441_vm1, %v2822_v56, 0.0 }
 0xae2   : > { %v7837_v12 = vadd.f32 %v6022_v13, %v2775_v2  ;;  %v2780_v58 = vadd.f32 %v6443_v54, %v7732_v37  ;;  %v2823_v10 = vmul.f32 %v7835_v55, %v7835_v55  ;;  %v2804_v21 = vsel %vm1441_vm1, %v7835_v55, 0.0 }
 0xae3   : > { %v2759_v63 = vpop.f32.mrf.mxu1 }
 0xae4   : > { %v2778_v20 = vadd.f32 %v2759_v63, %v7722_v25  ;;  %v2800_v6 = vsel %vm1441_vm1, %v7837_v12, 0.0  ;;  %v2821_v57 = vmul.f32 %v7837_v12, %v7837_v12  ;;  %v2828_v25 = vsel %vm1441_vm1, %v2820_v3, 0.0 }
 0xae5   : > { %v6444_v59 = vpop.f32.mrf.mxu1  ;;  %v2801_v61 = vadd.f32 %v2800_v6, %v2799_v19  ;;  %v7861_v31 = vadd.f32 %v6022_v13, %v2780_v58  ;;  %v2833_v43 = vsel %vm1441_vm1, %v2823_v10, 0.0  ;;  %v6815_v10 = vld [vmem:[%s8489_s1] sm:$0xff]   ;;  %s8495_s1 = sld [smem:[#allocation16_spill]] }
 0xae6   : > { %v7851_v62 = vadd.f32 %v6022_v13, %v2778_v20  ;;  %v2829_v11 = vsel %vm1441_vm1, %v2821_v57, 0.0  ;;  %v2781_v16 = vadd.f32 %v6444_v59, %v7740_v44 }
 0xae7   : > { %v2762_v17 = vpop.f32.mrf.mxu1  ;;  %v2803_v37 = vadd.f32 %v2802_v60, %v2801_v61  ;;  %v2830_v4 = vadd.f32 %v2829_v11, %v2828_v25  ;;  %v2826_v26 = vmul.f32 %v7861_v31, %v7861_v31  ;;  %v2810_v36 = vsel %vm1441_vm1, %v7861_v31, 0.0  ;;  %v6816_v11 = vld [vmem:[%s8490_s2 + $0x8] sm:$0xff]  }
 0xae8   : > { %v2824_v7 = vmul.f32 %v7851_v62, %v7851_v62  ;;  %v2779_v5 = vadd.f32 %v2762_v17, %v7742_v45  ;;  %v2806_v44 = vsel %vm1441_vm1, %v7851_v62, 0.0  ;;  %v7869_v23 = vadd.f32 %v6022_v13, %v2781_v16  ;;  %v6817_v16 = vld [vmem:[%s8490_s2] sm:$0xff]   ;;  %6461 = vmatprep.subr.bf16.mxu0 %v6816_v11 }
 0xae9   : > { %v2832_v34 = vadd.f32 %v2831_v18, %v2830_v4  ;;  %v2805_v22 = vadd.f32 %v2804_v21, %v2803_v37  ;;  %v2839_v46 = vsel %vm1441_vm1, %v2826_v26, 0.0  ;;  %v1434_v17 = vld [vmem:[%s1411_s16] sm:$0xff]  ;;  %s8497_s16 = sld [smem:[#allocation19_spill]] }
 0xaea   : > { %v7871_v9 = vadd.f32 %v6022_v13, %v2779_v5  ;;  %v2835_v27 = vsel %vm1441_vm1, %v2824_v7, 0.0  ;;  %v2827_v38 = vmul.f32 %v7869_v23, %v7869_v23  ;;  %v2812_v47 = vsel %vm1441_vm1, %v7869_v23, 0.0 }
 0xaeb   : > { %v2807_v24 = vadd.f32 %v2806_v44, %v2805_v22  ;;  %v2834_v8 = vadd.f32 %v2833_v43, %v2832_v34  ;;  %v7899_v18 = vpack.c.bf16 %v1434_v17, %v1434_v17 }
 0xaec   : > { %v2808_v45 = vsel %vm1441_vm1, %v7871_v9, 0.0  ;;  %v2825_v29 = vmul.f32 %v7871_v9, %v7871_v9  ;;  %v2841_v13 = vsel %vm1441_vm1, %v2827_v38, 0.0 }
 0xaed   : > { %v2836_v14 = vadd.f32 %v2835_v27, %v2834_v8  ;;  %v2809_v35 = vadd.f32 %v2808_v45, %v2807_v24 }
 0xaee   : > { %v2837_v39 = vsel %vm1441_vm1, %v2825_v29, 0.0  ;;  %v6025_v29 = vld [vmem:[%s8492_s18] ss:$0 sm:$0xff]  ;;  %s8498_s18 = sld [smem:[#allocation20_spill]] }
 0xaef   : > { %v2811_v41 = vadd.f32 %v2810_v36, %v2809_v35  ;;  %v2838_v40 = vadd.f32 %v2837_v39, %v2836_v14 }
 0xaf1   : > { %v2813_v48 = vadd.f32 %v2812_v47, %v2811_v41  ;;  %v2840_v49 = vadd.f32 %v2839_v46, %v2838_v40  ;;  %v6026_v40 = vld [vmem:[%s8493_s26] ss:$0 sm:$0xff]  ;;  %s8499_s26 = sld [smem:[#allocation23_spill]] }
 0xaf3   : > { %v2814_v50 = vrot.slane %v2813_v48, 4  ;;  %v2842_v1 = vadd.f32 %v2841_v13, %v2840_v49 }
 0xaf5   : > { %v2815_v52 = vadd.f32 %v2814_v50, %v2813_v48  ;;  %v2843_v2 = vrot.slane %v2842_v1, 4 }
 0xaf7   : > { %v2816_v54 = vrot.slane %v2815_v52, 2  ;;  %v2844_v3 = vadd.f32 %v2843_v2, %v2842_v1 }
 0xaf9   : > { %v2817_v63 = vadd.f32 %v2816_v54, %v2815_v52  ;;  %v2845_v56 = vrot.slane %v2844_v3, 2 }
 0xafb   : > { %v2818_v20 = vrot.slane %v2817_v63, 1  ;;  %v2846_v19 = vadd.f32 %v2845_v56, %v2844_v3 }
 0xafd   : > { %v2847_v6 = vrot.slane %v2846_v19, 1  ;;  %v2819_v57 = vadd.f32 %v2818_v20, %v2817_v63 }
 0xaff   : > { %v2848_v58 = vadd.f32 %v2847_v6, %v2846_v19 }
 0xb01   : > { %v2849_v59 = vsel %vm1492_vm2, %v2819_v57, %v2848_v58 }
 0xb02   : > { %6454 = vmatmul.mubr.msk.f32.vlgmr.msra.gmra.mxu1 %vm1441_vm1, %v2849_v59 }
 0xb03   : > { %6475 = vmatprep.mubr.msk.bf16.mxu1 %vm7196_vm0, %v7195_v0  ;;  %6474 = vmatpush3.bf16.msra.mxu1 %v6815_v10 }
 0xb06   : > { %6476 = vmatmul.mubr.msk.bf16.vlgmr.msra.gmra.mxu1 %vm3176_vm5, %v7899_v18 }
 0xbc2   : > { %v2919_v60 = vpop.f32.mrf.mxu1 }
 0xbc3   : > { %v2923_v61 = vmul.f32 0.00390625, %v2919_v60 }
 0xbc4   : > { %v6455_v25 = vpop.f32.mrf.mxu1 }
 0xbc5   : > { %6459 = vmatmul.mubr.msk.f32.vlgmr.msra.gmra.mxu0 %vm1568_vm3, %v2923_v61 }
 0xbc6   : > { %6462 = vmatpush3.bf16.msra.mxu0 %v6816_v11 }
 0xbc7   : > { %6463 = vmatprep.subr.bf16.mxu0 %v6817_v16 }
 0xbca   : > { %6464 = vmatpush3.bf16.msra.mxu0 %v6817_v16 }
 0xc85   : > { %v2993_v37 = vpop.f32.mrf.mxu0 }
 0xc86   : > { %v2997_v4 = vmul.f32 %v2993_v37, %v2993_v37  ;;  %v3008_v43 = vrot.slane %v2993_v37, %v7593_v28 }
 0xc87   : > { %v6460_v21 = vpop.f32.mrf.mxu0 }
 0xc88   : > { %v2999_v7 = vrot.slane %v2997_v4, 7  ;;  %v3009_v24 = vsub.f32 %v7827_v51, %v3008_v43  ;;  %v3010_v26 = vsub.f32 %v7837_v12, %v3008_v43  ;;  %v3011_v27 = vsub.f32 %v7830_v53, %v3008_v43  ;;  %v3214_v4 = vpop.f32.mrf.mxu1 }
 0xc89   : > { %v3012_v45 = vsub.f32 %v7835_v55, %v3008_v43  ;;  %v3013_v14 = vsub.f32 %v7851_v62, %v3008_v43  ;;  %v3014_v35 = vsub.f32 %v7871_v9, %v3008_v43  ;;  %v3015_v48 = vsub.f32 %v7861_v31, %v3008_v43 }
 0xc8a   : > { %v3001_v5 = vsub.f32 %v2993_v37, %v2999_v7  ;;  %v3016_v49 = vsub.f32 %v7869_v23, %v3008_v43  ;;  %v6034_v37 = vld [vmem:[%s8494_s28] ss:$0 sm:$0xff]  ;;  %v6477_v7 = vpop.f32.mrf.mxu1  ;;  %s8500_s28 = sld [smem:[#allocation21_spill]] }
 0xc8b   : > { %v3215_v21 = vadd.f32 %v6034_v37, %v3214_v4 }
 0xc8c   : > { %v3002_v34 = vmax.f32 %v3001_v5, 0.0 }
 0xc8d   : > { %v7920_v5 = vpack.c.bf16 %v3215_v21, %v3215_v21 }
 0xc8e   : > { %v3003_v22 = vadd.f32 1e-05, %v3002_v34  ;;  %v3217_v34 = vpop.f32.mrf.mxu1 }
 0xc8f   : > { %6705 = vmatprep.subr.msk.bf16.mxu0 %vm1441_vm1, %v7920_v5  ;;  %v3238_v43 = vsel %vm1441_vm1, %v7920_v5, 0 }
 0xc90   : > { %6907 = vrsqrt.f32 %v3003_v22  ;;  %v6478_v22 = vpop.f32.mrf.mxu1 }
 0xc9d   : > { %v6908_v44 = vpop.eup %6907 }
 0xc9e   : > { %v3020_v8 = vrot.slane %v6908_v44, %v7596_v30 }
 0xca0   : > { %v3021_v36 = vmul.f32 %v3020_v8, %v3009_v24  ;;  %v3022_v38 = vmul.f32 %v3020_v8, %v3010_v26  ;;  %v3023_v39 = vmul.f32 %v3020_v8, %v3011_v27  ;;  %v3024_v41 = vmul.f32 %v3020_v8, %v3012_v45  ;;  %v6027_v26 = vld [vmem:[%s8495_s1] ss:$0 sm:$0xff]  ;;  %s8501_s1 = sld [smem:[#allocation22_spill]] }
 0xca1   : > { %v3025_v46 = vmul.f32 %v3020_v8, %v3013_v14  ;;  %v3026_v47 = vmul.f32 %v3020_v8, %v3014_v35  ;;  %v3027_v3 = vmul.f32 %v3020_v8, %v3015_v48  ;;  %v3028_v63 = vmul.f32 %v3020_v8, %v3016_v49 }
 0xca2   : > { %v3035_v13 = vmul.f32 %v6025_v29, %v3021_v36  ;;  %v3036_v50 = vmul.f32 %v6025_v29, %v3022_v38  ;;  %v3037_v1 = vmul.f32 %v6025_v29, %v3023_v39  ;;  %v3038_v52 = vmul.f32 %v6025_v29, %v3024_v41 }
 0xca3   : > { %v3039_v2 = vmul.f32 %v6025_v29, %v3025_v46  ;;  %v3040_v54 = vmul.f32 %v6025_v29, %v3026_v47  ;;  %v3041_v61 = vmul.f32 %v6025_v29, %v3027_v3  ;;  %v3042_v25 = vmul.f32 %v6025_v29, %v3028_v63 }
 0xca4   : > { %v3049_v56 = vadd.f32 %v6026_v40, %v3035_v13  ;;  %v3050_v20 = vadd.f32 %v6026_v40, %v3036_v50  ;;  %v3051_v19 = vadd.f32 %v6026_v40, %v3037_v1  ;;  %v3052_v6 = vadd.f32 %v6026_v40, %v3038_v52  ;;  %v1436_v52 = vld [vmem:[%s1414_s15] sm:$0x1]  ;;  %s8504_s15 = sld [smem:[#allocation26_spill]] }
 0xca5   : > { %v3053_v57 = vadd.f32 %v6026_v40, %v3039_v2  ;;  %v3054_v58 = vadd.f32 %v6026_v40, %v3040_v54  ;;  %v3055_v11 = vadd.f32 %v6026_v40, %v3041_v61  ;;  %v3056_v16 = vadd.f32 %v6026_v40, %v3042_v25 }
 0xca6   : > { %v3057_v59 = vpack.c.bf16 %v3050_v20, %v3049_v56  ;;  %v3058_v60 = vpack.c.bf16 %v3052_v6, %v3051_v19  ;;  %v5968_v2 = vadd.f32 -1.0, %v1436_v52 }
 0xca7   : > { %v3059_v10 = vpack.c.bf16 %v3054_v58, %v3053_v57  ;;  %v3060_v17 = vpack.c.bf16 %v3056_v16, %v3055_v11 }
 0xca8   : > { %6465 = vmatprep.mubr.msk.bf16.mxu0 %vm1441_vm1, %v3057_v59  ;;  %v1438_v54 = vmul.f32 1e+09, %v5968_v2 }
 0xca9   : > { %6466 = vmatmul.mubr.msk.bf16.vlgmr.msra.gmra.mxu0 %vm1441_vm1, %v3058_v60 }
 0xcaa   : > { %6469 = vmatprep.mubr.msk.bf16.mxu0 %vm1441_vm1, %v3059_v10  ;;  %6480 = vmatpush3.bf16.xpose.msra.mxu0 %v3238_v43  ;;  %v7934_v56 = vrot.slane %v1438_v54, %v7593_v28 }
 0xcb1   : > { %6470 = vmatmul.mubr.msk.bf16.gmra.mxu0 %vm1441_vm1, %v3060_v17 }
 0xd69   : > { %v6467_v44 = vpop.f32.mrf.mxu0 }
 0xd6a   : > { %v3139_v35 = vadd.f32 %v6467_v44, %v6027_v26 }
 0xd6b   : > { %v3130_v24 = vpop.f32.mrf.mxu0 }
 0xd6c   : > { %v3131_v29 = vadd.f32 %v6027_v26, %v3130_v24 }
 0xd6d   : > { %v6468_v8 = vpop.f32.mrf.mxu0 }
 0xd6e   : > { %v3142_v27 = vadd.f32 %v6468_v8, %v6027_v26 }
 0xd6f   : > { %v3133_v45 = vpop.f32.mrf.mxu0 }
 0xd70   : > { %v3134_v14 = vadd.f32 %v6027_v26, %v3133_v45  ;;  %v3221_v39 = vpack.c.bf16 %v3142_v27, %v3139_v35 }
 0xd71   : > { %v6471_v36 = vpop.f32.mrf.mxu0 }
 0xd72   : > { %v3220_v38 = vpack.c.bf16 %v3134_v14, %v3131_v29  ;;  %v3155_v13 = vadd.f32 %v6471_v36, %v6027_v26 }
 0xd73   : > { %v3146_v41 = vpop.f32.mrf.mxu0 }
 0xd74   : > { %6481 = vmatprep.mubr.msk.bf16.mxu0 %vm1441_vm1, %v3220_v38  ;;  %v3147_v48 = vadd.f32 %v6027_v26, %v3146_v41 }
 0xd75   : > { %v6472_v40 = vpop.f32.mrf.mxu0  ;;  %6482 = vmatmul.mubr.msk.bf16.vlgmr.msra.gmra.mxu0 %vm1441_vm1, %v3221_v39 }
 0xd76   : > { %v3158_v46 = vadd.f32 %v6472_v40, %v6027_v26 }
 0xd77   : > { %v3149_v47 = vpop.f32.mrf.mxu0 }
 0xd78   : > { %v3150_v49 = vadd.f32 %v6027_v26, %v3149_v47  ;;  %v3223_v1 = vpack.c.bf16 %v3158_v46, %v3155_v13 }
 0xd7a   : > { %v3222_v50 = vpack.c.bf16 %v3150_v49, %v3147_v48 }
 0xd7c   : > { %6485 = vmatprep.mubr.msk.bf16.mxu0 %vm1441_vm1, %v3222_v50 }
 0xd7d   : > { %6486 = vmatmul.mubr.msk.bf16.gmra.mxu0 %vm1441_vm1, %v3223_v1 }
 0xe35   : > { %v6483_v3 = vpop.f32.mrf.mxu0 }
 0xe36   : > { %v3307_v20 = vmul.f32 0.17677669, %v6483_v3 }
 0xe37   : > { %v3274_v63 = vpop.f32.mrf.mxu0 }
 0xe38   : > { %v3305_v19 = vmul.f32 0.17677669, %v3274_v63  ;;  %v3321_v25 = vadd.f32 %v7934_v56, %v3307_v20 }
 0xe39   : > { %v6484_v6 = vpop.f32.mrf.mxu0 }
 0xe3a   : > { %v3319_v57 = vadd.f32 %v7934_v56, %v3305_v19  ;;  %v3308_v58 = vmul.f32 0.17677669, %v6484_v6  ;;  %v3333_v21 = vsel %vm1568_vm3, %v3321_v25, -inf }
 0xe3b   : > { %v3277_v59 = vpop.f32.mrf.mxu0 }
 0xe3c   : > { %v3306_v60 = vmul.f32 0.17677669, %v3277_v59  ;;  %v3327_v61 = vsel %vm1568_vm3, %v3319_v57, -inf  ;;  %v3322_v17 = vadd.f32 %v7934_v56, %v3308_v58 }
 0xe3d   : > { %3328 = vmax.xlane.f32.xlu0 %v3327_v61  ;;  %v6487_v10 = vpop.f32.mrf.mxu0 }
 0xe3e   : > { %v3320_v11 = vadd.f32 %v7934_v56, %v3306_v60  ;;  %v3311_v37 = vmul.f32 0.17677669, %v6487_v10  ;;  %v3336_v44 = vsel %vm1568_vm3, %v3322_v17, -inf }
 0xe3f   : > { %v3290_v16 = vpop.f32.mrf.mxu0 }
 0xe40   : > { %v3309_v4 = vmul.f32 0.17677669, %v3290_v16  ;;  %v3330_v7 = vsel %vm1568_vm3, %v3320_v11, -inf  ;;  %v3325_v27 = vadd.f32 %v7934_v56, %v3311_v37 }
 0xe41   : > { %3334 = vmax.xlane.f32.xlu0 %v3333_v21  ;;  %3331 = vmax.xlane.f32.xlu1 %v3330_v7  ;;  %v6488_v34 = vpop.f32.mrf.mxu0 }
 0xe42   : > { %v3323_v22 = vadd.f32 %v7934_v56, %v3309_v4  ;;  %v3312_v24 = vmul.f32 0.17677669, %v6488_v34  ;;  %v3345_v29 = vsel %vm1568_vm3, %v3325_v27, -inf }
 0xe43   : > { %v3293_v43 = vpop.f32.mrf.mxu0 }
 0xe44   : > { %v3310_v8 = vmul.f32 0.17677669, %v3293_v43  ;;  %v3339_v26 = vsel %vm1568_vm3, %v3323_v22, -inf  ;;  %v3326_v35 = vadd.f32 %v7934_v56, %v3312_v24 }
 0xe45   : > { %3337 = vmax.xlane.f32.xlu0 %v3336_v44  ;;  %3340 = vmax.xlane.f32.xlu1 %v3339_v26 }
 0xe46   : > { %v3324_v45 = vadd.f32 %v7934_v56, %v3310_v8  ;;  %v3348_v36 = vsel %vm1568_vm3, %v3326_v35, -inf }
 0xe48   : > { %v3342_v14 = vsel %vm1568_vm3, %v3324_v45, -inf }
 0xe49   : > { %3346 = vmax.xlane.f32.xlu1 %v3345_v29  ;;  %3343 = vmax.xlane.f32.xlu0 %v3342_v14 }
 0xe4d   : > { %3349 = vmax.xlane.f32.xlu0 %v3348_v36 }
 0xec6   : > { %v3329_v38 = vpop.xlane.xlu0 %3328 }
 0xec7   : > { %v3351_v39 = vsub.f32 %v3319_v57, %v3329_v38 }
 0xec9   : > { %v3359_v48 = vmul.f32 1.442695, %v3351_v39 }
 0xeca   : > { %v3335_v41 = vpop.xlane.xlu0 %3334  ;;  %v3332_v40 = vpop.xlane.xlu1 %3331 }
 0xecb   : > { %v3353_v46 = vsub.f32 %v3321_v25, %v3335_v41  ;;  %v3352_v47 = vsub.f32 %v3320_v11, %v3332_v40 }
 0xecd   : > { %v3363_v49 = vmul.f32 1.442695, %v3353_v46  ;;  %v3361_v13 = vmul.f32 1.442695, %v3352_v47 }
 0xece   : > { %v3338_v50 = vpop.xlane.xlu0 %3337  ;;  %v3341_v1 = vpop.xlane.xlu1 %3340 }
 0xecf   : > { %6909 = vpow2.f32 %v3363_v49  ;;  %v3354_v52 = vsub.f32 %v3322_v17, %v3338_v50  ;;  %v3355_v54 = vsub.f32 %v3323_v22, %v3341_v1 }
 0xed0   : > { %6911 = vpow2.f32 %v3361_v13 }
 0xed1   : > { %6913 = vpow2.f32 %v3359_v48  ;;  %v3365_v2 = vmul.f32 1.442695, %v3354_v52  ;;  %v3367_v6 = vmul.f32 1.442695, %v3355_v54 }
 0xed2   : > { %v3347_v3 = vpop.xlane.xlu1 %3346  ;;  %v3344_v63 = vpop.xlane.xlu0 %3343 }
 0xed3   : > { %6915 = vpow2.f32 %v3365_v2  ;;  %v3357_v20 = vsub.f32 %v3325_v27, %v3347_v3  ;;  %v3356_v19 = vsub.f32 %v3324_v45, %v3344_v63 }
 0xed5   : > { %v3371_v57 = vmul.f32 1.442695, %v3357_v20  ;;  %v3369_v58 = vmul.f32 1.442695, %v3356_v19 }
 0xed6   : > { %v3350_v59 = vpop.xlane.xlu0 %3349 }
 0xed7   : > { %6917 = vpow2.f32 %v3371_v57  ;;  %v3358_v60 = vsub.f32 %v3326_v35, %v3350_v59 }
 0xed8   : > { %6919 = vpow2.f32 %v3369_v58 }
 0xed9   : > { %6921 = vpow2.f32 %v3367_v6  ;;  %v3373_v61 = vmul.f32 1.442695, %v3358_v60 }
 0xedb   : > { %6923 = vpow2.f32 %v3373_v61 }
 0xedc   : > { %v6910_v25 = vpop.eup %6909 }
 0xedd   : > { %v6912_v10 = vpop.eup %6911  ;;  %v3381_v11 = vsel %vm1568_vm3, %v6910_v25, 0.0 }
 0xede   : > { %v6914_v16 = vpop.eup %6913  ;;  %3382 = vadd.xlane.f32.xlu1 %v3381_v11  ;;  %v3378_v17 = vsel %vm1568_vm3, %v6912_v10, 0.0 }
 0xedf   : > { %3379 = vadd.xlane.f32.xlu0 %v3378_v17  ;;  %v3375_v4 = vsel %vm1568_vm3, %v6914_v16, 0.0 }
 0xee0   : > { %v6916_v37 = vpop.eup %6915 }
 0xee1   : > { %v3384_v21 = vsel %vm1568_vm3, %v6916_v37, 0.0 }
 0xee2   : > { %3376 = vadd.xlane.f32.xlu1 %v3375_v4 }
 0xee3   : > { %3385 = vadd.xlane.f32.xlu0 %v3384_v21 }
 0xee4   : > { %v6918_v7 = vpop.eup %6917 }
 0xee5   : > { %v6920_v34 = vpop.eup %6919  ;;  %v3393_v22 = vsel %vm1568_vm3, %v6918_v7, 0.0 }
 0xee6   : > { %v6922_v43 = vpop.eup %6921  ;;  %3394 = vadd.xlane.f32.xlu1 %v3393_v22  ;;  %v3390_v44 = vsel %vm1568_vm3, %v6920_v34, 0.0 }
 0xee7   : > { %3391 = vadd.xlane.f32.xlu0 %v3390_v44  ;;  %v3387_v8 = vsel %vm1568_vm3, %v6922_v43, 0.0 }
 0xee8   : > { %v6924_v24 = vpop.eup %6923 }
 0xee9   : > { %v3396_v26 = vsel %vm1568_vm3, %v6924_v24, 0.0 }
 0xeea   : > { %3388 = vadd.xlane.f32.xlu1 %v3387_v8 }
 0xeeb   : > { %3397 = vadd.xlane.f32.xlu0 %v3396_v26 }
 0xefb   : > { %3420 = vrot.lane.b32.xlu1 %v7920_v5, %s7197_s22 }
 0xf67   : > { %v3383_v27 = vpop.xlane.xlu1 %3382 }
 0xf68   : > { %v3380_v45 = vpop.xlane.xlu0 %3379 }
 0xf69   : > { %6925 = vrcp.f32 %v3380_v45 }
 0xf6a   : > { %6927 = vrcp.f32 %v3383_v27 }
 0xf6b   : > { %v3377_v29 = vpop.xlane.xlu1 %3376 }
 0xf6c   : > { %6929 = vrcp.f32 %v3377_v29  ;;  %v3386_v14 = vpop.xlane.xlu0 %3385 }
 0xf6d   : > { %6931 = vrcp.f32 %v3386_v14 }
 0xf6f   : > { %v3395_v35 = vpop.xlane.xlu1 %3394 }
 0xf70   : > { %v3392_v36 = vpop.xlane.xlu0 %3391 }
 0xf71   : > { %6933 = vrcp.f32 %v3392_v36 }
 0xf72   : > { %6935 = vrcp.f32 %v3395_v35 }
 0xf73   : > { %v3389_v38 = vpop.xlane.xlu1 %3388 }
 0xf74   : > { %6937 = vrcp.f32 %v3389_v38  ;;  %v3398_v39 = vpop.xlane.xlu0 %3397 }
 0xf75   : > { %6939 = vrcp.f32 %v3398_v39 }
 0xf76   : > { %v6926_v41 = vpop.eup %6925 }
 0xf77   : > { %v3421_v40 = vpop.permute.xlu1 %3420  ;;  %v6928_v5 = vpop.eup %6927  ;;  %v3408_v13 = vmul.f32 %v6926_v41, %v6912_v10 }
 0xf78   : > { %v3436_v46 = vsel %vm3434_vm6, %v3421_v40, 0  ;;  %6706 = vmatprep.subr.msk.bf16.mxu1 %vm3434_vm6, %v3421_v40  ;;  %v3409_v50 = vmul.f32 %v6928_v5, %v6910_v25 }
 0xf79   : > { %v6930_v47 = vpop.eup %6929  ;;  %6490 = vmatpush3.bf16.msra.mxu1 %v3436_v46 }
 0xf7a   : > { %v6932_v48 = vpop.eup %6931  ;;  %v3407_v49 = vmul.f32 %v6930_v47, %v6914_v16  ;;  %6511 = vmatprep.subr.mxu1 %v7195_v0 }
 0xf7b   : > { %v3410_v1 = vmul.f32 %v6932_v48, %v6916_v37 }
 0xf7c   : > { %v3415_v52 = vpack.c.bf16 %v3408_v13, %v3407_v49 }
 0xf7d   : > { %v3416_v2 = vpack.c.bf16 %v3410_v1, %v3409_v50 }
 0xf7e   : > { %6491 = vmatprep.mubr.msk.bf16.mxu1 %vm1568_vm3, %v3415_v52  ;;  %v6934_v54 = vpop.eup %6933 }
 0xf7f   : > { %6492 = vmatmul.mubr.msk.bf16.vlgmr.msra.gmra.mxu1 %vm1568_vm3, %v3416_v2  ;;  %v6936_v3 = vpop.eup %6935  ;;  %v3412_v6 = vmul.f32 %v6934_v54, %v6920_v34 }
 0xf80   : > { %6512 = vmatpush3.msra.mxu1 %v7802_v32  ;;  %v3413_v57 = vmul.f32 %v6936_v3, %v6918_v7  ;;  %v6818_v32 = vld [vmem:[%s8497_s16 + $0x8] sm:$0xff]  }
 0xf81   : > { %v6938_v63 = vpop.eup %6937  ;;  %6513 = vmatprep.subr.mxu1 %v7195_v0  ;;  %6499 = vmatprep.subr.bf16.mxu0 %v6818_v32 }
 0xf82   : > { %v6940_v20 = vpop.eup %6939  ;;  %v3411_v19 = vmul.f32 %v6938_v63, %v6922_v43  ;;  %6514 = vmatpush3.msra.mxu1 %v7807_v33  ;;  %6500 = vmatpush3.bf16.msra.mxu0 %v6818_v32  ;;  %v6819_v33 = vld [vmem:[%s8497_s16] sm:$0xff]  }
 0xf83   : > { %v3414_v58 = vmul.f32 %v6940_v20, %v6924_v24  ;;  %6515 = vmatprep.subr.mxu1 %v7195_v0  ;;  %6501 = vmatprep.subr.bf16.mxu0 %v6819_v33  ;;  %v6051_v24 = vld [vmem:[%s8498_s18] ss:$0 sm:$0xff]  ;;  %s8505_s18 = sld [smem:[#allocation29_spill]] }
 0xf84   : > { %v3417_v59 = vpack.c.bf16 %v3412_v6, %v3411_v19  ;;  %6516 = vmatpush3.msra.mxu1 %v7813_v42 }
 0xf85   : > { %v3418_v60 = vpack.c.bf16 %v3414_v58, %v3413_v57  ;;  %6517 = vmatprep.subr.mxu1 %v7195_v0 }
 0xf86   : > { %6495 = vmatprep.mubr.msk.bf16.mxu1 %vm1568_vm3, %v3417_v59  ;;  %6518 = vmatpush3.msra.mxu1 %v7818_v15 }
 0xf87   : > { %6496 = vmatmul.mubr.msk.bf16.gmra.mxu1 %vm1568_vm3, %v3418_v60  ;;  %6522 = vmatprep.subr.mxu1 %v7195_v0 }
 0xf88   : > { %6519 = vmatprep.mubr.msk.f32.mxu1 %vm7196_vm0, %v7195_v0  ;;  %6502 = vmatpush3.bf16.msra.mxu0 %v6819_v33 }
0x103f   : > { %v6493_v42 = vpop.f32.mrf.mxu1 }
0x1041   : > { %v3472_v61 = vpop.f32.mrf.mxu1 }
0x1043   : > { %v6494_v25 = vpop.f32.mrf.mxu1 }
0x1044   : > { %v3504_v15 = vpack.c.bf16 %v6494_v25, %v6493_v42 }
0x1045   : > { %v3475_v10 = vpop.f32.mrf.mxu1 }
0x1046   : > { %v3503_v11 = vpack.c.bf16 %v3475_v10, %v3472_v61 }
0x1047   : > { %v6497_v16 = vpop.f32.mrf.mxu1 }
0x1048   : > { %6503 = vmatprep.mubr.msk.bf16.mxu0 %vm1441_vm1, %v3503_v11 }
0x1049   : > { %v3488_v17 = vpop.f32.mrf.mxu1  ;;  %6504 = vmatmul.mubr.msk.bf16.vlgmr.msra.gmra.mxu0 %vm1441_vm1, %v3504_v15 }
0x104b   : > { %v6498_v37 = vpop.f32.mrf.mxu1 }
0x104c   : > { %v3506_v7 = vpack.c.bf16 %v6498_v37, %v6497_v16 }
0x104d   : > { %v3491_v4 = vpop.f32.mrf.mxu1 }
0x104e   : > { %v3505_v21 = vpack.c.bf16 %v3491_v4, %v3488_v17 }
0x1050   : > { %6507 = vmatprep.mubr.msk.bf16.mxu0 %vm1441_vm1, %v3505_v21 }
0x1051   : > { %6508 = vmatmul.mubr.msk.bf16.gmra.mxu0 %vm1441_vm1, %v3506_v7 }
0x1109   : > { %v6505_v34 = vpop.f32.mrf.mxu0 }
0x110a   : > { %v3602_v43 = vadd.f32 %v6505_v34, %v7830_v53 }
0x110b   : > { %v3569_v22 = vpop.f32.mrf.mxu0 }
0x110c   : > { %v3600_v44 = vadd.f32 %v3569_v22, %v7827_v51  ;;  %v7991_v29 = vadd.f32 %v6051_v24, %v3602_v43 }
0x110d   : > { %v6506_v8 = vpop.f32.mrf.mxu0 }
0x110e   : > { %v7988_v26 = vadd.f32 %v6051_v24, %v3600_v44  ;;  %v3603_v27 = vadd.f32 %v6506_v8, %v7835_v55  ;;  %v3648_v39 = vmul.f32 %v7991_v29, %v7991_v29  ;;  %v3628_v47 = vsel %vm1441_vm1, %v7991_v29, 0.0 }
0x110f   : > { %v3572_v45 = vpop.f32.mrf.mxu0 }
0x1110   : > { %v3601_v14 = vadd.f32 %v3572_v45, %v7837_v12  ;;  %v3646_v36 = vmul.f32 %v7988_v26, %v7988_v26  ;;  %v7996_v38 = vadd.f32 %v6051_v24, %v3603_v27  ;;  %v3625_v55 = vsel %vm1441_vm1, %v7988_v26, 0.0 }
0x1111   : > { %v6509_v35 = vpop.f32.mrf.mxu0  ;;  %v3657_v2 = vsel %vm1441_vm1, %v3648_v39, 0.0 }
0x1112   : > { %v7998_v53 = vadd.f32 %v6051_v24, %v3601_v14  ;;  %v3606_v5 = vadd.f32 %v6509_v35, %v7861_v31  ;;  %v3649_v13 = vmul.f32 %v7996_v38, %v7996_v38  ;;  %v3630_v3 = vsel %vm1441_vm1, %v7996_v38, 0.0 }
0x1113   : > { %v3585_v51 = vpop.f32.mrf.mxu0 }
0x1114   : > { %v3604_v41 = vadd.f32 %v3585_v51, %v7851_v62  ;;  %v3626_v12 = vsel %vm1441_vm1, %v7998_v53, 0.0  ;;  %v3647_v40 = vmul.f32 %v7998_v53, %v7998_v53  ;;  %v3654_v62 = vsel %vm1441_vm1, %v3646_v36, 0.0 }
0x1115   : > { %v6510_v46 = vpop.f32.mrf.mxu0  ;;  %v3627_v48 = vadd.f32 %v3626_v12, %v3625_v55  ;;  %v8022_v63 = vadd.f32 %v6051_v24, %v3606_v5  ;;  %v3659_v58 = vsel %vm1441_vm1, %v3649_v13, 0.0  ;;  %v8053_v5 = vld [vmem:[%s7227_s21] sm:$0xff] }
0x1116   : > { %v8012_v49 = vadd.f32 %v6051_v24, %v3604_v41  ;;  %v3655_v50 = vsel %vm1441_vm1, %v3647_v40, 0.0  ;;  %v3607_v1 = vadd.f32 %v6510_v46, %v7869_v23  ;;  %v6821_v13 = vld [vmem:[%s8499_s26] sm:$0xff]  }
0x1117   : > { %v3588_v52 = vpop.f32.mrf.mxu0  ;;  %v3629_v31 = vadd.f32 %v3628_v47, %v3627_v48  ;;  %v3656_v54 = vadd.f32 %v3655_v50, %v3654_v62  ;;  %v3652_v42 = vmul.f32 %v8022_v63, %v8022_v63  ;;  %v3636_v15 = vsel %vm1441_vm1, %v8022_v63, 0.0  ;;  %v6820_v62 = vld [vmem:[%s8499_s26 + $0x8] sm:$0xff]  }
0x1118   : > { %v3650_v20 = vmul.f32 %v8012_v49, %v8012_v49  ;;  %v3605_v19 = vadd.f32 %v3588_v52, %v7871_v9  ;;  %v3632_v23 = vsel %vm1441_vm1, %v8012_v49, 0.0  ;;  %v8030_v59 = vadd.f32 %v6051_v24, %v3607_v1  ;;  %6527 = vmatprep.subr.bf16.mxu0 %v6820_v62 }
0x1119   : > { %v3658_v6 = vadd.f32 %v3657_v2, %v3656_v54  ;;  %v3631_v57 = vadd.f32 %v3630_v3, %v3629_v31  ;;  %v3665_v21 = vsel %vm1441_vm1, %v3652_v42, 0.0  ;;  %6528 = vmatpush3.bf16.msra.mxu0 %v6820_v62 }
0x111a   : > { %v8032_v60 = vadd.f32 %v6051_v24, %v3605_v19  ;;  %v3661_v61 = vsel %vm1441_vm1, %v3650_v20, 0.0  ;;  %v3653_v16 = vmul.f32 %v8030_v59, %v8030_v59  ;;  %v3638_v7 = vsel %vm1441_vm1, %v8030_v59, 0.0  ;;  %6529 = vmatprep.subr.bf16.mxu0 %v6821_v13 }
0x111b   : > { %v3633_v32 = vadd.f32 %v3632_v23, %v3631_v57  ;;  %v3660_v33 = vadd.f32 %v3659_v58, %v3658_v6 }
0x111c   : > { %v3634_v9 = vsel %vm1441_vm1, %v8032_v60, 0.0  ;;  %v3651_v25 = vmul.f32 %v8032_v60, %v8032_v60  ;;  %v3667_v43 = vsel %vm1441_vm1, %v3653_v16, 0.0 }
0x111d   : > { %v3662_v10 = vadd.f32 %v3661_v61, %v3660_v33  ;;  %v3635_v11 = vadd.f32 %v3634_v9, %v3633_v32  ;;  %6530 = vmatpush3.bf16.msra.mxu0 %v6821_v13  ;;  %v6054_v33 = vld [vmem:[%s8500_s28] ss:$0 sm:$0xff]  ;;  %s8506_s28 = sld [smem:[#allocation27_spill]] }
0x111e   : > { %v3663_v17 = vsel %vm1441_vm1, %v3651_v25, 0.0 }
0x111f   : > { %v3637_v37 = vadd.f32 %v3636_v15, %v3635_v11  ;;  %v3664_v4 = vadd.f32 %v3663_v17, %v3662_v10  ;;  %v6055_v15 = vld [vmem:[%s8501_s1] ss:$0 sm:$0xff]  ;;  %s8507_s1 = sld [smem:[#allocation28_spill]] }
0x1121   : > { %v3639_v34 = vadd.f32 %v3638_v7, %v3637_v37  ;;  %v3666_v22 = vadd.f32 %v3665_v21, %v3664_v4 }
0x1123   : > { %v3640_v44 = vrot.slane %v3639_v34, 4  ;;  %v3668_v24 = vadd.f32 %v3667_v43, %v3666_v22 }
0x1125   : > { %v3641_v8 = vadd.f32 %v3640_v44, %v3639_v34  ;;  %v3669_v27 = vrot.slane %v3668_v24, 4 }
0x1127   : > { %v3642_v45 = vrot.slane %v3641_v8, 2  ;;  %v3670_v14 = vadd.f32 %v3669_v27, %v3668_v24 }
0x1129   : > { %v3643_v35 = vadd.f32 %v3642_v45, %v3641_v8  ;;  %v3671_v36 = vrot.slane %v3670_v14, 2 }
0x112b   : > { %v3644_v51 = vrot.slane %v3643_v35, 1  ;;  %v3672_v39 = vadd.f32 %v3671_v36, %v3670_v14 }
0x112d   : > { %v3673_v41 = vrot.slane %v3672_v39, 1  ;;  %v3645_v55 = vadd.f32 %v3644_v51, %v3643_v35 }
0x112f   : > { %v3674_v12 = vadd.f32 %v3673_v41, %v3672_v39 }
0x1131   : > { %v3675_v40 = vsel %vm1492_vm2, %v3645_v55, %v3674_v12 }
0x1132   : > { %6520 = vmatmul.mubr.msk.f32.vlgmr.msra.gmra.mxu1 %vm1441_vm1, %v3675_v40 }
0x1133   : > { %6523 = vmatpush3.msra.mxu1 %v8053_v5  ;;  %6524 = vmatprep.mubr.msk.f32.mxu1 %vm7196_vm0, %v7195_v0 }
0x11f2   : > { %v3745_v46 = vpop.f32.mrf.mxu1 }
0x11f3   : > { %v3749_v47 = vmul.f32 0.00390625, %v3745_v46 }
0x11f4   : > { %v6521_v48 = vpop.f32.mrf.mxu1 }
0x11f5   : > { %6525 = vmatmul.mubr.msk.f32.vlgmr.msra.gmra.mxu1 %vm1568_vm3, %v3749_v47 }
0x12b5   : > { %v3819_v50 = vpop.f32.mrf.mxu1 }
0x12b6   : > { %v3823_v1 = vmul.f32 %v3819_v50, %v3819_v50  ;;  %v3834_v20 = vrot.slane %v3819_v50, %v7593_v28 }
0x12b7   : > { %v6526_v52 = vpop.f32.mrf.mxu1 }
0x12b8   : > { %v3825_v2 = vrot.slane %v3823_v1, 7  ;;  %v3835_v6 = vsub.f32 %v7988_v26, %v3834_v20  ;;  %v3836_v58 = vsub.f32 %v7998_v53, %v3834_v20  ;;  %v3837_v23 = vsub.f32 %v7991_v29, %v3834_v20  ;;  %v6056_v1 = vld [vmem:[%s8502_s11] ss:$0 sm:$0xff]  ;;  %s8508_s11 = sld [smem:[#allocation31_spill]] }
0x12b9   : > { %v3838_v32 = vsub.f32 %v7996_v38, %v3834_v20  ;;  %v3839_v42 = vsub.f32 %v8012_v49, %v3834_v20  ;;  %v3840_v61 = vsub.f32 %v8032_v60, %v3834_v20  ;;  %v3841_v37 = vsub.f32 %v8022_v63, %v3834_v20 }
0x12ba   : > { %v3827_v31 = vsub.f32 %v3819_v50, %v3825_v2  ;;  %v3842_v4 = vsub.f32 %v8030_v59, %v3834_v20 }
0x12bc   : > { %v3828_v54 = vmax.f32 %v3827_v31, 0.0 }
0x12be   : > { %v3829_v3 = vadd.f32 1e-05, %v3828_v54 }
0x12c0   : > { %6941 = vrsqrt.f32 %v3829_v3 }
0x12cd   : > { %v6942_v19 = vpop.eup %6941 }
0x12ce   : > { %v3846_v57 = vrot.slane %v6942_v19, %v7596_v30 }
0x12d0   : > { %v3847_v9 = vmul.f32 %v3846_v57, %v3835_v6  ;;  %v3848_v25 = vmul.f32 %v3846_v57, %v3836_v58  ;;  %v3849_v10 = vmul.f32 %v3846_v57, %v3837_v23  ;;  %v3850_v11 = vmul.f32 %v3846_v57, %v3838_v32 }
0x12d1   : > { %v3851_v16 = vmul.f32 %v3846_v57, %v3839_v42  ;;  %v3852_v17 = vmul.f32 %v3846_v57, %v3840_v61  ;;  %v3853_v24 = vmul.f32 %v3846_v57, %v3841_v37  ;;  %v3854_v8 = vmul.f32 %v3846_v57, %v3842_v4 }
0x12d2   : > { %v3861_v21 = vmul.f32 %v6054_v33, %v3847_v9  ;;  %v3862_v7 = vmul.f32 %v6054_v33, %v3848_v25  ;;  %v3863_v34 = vmul.f32 %v6054_v33, %v3849_v10  ;;  %v3864_v22 = vmul.f32 %v6054_v33, %v3850_v11 }
0x12d3   : > { %v3865_v43 = vmul.f32 %v6054_v33, %v3851_v16  ;;  %v3866_v44 = vmul.f32 %v6054_v33, %v3852_v17  ;;  %v3867_v55 = vmul.f32 %v6054_v33, %v3853_v24  ;;  %v3868_v12 = vmul.f32 %v6054_v33, %v3854_v8 }
0x12d4   : > { %v3875_v27 = vadd.f32 %v6055_v15, %v3861_v21  ;;  %v3876_v45 = vadd.f32 %v6055_v15, %v3862_v7  ;;  %v3877_v14 = vadd.f32 %v6055_v15, %v3863_v34  ;;  %v3878_v35 = vadd.f32 %v6055_v15, %v3864_v22  ;;  %v8110_v7 = vld [vmem:[%s7222_s17 + $0x18] sm:$0xff]  ;;  %v8115_v34 = vld [vmem:[%s7222_s17 + $0x10] sm:$0xff]  ;;  %v8120_v22 = vld [vmem:[%s7222_s17 + $0x8] sm:$0xff] }
0x12d5   : > { %v3879_v36 = vadd.f32 %v6055_v15, %v3865_v43  ;;  %v3880_v51 = vadd.f32 %v6055_v15, %v3866_v44  ;;  %v3881_v46 = vadd.f32 %v6055_v15, %v3867_v55  ;;  %v3882_v47 = vadd.f32 %v6055_v15, %v3868_v12  ;;  %v8125_v43 = vld [vmem:[%s7222_s17] sm:$0xff] }
0x12d6   : > { %v3883_v39 = vpack.c.bf16 %v3876_v45, %v3875_v27  ;;  %v3884_v41 = vpack.c.bf16 %v3878_v35, %v3877_v14 }
0x12d7   : > { %v3885_v40 = vpack.c.bf16 %v3880_v51, %v3879_v36  ;;  %v3886_v48 = vpack.c.bf16 %v3882_v47, %v3881_v46 }
0x12d8   : > { %6531 = vmatprep.mubr.msk.bf16.mxu0 %vm1441_vm1, %v3883_v39 }
0x12d9   : > { %6532 = vmatmul.mubr.msk.bf16.vlgmr.msra.gmra.mxu0 %vm1441_vm1, %v3884_v41 }
0x12da   : > { %6535 = vmatprep.mubr.msk.bf16.mxu0 %vm1441_vm1, %v3885_v40 }
0x12e1   : > { %6536 = vmatmul.mubr.msk.bf16.gmra.mxu0 %vm1441_vm1, %v3886_v48 }
0x1399   : > { %v6533_v62 = vpop.f32.mrf.mxu0 }
0x139a   : > { %v3965_v9 = vadd.f32 %v6533_v62, %v6056_v1 }
0x139b   : > { %v3956_v13 = vpop.f32.mrf.mxu0 }
0x139c   : > { %v3957_v2 = vadd.f32 %v6056_v1, %v3956_v13 }
0x139d   : > { %v6534_v50 = vpop.f32.mrf.mxu0 }
0x139e   : > { %v3968_v42 = vadd.f32 %v6534_v50, %v6056_v1 }
0x139f   : > { %v3959_v52 = vpop.f32.mrf.mxu0 }
0x13a0   : > { %v3960_v31 = vadd.f32 %v6056_v1, %v3959_v52  ;;  %v8090_v25 = vpack.c.bf16 %v3968_v42, %v3965_v9 }
0x13a1   : > { %v6537_v54 = vpop.f32.mrf.mxu0 }
0x13a2   : > { %v8078_v3 = vpack.c.bf16 %v3960_v31, %v3957_v2  ;;  %v3981_v6 = vadd.f32 %v6537_v54, %v6056_v1 }
0x13a3   : > { %v3972_v20 = vpop.f32.mrf.mxu0 }
0x13a4   : > { %6547 = vmatprep.mubr.msk.bf16.mxu1 %vm1441_vm1, %v8078_v3  ;;  %v3973_v23 = vadd.f32 %v6056_v1, %v3972_v20 }
0x13a5   : > { %v6538_v19 = vpop.f32.mrf.mxu0 }
0x13a6   : > { %v3984_v57 = vadd.f32 %v6538_v19, %v6056_v1 }
0x13a7   : > { %v3975_v58 = vpop.f32.mrf.mxu0 }
0x13a8   : > { %v8082_v32 = vpack.c.bf16 %v3984_v57, %v3981_v6  ;;  %v3976_v33 = vadd.f32 %v6056_v1, %v3975_v58 }
0x13aa   : > { %v8084_v61 = vpack.c.bf16 %v3976_v33, %v3973_v23  ;;  %4001 = vrot.lane.b32.xlu0 %v8082_v32, %s7197_s22 }
0x13ac   : > { %3999 = vrot.lane.b32.xlu1 %v8084_v61, %s7197_s22 }
0x13ae   : > { %3995 = vrot.lane.b32.xlu0 %v8078_v3, %s7197_s22 }
0x13b0   : > { %3997 = vrot.lane.b32.xlu1 %v8090_v25, %s7197_s22 }
0x141c   : > { %v4002_v10 = vpop.permute.xlu0 %4001 }
0x141d   : > { %v4025_v11 = vsel %vm1441_vm1, %v4002_v10, 0  ;;  %6707 = vmatprep.subr.msk.bf16.mxu1 %vm1441_vm1, %v4002_v10 }
0x141e   : > { %6540 = vmatpush3.bf16.xpose.msra.mxu1 %v4025_v11  ;;  %v4000_v15 = vpop.permute.xlu1 %3999 }
0x141f   : > { %6708 = vmatprep.subr.msk.bf16.mxu1 %vm1441_vm1, %v4000_v15  ;;  %v4022_v16 = vsel %vm1441_vm1, %v4000_v15, 0 }
0x1420   : > { %v3996_v4 = vpop.permute.xlu0 %3995 }
0x1421   : > { %v4016_v21 = vsel %vm1441_vm1, %v3996_v4, 0 }
0x1422   : > { %v3998_v17 = vpop.permute.xlu1 %3997 }
0x1423   : > { %v4019_v37 = vsel %vm1441_vm1, %v3998_v17, 0 }
0x1426   : > { %6542 = vmatpush3.bf16.xpose.msra.mxu1 %v4022_v16 }
0x1427   : > { %6709 = vmatprep.subr.msk.bf16.mxu1 %vm1441_vm1, %v3998_v17 }
0x142e   : > { %6544 = vmatpush3.bf16.xpose.msra.mxu1 %v4019_v37 }
0x142f   : > { %6710 = vmatprep.subr.msk.bf16.mxu1 %vm1441_vm1, %v3996_v4 }
0x1436   : > { %6546 = vmatpush3.bf16.xpose.msra.mxu1 %v4016_v21 }
0x1437   : > { %6583 = vmatprep.subr.mxu1 %v7195_v0 }
0x143d   : > { %6548 = vmatmul.mubr.msk.bf16.vlgmr.msra.gmra.mxu1 %vm1441_vm1, %v8090_v25 }
0x143e   : > { %6551 = vmatprep.mubr.msk.bf16.mxu1 %vm1441_vm1, %v8084_v61  ;;  %6584 = vmatpush3.msra.mxu1 %v8110_v7 }
0x143f   : > { %6585 = vmatprep.subr.mxu1 %v7195_v0 }
0x1440   : > { %6586 = vmatpush3.msra.mxu1 %v8115_v34 }
0x1441   : > { %6587 = vmatprep.subr.mxu1 %v7195_v0 }
0x1442   : > { %6588 = vmatpush3.msra.mxu1 %v8120_v22 }
0x1443   : > { %6589 = vmatprep.subr.mxu1 %v7195_v0 }
0x1444   : > { %6590 = vmatpush3.msra.mxu1 %v8125_v43 }
0x1445   : > { %6552 = vmatmul.mubr.msk.bf16.gmra.mxu1 %vm1441_vm1, %v8082_v32  ;;  %6594 = vmatprep.subr.mxu1 %v7195_v0 }
0x1446   : > { %6591 = vmatprep.mubr.msk.f32.mxu1 %vm7196_vm0, %v7195_v0 }
0x14fd   : > { %v6549_v44 = vpop.f32.mrf.mxu1 }
0x14fe   : > { %v4094_v39 = vmul.f32 0.17677669, %v6549_v44 }
0x14ff   : > { %v4061_v24 = vpop.f32.mrf.mxu1 }
0x1500   : > { %v4092_v8 = vmul.f32 0.17677669, %v4061_v24  ;;  %v4106_v47 = vsel %vm1919_vm4, %v4094_v39, -inf }
0x1501   : > { %v6550_v27 = vpop.f32.mrf.mxu1 }
0x1502   : > { %v4095_v45 = vmul.f32 0.17677669, %v6550_v27  ;;  %v4100_v14 = vsel %vm1919_vm4, %v4092_v8, -inf }
0x1503   : > { %4101 = vmax.xlane.f32.xlu1 %v4100_v14  ;;  %v4064_v35 = vpop.f32.mrf.mxu1 }
0x1504   : > { %v4093_v36 = vmul.f32 0.17677669, %v4064_v35  ;;  %v4109_v41 = vsel %vm1919_vm4, %v4095_v45, -inf }
0x1505   : > { %v6553_v51 = vpop.f32.mrf.mxu1 }
0x1506   : > { %v4103_v55 = vsel %vm1919_vm4, %v4093_v36, -inf  ;;  %v4098_v13 = vmul.f32 0.17677669, %v6553_v51 }
0x1507   : > { %4110 = vmax.xlane.f32.xlu1 %v4109_v41  ;;  %4104 = vmax.xlane.f32.xlu0 %v4103_v55  ;;  %v4077_v12 = vpop.f32.mrf.mxu1 }
0x1508   : > { %v4096_v46 = vmul.f32 0.17677669, %v4077_v12  ;;  %v4118_v2 = vsel %vm1919_vm4, %v4098_v13, -inf }
0x1509   : > { %v6554_v40 = vpop.f32.mrf.mxu1 }
0x150a   : > { %v4099_v50 = vmul.f32 0.17677669, %v6554_v40  ;;  %v4112_v1 = vsel %vm1919_vm4, %v4096_v46, -inf }
0x150b   : > { %4107 = vmax.xlane.f32.xlu0 %v4106_v47  ;;  %v4080_v48 = vpop.f32.mrf.mxu1 }
0x150c   : > { %v4097_v62 = vmul.f32 0.17677669, %v4080_v48  ;;  %v4121_v31 = vsel %vm1919_vm4, %v4099_v50, -inf }
0x150e   : > { %v4115_v52 = vsel %vm1919_vm4, %v4097_v62, -inf }
0x150f   : > { %4113 = vmax.xlane.f32.xlu0 %v4112_v1  ;;  %4116 = vmax.xlane.f32.xlu1 %v4115_v52 }
0x1513   : > { %4119 = vmax.xlane.f32.xlu0 %v4118_v2  ;;  %4122 = vmax.xlane.f32.xlu1 %v4121_v31 }
0x1524   : > { %4196 = vrot.lane.b32.xlu1 %v8084_v61, %s7198_s23 }
0x1529   : > { %4198 = vrot.lane.b32.xlu0 %v8082_v32, %s7198_s23 }
0x158c   : > { %v4102_v54 = vpop.xlane.xlu1 %4101 }
0x158d   : > { %v4124_v58 = vsub.f32 %v4092_v8, %v4102_v54 }
0x158f   : > { %v4132_v10 = vmul.f32 1.442695, %v4124_v58 }
0x1590   : > { %v4111_v20 = vpop.xlane.xlu1 %4110  ;;  %v4105_v19 = vpop.xlane.xlu0 %4104 }
0x1591   : > { %v4127_v6 = vsub.f32 %v4095_v45, %v4111_v20  ;;  %v4125_v57 = vsub.f32 %v4093_v36, %v4105_v19 }
0x1593   : > { %v4138_v23 = vmul.f32 1.442695, %v4127_v6  ;;  %v4134_v33 = vmul.f32 1.442695, %v4125_v57 }
0x1594   : > { %v4108_v42 = vpop.xlane.xlu0 %4107 }
0x1595   : > { %6943 = vpow2.f32 %v4138_v23  ;;  %v4126_v9 = vsub.f32 %v4094_v39, %v4108_v42 }
0x1596   : > { %6945 = vpow2.f32 %v4134_v33 }
0x1597   : > { %v4136_v11 = vmul.f32 1.442695, %v4126_v9 }
0x1598   : > { %v4114_v15 = vpop.xlane.xlu0 %4113  ;;  %v4117_v16 = vpop.xlane.xlu1 %4116 }
0x1599   : > { %6947 = vpow2.f32 %v4136_v11  ;;  %v4128_v61 = vsub.f32 %v4096_v46, %v4114_v15  ;;  %v4129_v32 = vsub.f32 %v4097_v62, %v4117_v16 }
0x159a   : > { %6949 = vpow2.f32 %v4132_v10 }
0x159b   : > { %v4140_v44 = vmul.f32 1.442695, %v4128_v61  ;;  %v4142_v27 = vmul.f32 1.442695, %v4129_v32 }
0x159c   : > { %v4120_v17 = vpop.xlane.xlu0 %4119  ;;  %v4123_v37 = vpop.xlane.xlu1 %4122 }
0x159d   : > { %v4130_v4 = vsub.f32 %v4098_v13, %v4120_v17  ;;  %v4131_v21 = vsub.f32 %v4099_v50, %v4123_v37 }
0x159f   : > { %v4144_v24 = vmul.f32 1.442695, %v4130_v4  ;;  %v4146_v8 = vmul.f32 1.442695, %v4131_v21 }
0x15a0   : > { %v4199_v45 = vpop.permute.xlu0 %4198  ;;  %v4197_v35 = vpop.permute.xlu1 %4196 }
0x15a1   : > { %6951 = vpow2.f32 %v4144_v24  ;;  %6555 = vmatprep.subr.bf16.mxu0 %v4199_v45 }
0x15a2   : > { %v6944_v14 = vpop.eup %6943  ;;  %6953 = vpow2.f32 %v4146_v8  ;;  %6556 = vmatpush3.bf16.msra.mxu0 %v4199_v45 }
0x15a3   : > { %6955 = vpow2.f32 %v4140_v44  ;;  %6557 = vmatprep.subr.bf16.mxu0 %v4197_v35  ;;  %v4157_v36 = vsel %vm1919_vm4, %v6944_v14, 0.0  ;;  %v6946_v51 = vpop.eup %6945 }
0x15a4   : > { %6957 = vpow2.f32 %v4142_v27  ;;  %4158 = vadd.xlane.f32.xlu1 %v4157_v36  ;;  %v4151_v55 = vsel %vm1919_vm4, %v6946_v51, 0.0 }
0x15a6   : > { %v6948_v39 = vpop.eup %6947  ;;  %6558 = vmatpush3.bf16.msra.mxu0 %v4197_v35 }
0x15a7   : > { %v4154_v41 = vsel %vm1919_vm4, %v6948_v39, 0.0  ;;  %v6950_v12 = vpop.eup %6949 }
0x15a8   : > { %4155 = vadd.xlane.f32.xlu0 %v4154_v41  ;;  %4152 = vadd.xlane.f32.xlu1 %v4151_v55  ;;  %v4148_v40 = vsel %vm1919_vm4, %v6950_v12, 0.0 }
0x15ac   : > { %4149 = vadd.xlane.f32.xlu0 %v4148_v40 }
0x15ae   : > { %v6952_v46 = vpop.eup %6951 }
0x15af   : > { %v6954_v47 = vpop.eup %6953  ;;  %v4166_v48 = vsel %vm1919_vm4, %v6952_v46, 0.0 }
0x15b0   : > { %v6956_v62 = vpop.eup %6955  ;;  %4167 = vadd.xlane.f32.xlu0 %v4166_v48  ;;  %v4169_v13 = vsel %vm1919_vm4, %v6954_v47, 0.0 }
0x15b1   : > { %v6958_v50 = vpop.eup %6957  ;;  %4170 = vadd.xlane.f32.xlu1 %v4169_v13  ;;  %v4160_v1 = vsel %vm1919_vm4, %v6956_v62, 0.0 }
0x15b2   : > { %v4163_v52 = vsel %vm1919_vm4, %v6958_v50, 0.0 }
0x15b4   : > { %4161 = vadd.xlane.f32.xlu0 %v4160_v1 }
0x15b5   : > { %4164 = vadd.xlane.f32.xlu1 %v4163_v52 }
0x15c6   : > { %4194 = vrot.lane.b32.xlu1 %v8090_v25, %s7198_s23 }
0x15ca   : > { %4192 = vrot.lane.b32.xlu0 %v8078_v3, %s7198_s23  ;;  %s8503_s23 = sld [smem:[#allocation25_spill]] }
0x15d0   : > { %v6822_v35 = vld [vmem:[%s8503_s23 + $0x8] sm:$0xff]   ;;  %v6823_v36 = vld [vmem:[%s8503_s23] sm:$0xff]  }
0x162d   : > { %v4159_v2 = vpop.xlane.xlu1 %4158 }
0x1631   : > { %v4156_v31 = vpop.xlane.xlu0 %4155  ;;  %v4153_v54 = vpop.xlane.xlu1 %4152 }
0x1632   : > { %6959 = vrcp.f32 %v4153_v54  ;;  %v6077_v54 = vld [vmem:[%s8504_s15] ss:$0 sm:$0xff]  ;;  %s8509_s15 = sld [smem:[#allocation30_spill]] }
0x1633   : > { %6961 = vrcp.f32 %v4156_v31 }
0x1635   : > { %v4150_v20 = vpop.xlane.xlu0 %4149 }
0x1636   : > { %6963 = vrcp.f32 %v4150_v20 }
0x1637   : > { %6965 = vrcp.f32 %v4159_v2 }
0x1639   : > { %v4168_v19 = vpop.xlane.xlu0 %4167 }
0x163a   : > { %v4171_v6 = vpop.xlane.xlu1 %4170  ;;  %6967 = vrcp.f32 %v4168_v19 }
0x163b   : > { %6969 = vrcp.f32 %v4171_v6 }
0x163d   : > { %v4162_v57 = vpop.xlane.xlu0 %4161 }
0x163e   : > { %6971 = vrcp.f32 %v4162_v57  ;;  %v4165_v58 = vpop.xlane.xlu1 %4164 }
0x163f   : > { %6973 = vrcp.f32 %v4165_v58  ;;  %v6960_v25 = vpop.eup %6959 }
0x1640   : > { %v6962_v23 = vpop.eup %6961  ;;  %v4181_v11 = vmul.f32 %v6960_v25, %v6946_v51 }
0x1641   : > { %v4193_v9 = vpop.permute.xlu0 %4192  ;;  %v4182_v15 = vmul.f32 %v6962_v23, %v6948_v39 }
0x1642   : > { %v4195_v33 = vpop.permute.xlu1 %4194 }
0x1643   : > { %v6964_v3 = vpop.eup %6963  ;;  %6559 = vmatprep.subr.bf16.mxu0 %v4195_v33 }
0x1644   : > { %v6966_v42 = vpop.eup %6965  ;;  %6560 = vmatpush3.bf16.msra.mxu0 %v4195_v33  ;;  %v4180_v10 = vmul.f32 %v6964_v3, %v6950_v12 }
0x1645   : > { %6561 = vmatprep.subr.bf16.mxu0 %v4193_v9  ;;  %v4183_v61 = vmul.f32 %v6966_v42, %v6944_v14 }
0x1646   : > { %v4188_v16 = vpack.c.bf16 %v4181_v11, %v4180_v10 }
0x1647   : > { %v6968_v32 = vpop.eup %6967  ;;  %v4189_v17 = vpack.c.bf16 %v4183_v61, %v4182_v15 }
0x1648   : > { %6562 = vmatpush3.bf16.msra.mxu0 %v4193_v9  ;;  %6563 = vmatprep.mubr.msk.bf16.mxu0 %vm1919_vm4, %v4188_v16  ;;  %v6970_v37 = vpop.eup %6969  ;;  %v4186_v8 = vmul.f32 %v6968_v32, %v6952_v46 }
0x1649   : > { %v4187_v27 = vmul.f32 %v6970_v37, %v6954_v47  ;;  %6571 = vmatprep.subr.bf16.mxu0 %v6822_v35 }
0x164b   : > { %v6972_v4 = vpop.eup %6971  ;;  %6564 = vmatmul.mubr.msk.bf16.vlgmr.msra.gmra.mxu0 %vm1919_vm4, %v4189_v17  ;;  %v4191_v14 = vpack.c.bf16 %v4187_v27, %v4186_v8 }
0x164c   : > { %v6974_v21 = vpop.eup %6973  ;;  %v4184_v44 = vmul.f32 %v6972_v4, %v6956_v62  ;;  %6572 = vmatpush3.bf16.msra.mxu0 %v6822_v35 }
0x164d   : > { %v4185_v24 = vmul.f32 %v6974_v21, %v6958_v50  ;;  %6573 = vmatprep.subr.bf16.mxu0 %v6823_v36 }
0x164f   : > { %v4190_v45 = vpack.c.bf16 %v4185_v24, %v4184_v44 }
0x1650   : > { %6574 = vmatpush3.bf16.msra.mxu0 %v6823_v36 }
0x1651   : > { %6567 = vmatprep.mubr.msk.bf16.mxu0 %vm1919_vm4, %v4190_v45 }
0x1653   : > { %6568 = vmatmul.mubr.msk.bf16.gmra.mxu0 %vm1919_vm4, %v4191_v14 }
0x170b   : > { %v6565_v51 = vpop.f32.mrf.mxu0 }
0x170d   : > { %v4250_v39 = vpop.f32.mrf.mxu0 }
0x170f   : > { %v6566_v41 = vpop.f32.mrf.mxu0 }
0x1710   : > { %v4282_v40 = vpack.c.bf16 %v6566_v41, %v6565_v51 }
0x1711   : > { %v4253_v55 = vpop.f32.mrf.mxu0 }
0x1712   : > { %v4281_v12 = vpack.c.bf16 %v4253_v55, %v4250_v39 }
0x1713   : > { %v6569_v46 = vpop.f32.mrf.mxu0 }
0x1714   : > { %6575 = vmatprep.mubr.msk.bf16.mxu0 %vm1441_vm1, %v4281_v12 }
0x1715   : > { %v4266_v47 = vpop.f32.mrf.mxu0  ;;  %6576 = vmatmul.mubr.msk.bf16.vlgmr.msra.gmra.mxu0 %vm1441_vm1, %v4282_v40 }
0x1717   : > { %v6570_v48 = vpop.f32.mrf.mxu0 }
0x1718   : > { %v4284_v50 = vpack.c.bf16 %v6570_v48, %v6569_v46 }
0x1719   : > { %v4269_v62 = vpop.f32.mrf.mxu0 }
0x171a   : > { %v4283_v13 = vpack.c.bf16 %v4269_v62, %v4266_v47 }
0x171c   : > { %6579 = vmatprep.mubr.msk.bf16.mxu0 %vm1441_vm1, %v4283_v13 }
0x171d   : > { %6580 = vmatmul.mubr.msk.bf16.gmra.mxu0 %vm1441_vm1, %v4284_v50 }
0x17d5   : > { %v6577_v1 = vpop.f32.mrf.mxu0 }
0x17d6   : > { %v4380_v2 = vadd.f32 %v6577_v1, %v7991_v29 }
0x17d7   : > { %v4347_v52 = vpop.f32.mrf.mxu0 }
0x17d8   : > { %v4378_v31 = vadd.f32 %v4347_v52, %v7988_v26  ;;  %v8173_v58 = vadd.f32 %v6077_v54, %v4380_v2 }
0x17d9   : > { %v6578_v20 = vpop.f32.mrf.mxu0 }
0x17da   : > { %v8170_v19 = vadd.f32 %v6077_v54, %v4378_v31  ;;  %v4381_v6 = vadd.f32 %v6578_v20, %v7996_v38  ;;  %v4426_v42 = vmul.f32 %v8173_v58, %v8173_v58  ;;  %v4406_v16 = vsel %vm1441_vm1, %v8173_v58, 0.0 }
0x17db   : > { %v4350_v57 = vpop.f32.mrf.mxu0 }
0x17dc   : > { %v4379_v25 = vadd.f32 %v4350_v57, %v7998_v53  ;;  %v4424_v33 = vmul.f32 %v8170_v19, %v8170_v19  ;;  %v8178_v3 = vadd.f32 %v6077_v54, %v4381_v6  ;;  %v4403_v38 = vsel %vm1441_vm1, %v8170_v19, 0.0 }
0x17dd   : > { %v6581_v23 = vpop.f32.mrf.mxu0  ;;  %v4435_v44 = vsel %vm1441_vm1, %v4426_v42, 0.0 }
0x17de   : > { %v8180_v29 = vadd.f32 %v6077_v54, %v4379_v25  ;;  %v4384_v11 = vadd.f32 %v6581_v23, %v8022_v63  ;;  %v4427_v17 = vmul.f32 %v8178_v3, %v8178_v3  ;;  %v4408_v8 = vsel %vm1441_vm1, %v8178_v3, 0.0 }
0x17df   : > { %v4363_v26 = vpop.f32.mrf.mxu0 }
0x17e0   : > { %v4382_v9 = vadd.f32 %v4363_v26, %v8012_v49  ;;  %v4404_v53 = vsel %vm1441_vm1, %v8180_v29, 0.0  ;;  %v4425_v10 = vmul.f32 %v8180_v29, %v8180_v29  ;;  %v4432_v49 = vsel %vm1441_vm1, %v4424_v33, 0.0 }
0x17e1   : > { %v6582_v15 = vpop.f32.mrf.mxu0  ;;  %v4405_v61 = vadd.f32 %v4404_v53, %v4403_v38  ;;  %v8204_v27 = vadd.f32 %v6077_v54, %v4384_v11  ;;  %v4437_v51 = vsel %vm1441_vm1, %v4427_v17, 0.0 }
0x17e2   : > { %v8194_v32 = vadd.f32 %v6077_v54, %v4382_v9  ;;  %v4433_v37 = vsel %vm1441_vm1, %v4425_v10, 0.0  ;;  %v4385_v4 = vadd.f32 %v6582_v15, %v8030_v59 }
0x17e3   : > { %v4366_v21 = vpop.f32.mrf.mxu0  ;;  %v4407_v63 = vadd.f32 %v4406_v16, %v4405_v61  ;;  %v4434_v24 = vadd.f32 %v4433_v37, %v4432_v49  ;;  %v4430_v40 = vmul.f32 %v8204_v27, %v8204_v27  ;;  %v4414_v13 = vsel %vm1441_vm1, %v8204_v27, 0.0 }
0x17e4   : > { %v4428_v45 = vmul.f32 %v8194_v32, %v8194_v32  ;;  %v4383_v14 = vadd.f32 %v4366_v21, %v8032_v60  ;;  %v4410_v59 = vsel %vm1441_vm1, %v8194_v32, 0.0  ;;  %v8212_v39 = vadd.f32 %v6077_v54, %v4385_v4  ;;  %v6824_v21 = vld [vmem:[%s8505_s18 + $0x8] sm:$0xff]  }
0x17e5   : > { %v4436_v35 = vadd.f32 %v4435_v44, %v4434_v24  ;;  %v4409_v36 = vadd.f32 %v4408_v8, %v4407_v63  ;;  %v4443_v31 = vsel %vm1441_vm1, %v4430_v40, 0.0  ;;  %v6825_v44 = vld [vmem:[%s8505_s18] sm:$0xff]   ;;  %6599 = vmatprep.subr.bf16.mxu0 %v6824_v21 }
0x17e6   : > { %v8214_v41 = vadd.f32 %v6077_v54, %v4383_v14  ;;  %v4439_v46 = vsel %vm1441_vm1, %v4428_v45, 0.0  ;;  %v4431_v50 = vmul.f32 %v8212_v39, %v8212_v39  ;;  %v4416_v54 = vsel %vm1441_vm1, %v8212_v39, 0.0  ;;  %6600 = vmatpush3.bf16.msra.mxu0 %v6824_v21 }
0x17e7   : > { %v4411_v55 = vadd.f32 %v4410_v59, %v4409_v36  ;;  %v4438_v12 = vadd.f32 %v4437_v51, %v4436_v35  ;;  %6601 = vmatprep.subr.bf16.mxu0 %v6825_v44 }
0x17e8   : > { %v4412_v60 = vsel %vm1441_vm1, %v8214_v41, 0.0  ;;  %v4429_v47 = vmul.f32 %v8214_v41, %v8214_v41  ;;  %v4445_v57 = vsel %vm1441_vm1, %v4431_v50, 0.0 }
0x17e9   : > { %v4440_v48 = vadd.f32 %v4439_v46, %v4438_v12  ;;  %v4413_v62 = vadd.f32 %v4412_v60, %v4411_v55  ;;  %v6080_v60 = vld [vmem:[%s8506_s28] ss:$0 sm:$0xff]  ;;  %s8510_s28 = sld [smem:[#allocation32_spill]] }
0x17ea   : > { %v4441_v1 = vsel %vm1441_vm1, %v4429_v47, 0.0  ;;  %6602 = vmatpush3.bf16.msra.mxu0 %v6825_v44 }
0x17eb   : > { %v4415_v52 = vadd.f32 %v4414_v13, %v4413_v62  ;;  %v4442_v2 = vadd.f32 %v4441_v1, %v4440_v48  ;;  %6635 = vmatprep.subr.mxu0 %v7195_v0 }
0x17ed   : > { %v4417_v20 = vadd.f32 %v4416_v54, %v4415_v52  ;;  %v4444_v6 = vadd.f32 %v4443_v31, %v4442_v2  ;;  %v6081_v52 = vld [vmem:[%s8507_s1] ss:$0 sm:$0xff]  ;;  %s8511_s1 = sld [smem:[#allocation35_spill]] }
0x17ef   : > { %v4418_v25 = vrot.slane %v4417_v20, 4  ;;  %v4446_v23 = vadd.f32 %v4445_v57, %v4444_v6 }
0x17f1   : > { %v4419_v33 = vadd.f32 %v4418_v25, %v4417_v20  ;;  %v4447_v26 = vrot.slane %v4446_v23, 4 }
0x17f3   : > { %v4420_v42 = vrot.slane %v4419_v33, 2  ;;  %v4448_v9 = vadd.f32 %v4447_v26, %v4446_v23 }
0x17f5   : > { %v4421_v38 = vadd.f32 %v4420_v42, %v4419_v33  ;;  %v4449_v53 = vrot.slane %v4448_v9, 2 }
0x17f7   : > { %v4422_v10 = vrot.slane %v4421_v38, 1  ;;  %v4450_v11 = vadd.f32 %v4449_v53, %v4448_v9 }
0x17f9   : > { %v4451_v15 = vrot.slane %v4450_v11, 1  ;;  %v4423_v16 = vadd.f32 %v4422_v10, %v4421_v38 }
0x17fb   : > { %v4452_v61 = vadd.f32 %v4451_v15, %v4450_v11 }
0x17fd   : > { %v4453_v49 = vsel %vm1492_vm2, %v4423_v16, %v4452_v61 }
0x17fe   : > { %6592 = vmatmul.mubr.msk.f32.vlgmr.msra.gmra.mxu1 %vm1441_vm1, %v4453_v49 }
0x17ff   : > { %6595 = vmatpush3.msra.mxu1 %v8053_v5  ;;  %6596 = vmatprep.mubr.msk.f32.mxu1 %vm7196_vm0, %v7195_v0 }
0x18be   : > { %v4523_v17 = vpop.f32.mrf.mxu1 }
0x18bf   : > { %v4527_v37 = vmul.f32 0.00390625, %v4523_v17 }
0x18c0   : > { %v6593_v4 = vpop.f32.mrf.mxu1 }
0x18c1   : > { %6597 = vmatmul.mubr.msk.f32.vlgmr.msra.gmra.mxu1 %vm1568_vm3, %v4527_v37 }
0x1981   : > { %v4597_v63 = vpop.f32.mrf.mxu1 }
0x1982   : > { %v4601_v24 = vmul.f32 %v4597_v63, %v4597_v63  ;;  %v4612_v36 = vrot.slane %v4597_v63, %v7593_v28 }
0x1983   : > { %v6598_v5 = vpop.f32.mrf.mxu1 }
0x1984   : > { %v4603_v8 = vrot.slane %v4601_v24, 7  ;;  %v4613_v59 = vsub.f32 %v8170_v19, %v4612_v36  ;;  %v4614_v12 = vsub.f32 %v8180_v29, %v4612_v36  ;;  %v4615_v40 = vsub.f32 %v8173_v58, %v4612_v36  ;;  %v6830_v24 = vld [vmem:[%s8508_s11 + $0x18] sm:$0xff]   ;;  %v6831_v5 = vld [vmem:[%s8508_s11 + $0x10] sm:$0xff]  }
0x1985   : > { %v4616_v46 = vsub.f32 %v8178_v3, %v4612_v36  ;;  %v4617_v47 = vsub.f32 %v8194_v32, %v4612_v36  ;;  %v4618_v48 = vsub.f32 %v8214_v41, %v4612_v36  ;;  %v4619_v54 = vsub.f32 %v8204_v27, %v4612_v36 }
0x1986   : > { %v4605_v45 = vsub.f32 %v4597_v63, %v4603_v8  ;;  %v4620_v20 = vsub.f32 %v8212_v39, %v4612_v36  ;;  %v6832_v8 = vld [vmem:[%s8508_s11 + $0x8] sm:$0xff]  }
0x1988   : > { %v4606_v14 = vmax.f32 %v4605_v45, 0.0  ;;  %v6833_v45 = vld [vmem:[%s8508_s11] sm:$0xff]  }
0x198a   : > { %v4607_v35 = vadd.f32 1e-05, %v4606_v14  ;;  %v6082_v14 = vld [vmem:[%s8509_s15] ss:$0 sm:$0xff]  ;;  %s8512_s15 = sld [smem:[#allocation33_spill]] }
0x198c   : > { %6975 = vrsqrt.f32 %v4607_v35 }
0x1999   : > { %v6976_v51 = vpop.eup %6975 }
0x199a   : > { %v4624_v55 = vrot.slane %v6976_v51, %v7596_v30 }
0x199c   : > { %v4625_v62 = vmul.f32 %v4624_v55, %v4613_v59  ;;  %v4626_v13 = vmul.f32 %v4624_v55, %v4614_v12  ;;  %v4627_v50 = vmul.f32 %v4624_v55, %v4615_v40  ;;  %v4628_v1 = vmul.f32 %v4624_v55, %v4616_v46 }
0x199d   : > { %v4629_v2 = vmul.f32 %v4624_v55, %v4617_v47  ;;  %v4630_v31 = vmul.f32 %v4624_v55, %v4618_v48  ;;  %v4631_v42 = vmul.f32 %v4624_v55, %v4619_v54  ;;  %v4632_v9 = vmul.f32 %v4624_v55, %v4620_v20 }
0x199e   : > { %v4639_v6 = vmul.f32 %v6080_v60, %v4625_v62  ;;  %v4640_v57 = vmul.f32 %v6080_v60, %v4626_v13  ;;  %v4641_v25 = vmul.f32 %v6080_v60, %v4627_v50  ;;  %v4642_v23 = vmul.f32 %v6080_v60, %v4628_v1 }
0x199f   : > { %v4643_v33 = vmul.f32 %v6080_v60, %v4629_v2  ;;  %v4644_v26 = vmul.f32 %v6080_v60, %v4630_v31  ;;  %v4645_v17 = vmul.f32 %v6080_v60, %v4631_v42  ;;  %v4646_v37 = vmul.f32 %v6080_v60, %v4632_v9 }
0x19a0   : > { %v4653_v38 = vadd.f32 %v6081_v52, %v4639_v6  ;;  %v4654_v53 = vadd.f32 %v6081_v52, %v4640_v57  ;;  %v4655_v10 = vadd.f32 %v6081_v52, %v4641_v25  ;;  %v4656_v11 = vadd.f32 %v6081_v52, %v4642_v23 }
0x19a1   : > { %v4657_v15 = vadd.f32 %v6081_v52, %v4643_v33  ;;  %v4658_v16 = vadd.f32 %v6081_v52, %v4644_v26  ;;  %v4659_v21 = vadd.f32 %v6081_v52, %v4645_v17  ;;  %v4660_v44 = vadd.f32 %v6081_v52, %v4646_v37 }
0x19a2   : > { %v4661_v61 = vpack.c.bf16 %v4654_v53, %v4653_v38  ;;  %v4662_v49 = vpack.c.bf16 %v4656_v11, %v4655_v10 }
0x19a3   : > { %v4663_v4 = vpack.c.bf16 %v4658_v16, %v4657_v15  ;;  %v4664_v63 = vpack.c.bf16 %v4660_v44, %v4659_v21 }
0x19a4   : > { %6603 = vmatprep.mubr.msk.bf16.mxu0 %vm1441_vm1, %v4661_v61 }
0x19a5   : > { %6604 = vmatmul.mubr.msk.bf16.vlgmr.msra.gmra.mxu0 %vm1441_vm1, %v4662_v49 }
0x19a6   : > { %6607 = vmatprep.mubr.msk.bf16.mxu0 %vm1441_vm1, %v4663_v4  ;;  %6636 = vmatpush3.msra.mxu0 %v8110_v7  ;;  %v6826_v7 = vld [vmem:[%s8508_s11 + $0x38] sm:$0xff]  }
0x19a7   : > { %6637 = vmatprep.subr.mxu0 %v7195_v0  ;;  %6611 = vmatprep.subr.bf16.mxu1 %v6826_v7 }
0x19a8   : > { %6638 = vmatpush3.msra.mxu0 %v8115_v34  ;;  %6612 = vmatpush3.bf16.msra.mxu1 %v6826_v7  ;;  %v6827_v34 = vld [vmem:[%s8508_s11 + $0x30] sm:$0xff]  }
0x19a9   : > { %6639 = vmatprep.subr.mxu0 %v7195_v0  ;;  %6613 = vmatprep.subr.bf16.mxu1 %v6827_v34 }
0x19aa   : > { %6640 = vmatpush3.msra.mxu0 %v8120_v22  ;;  %v6828_v22 = vld [vmem:[%s8508_s11 + $0x28] sm:$0xff]  }
0x19ab   : > { %6641 = vmatprep.subr.mxu0 %v7195_v0 }
0x19ac   : > { %6642 = vmatpush3.msra.mxu0 %v8125_v43  ;;  %6614 = vmatpush3.bf16.msra.mxu1 %v6827_v34  ;;  %v6829_v43 = vld [vmem:[%s8508_s11 + $0x20] sm:$0xff]  }
0x19ad   : > { %6608 = vmatmul.mubr.msk.bf16.gmra.mxu0 %vm1441_vm1, %v4664_v63  ;;  %6646 = vmatprep.subr.mxu0 %v7195_v0 }
0x19ae   : > { %6643 = vmatprep.mubr.msk.f32.mxu0 %vm7196_vm0, %v7195_v0  ;;  %6615 = vmatprep.subr.bf16.mxu1 %v6828_v22 }
0x19b0   : > { %6616 = vmatpush3.bf16.msra.mxu1 %v6828_v22 }
0x19b1   : > { %6617 = vmatprep.subr.bf16.mxu1 %v6829_v43 }
0x19b4   : > { %6618 = vmatpush3.bf16.msra.mxu1 %v6829_v43 }
0x19b5   : > { %6619 = vmatprep.subr.bf16.mxu1 %v6830_v24 }
0x19b8   : > { %6620 = vmatpush3.bf16.msra.mxu1 %v6830_v24 }
0x19b9   : > { %6621 = vmatprep.subr.bf16.mxu1 %v6831_v5 }
0x19bc   : > { %6622 = vmatpush3.bf16.msra.mxu1 %v6831_v5 }
0x19bd   : > { %6623 = vmatprep.subr.bf16.mxu1 %v6832_v8 }
0x19c0   : > { %6624 = vmatpush3.bf16.msra.mxu1 %v6832_v8 }
0x19c1   : > { %6625 = vmatprep.subr.bf16.mxu1 %v6833_v45 }
0x19c4   : > { %6626 = vmatpush3.bf16.msra.mxu1 %v6833_v45 }
0x1a65   : > { %v6605_v35 = vpop.f32.mrf.mxu0 }
0x1a66   : > { %v4743_v36 = vadd.f32 %v6605_v35, %v6082_v14 }
0x1a67   : > { %v4734_v51 = vpop.f32.mrf.mxu0 }
0x1a68   : > { %v6091_v59 = vmul.f32 -1.442695, %v4743_v36  ;;  %v4735_v55 = vadd.f32 %v6082_v14, %v4734_v51 }
0x1a69   : > { %v6606_v12 = vpop.f32.mrf.mxu0 }
0x1a6a   : > { %v6089_v40 = vmul.f32 -1.442695, %v4735_v55  ;;  %v4746_v46 = vadd.f32 %v6606_v12, %v6082_v14  ;;  %6977 = vpow2.f32 %v6091_v59 }
0x1a6b   : > { %v4737_v60 = vpop.f32.mrf.mxu0 }
0x1a6c   : > { %6979 = vpow2.f32 %v6089_v40  ;;  %v6092_v47 = vmul.f32 -1.442695, %v4746_v46  ;;  %v4738_v48 = vadd.f32 %v6082_v14, %v4737_v60 }
0x1a6d   : > { %v6609_v62 = vpop.f32.mrf.mxu0 }
0x1a6e   : > { %6981 = vpow2.f32 %v6092_v47  ;;  %v6090_v13 = vmul.f32 -1.442695, %v4738_v48  ;;  %v4759_v50 = vadd.f32 %v6609_v62, %v6082_v14 }
0x1a6f   : > { %v4750_v1 = vpop.f32.mrf.mxu0 }
0x1a70   : > { %6983 = vpow2.f32 %v6090_v13  ;;  %v6095_v52 = vmul.f32 -1.442695, %v4759_v50  ;;  %v4751_v2 = vadd.f32 %v6082_v14, %v4750_v1  ;;  %v6105_v1 = vld [vmem:[%s8510_s28] ss:$0 sm:$0xff]  ;;  %s8513_s28 = sld [smem:[#allocation34_spill]] }
0x1a71   : > { %v6610_v31 = vpop.f32.mrf.mxu0 }
0x1a72   : > { %v6093_v54 = vmul.f32 -1.442695, %v4751_v2  ;;  %v4762_v20 = vadd.f32 %v6610_v31, %v6082_v14  ;;  %6985 = vpow2.f32 %v6095_v52 }
0x1a73   : > { %v4753_v6 = vpop.f32.mrf.mxu0 }
0x1a74   : > { %6987 = vpow2.f32 %v6093_v54  ;;  %v6096_v57 = vmul.f32 -1.442695, %v4762_v20  ;;  %v4754_v25 = vadd.f32 %v6082_v14, %v4753_v6 }
0x1a76   : > { %6989 = vpow2.f32 %v6096_v57  ;;  %v6094_v23 = vmul.f32 -1.442695, %v4754_v25 }
0x1a77   : > { %v6978_v33 = vpop.eup %6977 }
0x1a78   : > { %6991 = vpow2.f32 %v6094_v23  ;;  %v4791_v38 = vadd.f32 1.0, %v6978_v33 }
0x1a79   : > { %v6980_v26 = vpop.eup %6979 }
0x1a7a   : > { %v4789_v42 = vadd.f32 1.0, %v6980_v26 }
0x1a7b   : > { %v6982_v9 = vpop.eup %6981 }
0x1a7c   : > { %v4792_v53 = vadd.f32 1.0, %v6982_v9  ;;  %6993 = vrcp.f32 %v4789_v42 }
0x1a7d   : > { %v6984_v10 = vpop.eup %6983 }
0x1a7e   : > { %6995 = vrcp.f32 %v4792_v53  ;;  %v4790_v11 = vadd.f32 1.0, %v6984_v10 }
0x1a7f   : > { %6997 = vrcp.f32 %v4791_v38  ;;  %v6986_v15 = vpop.eup %6985 }
0x1a80   : > { %6999 = vrcp.f32 %v4790_v11  ;;  %v4795_v17 = vadd.f32 1.0, %v6986_v15 }
0x1a81   : > { %v6988_v16 = vpop.eup %6987 }
0x1a82   : > { %v4793_v61 = vadd.f32 1.0, %v6988_v16 }
0x1a83   : > { %v6990_v49 = vpop.eup %6989 }
0x1a84   : > { %v4796_v37 = vadd.f32 1.0, %v6990_v49  ;;  %7001 = vrcp.f32 %v4793_v61 }
0x1a85   : > { %v6992_v4 = vpop.eup %6991 }
0x1a86   : > { %7003 = vrcp.f32 %v4796_v37  ;;  %v4794_v21 = vadd.f32 1.0, %v6992_v4 }
0x1a87   : > { %7005 = vrcp.f32 %v4795_v17 }
0x1a88   : > { %7007 = vrcp.f32 %v4794_v21 }
0x1a89   : > { %v6994_v44 = vpop.eup %6993 }
0x1a8a   : > { %v4813_v43 = vmul.f32 %v6994_v44, %v4735_v55 }
0x1a8b   : > { %v6996_v63 = vpop.eup %6995 }
0x1a8c   : > { %v6998_v7 = vpop.eup %6997  ;;  %v4816_v22 = vmul.f32 %v6996_v63, %v4746_v46 }
0x1a8d   : > { %v7000_v34 = vpop.eup %6999  ;;  %v4815_v5 = vmul.f32 %v6998_v7, %v4743_v36 }
0x1a8e   : > { %v4814_v24 = vmul.f32 %v7000_v34, %v4738_v48 }
0x1a8f   : > { %v4822_v45 = vpack.c.bf16 %v4816_v22, %v4815_v5 }
0x1a90   : > { %v4821_v8 = vpack.c.bf16 %v4814_v24, %v4813_v43 }
0x1a91   : > { %v7002_v14 = vpop.eup %7001 }
0x1a92   : > { %6627 = vmatprep.mubr.bf16.mxu1 %v4821_v8  ;;  %v4817_v40 = vmul.f32 %v7002_v14, %v4751_v2 }
0x1a93   : > { %v7004_v35 = vpop.eup %7003  ;;  %6628 = vmatmul.mubr.bf16.vlgmr.msra.gmra.mxu1 %v4822_v45 }
0x1a94   : > { %v7006_v51 = vpop.eup %7005  ;;  %v4820_v12 = vmul.f32 %v7004_v35, %v4762_v20 }
0x1a95   : > { %v7008_v59 = vpop.eup %7007  ;;  %v4819_v47 = vmul.f32 %v7006_v51, %v4759_v50 }
0x1a96   : > { %v4818_v60 = vmul.f32 %v7008_v59, %v4754_v25 }
0x1a97   : > { %v4824_v13 = vpack.c.bf16 %v4820_v12, %v4819_v47 }
0x1a98   : > { %v4823_v62 = vpack.c.bf16 %v4818_v60, %v4817_v40 }
0x1a9a   : > { %6631 = vmatprep.mubr.bf16.mxu1 %v4823_v62 }
0x1a9b   : > { %6632 = vmatmul.mubr.bf16.gmra.mxu1 %v4824_v13 }
0x1b53   : > { %v6629_v55 = vpop.f32.mrf.mxu1 }
0x1b54   : > { %v4956_v36 = vadd.f32 %v6629_v55, %v8173_v58 }
0x1b55   : > { %v4923_v46 = vpop.f32.mrf.mxu1 }
0x1b56   : > { %v4954_v48 = vadd.f32 %v4923_v46, %v8170_v19  ;;  %v8282_v2 = vadd.f32 %v6105_v1, %v4956_v36 }
0x1b57   : > { %v6630_v52 = vpop.f32.mrf.mxu1 }
0x1b58   : > { %v8279_v31 = vadd.f32 %v6105_v1, %v4954_v48  ;;  %v4957_v54 = vadd.f32 %v6630_v52, %v8178_v3  ;;  %v5002_v23 = vmul.f32 %v8282_v2, %v8282_v2  ;;  %v4982_v38 = vsel %vm1441_vm1, %v8282_v2, 0.0 }
0x1b59   : > { %v4926_v20 = vpop.f32.mrf.mxu1 }
0x1b5a   : > { %v4955_v50 = vadd.f32 %v4926_v20, %v8180_v29  ;;  %v5000_v57 = vmul.f32 %v8279_v31, %v8279_v31  ;;  %v8287_v25 = vadd.f32 %v6105_v1, %v4957_v54  ;;  %v4979_v3 = vsel %vm1441_vm1, %v8279_v31, 0.0 }
0x1b5b   : > { %v6633_v6 = vpop.f32.mrf.mxu1  ;;  %v5011_v49 = vsel %vm1441_vm1, %v5002_v23, 0.0 }
0x1b5c   : > { %v8289_v58 = vadd.f32 %v6105_v1, %v4955_v50  ;;  %v4960_v42 = vadd.f32 %v6633_v6, %v8204_v27  ;;  %v5003_v11 = vmul.f32 %v8287_v25, %v8287_v25  ;;  %v4984_v37 = vsel %vm1441_vm1, %v8287_v25, 0.0 }
0x1b5d   : > { %v4939_v19 = vpop.f32.mrf.mxu1 }
0x1b5e   : > { %v4958_v33 = vadd.f32 %v4939_v19, %v8194_v32  ;;  %v4980_v29 = vsel %vm1441_vm1, %v8289_v58, 0.0  ;;  %v5001_v26 = vmul.f32 %v8289_v58, %v8289_v58  ;;  %v5008_v32 = vsel %vm1441_vm1, %v5000_v57, 0.0 }
0x1b5f   : > { %v6634_v9 = vpop.f32.mrf.mxu1  ;;  %v4981_v53 = vadd.f32 %v4980_v29, %v4979_v3  ;;  %v8313_v4 = vadd.f32 %v6105_v1, %v4960_v42  ;;  %v5013_v34 = vsel %vm1441_vm1, %v5003_v11, 0.0  ;;  %v7052_v42 = vld [vmem:[%s7227_s21] sm:$0xff] }
0x1b60   : > { %v8303_v10 = vadd.f32 %v6105_v1, %v4958_v33  ;;  %v5009_v15 = vsel %vm1441_vm1, %v5001_v26, 0.0  ;;  %v4961_v16 = vadd.f32 %v6634_v9, %v8212_v39  ;;  %v6835_v11 = vld [vmem:[%s8511_s1] sm:$0xff]  }
0x1b61   : > { %v4942_v61 = vpop.f32.mrf.mxu1  ;;  %v4983_v27 = vadd.f32 %v4982_v38, %v4981_v53  ;;  %v5010_v17 = vadd.f32 %v5009_v15, %v5008_v32  ;;  %v5006_v8 = vmul.f32 %v8313_v4, %v8313_v4  ;;  %v4990_v59 = vsel %vm1441_vm1, %v8313_v4, 0.0  ;;  %v6834_v32 = vld [vmem:[%s8511_s1 + $0x8] sm:$0xff]  }
0x1b62   : > { %v5004_v21 = vmul.f32 %v8303_v10, %v8303_v10  ;;  %v4959_v44 = vadd.f32 %v4942_v61, %v8214_v41  ;;  %v4986_v39 = vsel %vm1441_vm1, %v8303_v10, 0.0  ;;  %v8321_v22 = vadd.f32 %v6105_v1, %v4961_v16 }
0x1b63   : > { %v5012_v63 = vadd.f32 %v5011_v49, %v5010_v17  ;;  %v4985_v7 = vadd.f32 %v4984_v37, %v4983_v27  ;;  %v5019_v62 = vsel %vm1441_vm1, %v5006_v8, 0.0 }
0x1b64   : > { %v8323_v43 = vadd.f32 %v6105_v1, %v4959_v44  ;;  %v5015_v45 = vsel %vm1441_vm1, %v5004_v21, 0.0  ;;  %v5007_v12 = vmul.f32 %v8321_v22, %v8321_v22  ;;  %v4992_v13 = vsel %vm1441_vm1, %v8321_v22, 0.0 }
0x1b65   : > { %v4987_v24 = vadd.f32 %v4986_v39, %v4985_v7  ;;  %v5014_v5 = vadd.f32 %v5013_v34, %v5012_v63 }
0x1b66   : > { %v4988_v41 = vsel %vm1441_vm1, %v8323_v43, 0.0  ;;  %v5005_v14 = vmul.f32 %v8323_v43, %v8323_v43  ;;  %v5021_v36 = vsel %vm1441_vm1, %v5007_v12, 0.0 }
0x1b67   : > { %v5016_v35 = vadd.f32 %v5015_v45, %v5014_v5  ;;  %v4989_v51 = vadd.f32 %v4988_v41, %v4987_v24  ;;  %v6108_v5 = vld [vmem:[%s8512_s15] ss:$0 sm:$0xff] }
0x1b68   : > { %v5017_v40 = vsel %vm1441_vm1, %v5005_v14, 0.0 }
0x1b69   : > { %v4991_v60 = vadd.f32 %v4990_v59, %v4989_v51  ;;  %v5018_v47 = vadd.f32 %v5017_v40, %v5016_v35  ;;  %v6109_v51 = vld [vmem:[%s8513_s28] ss:$0 sm:$0xff] }
0x1b6b   : > { %v4993_v55 = vadd.f32 %v4992_v13, %v4991_v60  ;;  %v5020_v46 = vadd.f32 %v5019_v62, %v5018_v47 }
0x1b6d   : > { %v4994_v48 = vrot.slane %v4993_v55, 4  ;;  %v5022_v1 = vadd.f32 %v5021_v36, %v5020_v46 }
0x1b6f   : > { %v4995_v52 = vadd.f32 %v4994_v48, %v4993_v55  ;;  %v5023_v54 = vrot.slane %v5022_v1, 4 }
0x1b71   : > { %v4996_v20 = vrot.slane %v4995_v52, 2  ;;  %v5024_v50 = vadd.f32 %v5023_v54, %v5022_v1 }
0x1b73   : > { %v4997_v6 = vadd.f32 %v4996_v20, %v4995_v52  ;;  %v5025_v57 = vrot.slane %v5024_v50, 2 }
0x1b75   : > { %v4998_v19 = vrot.slane %v4997_v6, 1  ;;  %v5026_v23 = vadd.f32 %v5025_v57, %v5024_v50 }
0x1b77   : > { %v5027_v33 = vrot.slane %v5026_v23, 1  ;;  %v4999_v3 = vadd.f32 %v4998_v19, %v4997_v6 }
0x1b79   : > { %v5028_v29 = vadd.f32 %v5027_v33, %v5026_v23  ;;  %v6836_v23 = vld [vmem:[%s8514_s0] sm:$0xff]   ;;  %s8515_s0 = sshll.u32 %s8517_s10, 6 }
0x1b7b   : > { %v5029_v26 = vsel %vm1492_vm2, %v4999_v3, %v5028_v29 }
0x1b7c   : > { %6644 = vmatmul.mubr.msk.f32.vlgmr.msra.gmra.mxu0 %vm1441_vm1, %v5029_v26 }
0x1b7d   : > { %6647 = vmatpush3.msra.mxu0 %v7052_v42  ;;  %6648 = vmatprep.mubr.msk.f32.mxu0 %vm7196_vm0, %v7195_v0 }
0x1b7e   : > { %6651 = vmatprep.subr.bf16.mxu0 %v6834_v32 }
0x1c3c   : > { %v5099_v9 = vpop.f32.mrf.mxu0 }
0x1c3d   : > { %v5103_v38 = vmul.f32 0.00390625, %v5099_v9 }
0x1c3e   : > { %v6645_v53 = vpop.f32.mrf.mxu0 }
0x1c3f   : > { %6649 = vmatmul.mubr.msk.f32.vlgmr.msra.gmra.mxu0 %vm1568_vm3, %v5103_v38 }
0x1c40   : > { %6652 = vmatpush3.bf16.msra.mxu0 %v6834_v32 }
0x1c41   : > { %6653 = vmatprep.subr.bf16.mxu0 %v6835_v11 }
0x1c44   : > { %6654 = vmatpush3.bf16.msra.mxu0 %v6835_v11  ;;  %v6110_v11 = vld [vmem:[#allocation2] ss:$0 sm:$0xff] }
0x1c45   : > { %6663 = vmatprep.subr.bf16.mxu0 %v7195_v0 }
0x1cff   : > { %v5173_v15 = vpop.f32.mrf.mxu0 }
0x1d00   : > { %v5177_v16 = vmul.f32 %v5173_v15, %v5173_v15  ;;  %v5188_v21 = vrot.slane %v5173_v15, %v7593_v28 }
0x1d01   : > { %v6650_v61 = vpop.f32.mrf.mxu0 }
0x1d02   : > { %v5179_v49 = vrot.slane %v5177_v16, 7  ;;  %v5189_v63 = vsub.f32 %v8279_v31, %v5188_v21  ;;  %v5190_v34 = vsub.f32 %v8289_v58, %v5188_v21  ;;  %v5191_v39 = vsub.f32 %v8282_v2, %v5188_v21 }
0x1d03   : > { %v5192_v24 = vsub.f32 %v8287_v25, %v5188_v21  ;;  %v5193_v8 = vsub.f32 %v8303_v10, %v5188_v21  ;;  %v5194_v45 = vsub.f32 %v8323_v43, %v5188_v21  ;;  %v5196_v40 = vsub.f32 %v8321_v22, %v5188_v21 }
0x1d04   : > { %v5181_v27 = vsub.f32 %v5173_v15, %v5179_v49 }
0x1d06   : > { %v5182_v17 = vmax.f32 %v5181_v27, 0.0 }
0x1d08   : > { %v5183_v37 = vadd.f32 1e-05, %v5182_v17 }
0x1d0a   : > { %7009 = vrsqrt.f32 %v5183_v37 }
0x1d17   : > { %v7010_v44 = vpop.eup %7009 }
0x1d18   : > { %v5200_v7 = vrot.slane %v7010_v44, %v7596_v30  ;;  %v5195_v30 = vsub.f32 %v8313_v4, %v5188_v21  ;;  %v6117_v44 = vld [vmem:[#allocation4] ss:$0 sm:$0xff] }
0x1d1a   : > { %v5201_v41 = vmul.f32 %v5200_v7, %v5189_v63  ;;  %v5202_v14 = vmul.f32 %v5200_v7, %v5190_v34  ;;  %v5203_v35 = vmul.f32 %v5200_v7, %v5191_v39  ;;  %v5204_v28 = vmul.f32 %v5200_v7, %v5192_v24 }
0x1d1b   : > { %v5205_v59 = vmul.f32 %v5200_v7, %v5193_v8  ;;  %v5206_v12 = vmul.f32 %v5200_v7, %v5194_v45  ;;  %v5207_v36 = vmul.f32 %v5200_v7, %v5195_v30  ;;  %v5208_v48 = vmul.f32 %v5200_v7, %v5196_v40 }
0x1d1c   : > { %v5215_v60 = vmul.f32 %v6108_v5, %v5201_v41  ;;  %v5216_v47 = vmul.f32 %v6108_v5, %v5202_v14  ;;  %v5217_v62 = vmul.f32 %v6108_v5, %v5203_v35  ;;  %v5218_v13 = vmul.f32 %v6108_v5, %v5204_v28 }
0x1d1d   : > { %v5219_v55 = vmul.f32 %v6108_v5, %v5205_v59  ;;  %v5220_v46 = vmul.f32 %v6108_v5, %v5206_v12  ;;  %v5221_v33 = vmul.f32 %v6108_v5, %v5207_v36  ;;  %v5222_v3 = vmul.f32 %v6108_v5, %v5208_v48 }
0x1d1e   : > { %v5229_v1 = vadd.f32 %v6109_v51, %v5215_v60  ;;  %v5230_v52 = vadd.f32 %v6109_v51, %v5216_v47  ;;  %v5231_v54 = vadd.f32 %v6109_v51, %v5217_v62  ;;  %v5232_v20 = vadd.f32 %v6109_v51, %v5218_v13 }
0x1d1f   : > { %v5233_v50 = vadd.f32 %v6109_v51, %v5219_v55  ;;  %v5234_v6 = vadd.f32 %v6109_v51, %v5220_v46  ;;  %v5235_v26 = vadd.f32 %v6109_v51, %v5221_v33  ;;  %v5236_v42 = vadd.f32 %v6109_v51, %v5222_v3 }
0x1d20   : > { %v5237_v57 = vpack.c.bf16 %v5230_v52, %v5229_v1  ;;  %v5238_v19 = vpack.c.bf16 %v5232_v20, %v5231_v54 }
0x1d21   : > { %v5239_v29 = vpack.c.bf16 %v5234_v6, %v5233_v50  ;;  %v5240_v9 = vpack.c.bf16 %v5236_v42, %v5235_v26 }
0x1d22   : > { %6655 = vmatprep.mubr.msk.bf16.mxu0 %vm1441_vm1, %v5237_v57 }
0x1d23   : > { %6656 = vmatmul.mubr.msk.bf16.vlgmr.msra.gmra.mxu0 %vm1441_vm1, %v5238_v19 }
0x1d24   : > { %6659 = vmatprep.mubr.msk.bf16.mxu0 %vm1441_vm1, %v5239_v29  ;;  %6664 = vmatpush3.bf16.msra.mxu0 %v6836_v23 }
0x1d2b   : > { %6660 = vmatmul.mubr.msk.bf16.gmra.mxu0 %vm1441_vm1, %v5240_v9 }
0x1d2c   : > { %6665 = vmatprep.mubr.msk.bf16.mxu0 %vm7196_vm0, %v7195_v0 }
0x1d33   : > { %6666 = vmatmul.mubr.msk.bf16.vlgmr.msra.gmra.mxu0 %vm3176_vm5, %v7899_v18 }
0x1de3   : > { %v6657_v38 = vpop.f32.mrf.mxu0 }
0x1de4   : > { %v5319_v45 = vadd.f32 %v6657_v38, %v6110_v11 }
0x1de5   : > { %v5310_v53 = vpop.f32.mrf.mxu0 }
0x1de6   : > { %v5311_v16 = vadd.f32 %v6110_v11, %v5310_v53 }
0x1de7   : > { %v6658_v32 = vpop.f32.mrf.mxu0 }
0x1de8   : > { %v5322_v5 = vadd.f32 %v6658_v32, %v6110_v11 }
0x1de9   : > { %v5313_v15 = vpop.f32.mrf.mxu0 }
0x1dea   : > { %v5314_v61 = vadd.f32 %v6110_v11, %v5313_v15  ;;  %v5397_v14 = vpack.c.bf16 %v5322_v5, %v5319_v45 }
0x1deb   : > { %v6661_v49 = vpop.f32.mrf.mxu0 }
0x1dec   : > { %v5396_v27 = vpack.c.bf16 %v5314_v61, %v5311_v16  ;;  %v5335_v51 = vadd.f32 %v6661_v49, %v6110_v11 }
0x1ded   : > { %v5326_v17 = vpop.f32.mrf.mxu0 }
0x1dee   : > { %6671 = vmatprep.mubr.msk.bf16.mxu1 %vm1441_vm1, %v5396_v27  ;;  %v5327_v41 = vadd.f32 %v6110_v11, %v5326_v17 }
0x1def   : > { %v6662_v37 = vpop.f32.mrf.mxu0 }
0x1df0   : > { %v5338_v28 = vadd.f32 %v6662_v37, %v6110_v11 }
0x1df1   : > { %v5329_v21 = vpop.f32.mrf.mxu0 }
0x1df2   : > { %v5330_v8 = vadd.f32 %v6110_v11, %v5329_v21  ;;  %v5399_v59 = vpack.c.bf16 %v5338_v28, %v5335_v51 }
0x1df3   : > { %v5390_v63 = vpop.f32.mrf.mxu0 }
0x1df4   : > { %v5391_v0 = vadd.f32 %v6117_v44, %v5390_v63  ;;  %v5398_v35 = vpack.c.bf16 %v5330_v8, %v5327_v41 }
0x1df5   : > { %v6667_v7 = vpop.f32.mrf.mxu0 }
0x1df6   : > { %v8372_v34 = vpack.c.bf16 %v5391_v0, %v5391_v0 }
0x1df7   : > { %v5393_v18 = vpop.f32.mrf.mxu0 }
0x1df8   : > { %6711 = vmatprep.subr.msk.bf16.mxu1 %vm1441_vm1, %v8372_v34  ;;  %v5414_v39 = vsel %vm1441_vm1, %v8372_v34, 0 }
0x1df9   : > { %v6668_v24 = vpop.f32.mrf.mxu0  ;;  %6670 = vmatpush3.bf16.xpose.msra.mxu1 %v5414_v39 }
0x1e00   : > { %6672 = vmatmul.mubr.msk.bf16.vlgmr.msra.gmra.mxu1 %vm1441_vm1, %v5397_v14 }
0x1e01   : > { %6675 = vmatprep.mubr.msk.bf16.mxu1 %vm1441_vm1, %v5398_v35 }
0x1e08   : > { %6676 = vmatmul.mubr.msk.bf16.gmra.mxu1 %vm1441_vm1, %v5399_v59 }
0x1ec0   : > { %v6673_v12 = vpop.f32.mrf.mxu1 }
0x1ec1   : > { %v5483_v13 = vmul.f32 0.17677669, %v6673_v12 }
0x1ec2   : > { %v5450_v30 = vpop.f32.mrf.mxu1 }
0x1ec3   : > { %v5481_v40 = vmul.f32 0.17677669, %v5450_v30  ;;  %v5491_v20 = vadd.f32 %v5483_v13, %v7934_v56 }
0x1ec4   : > { %v6674_v60 = vpop.f32.mrf.mxu1 }
0x1ec5   : > { %v5484_v47 = vmul.f32 0.17677669, %v6674_v60  ;;  %v5489_v62 = vadd.f32 %v5481_v40, %v7934_v56  ;;  %v5503_v33 = vsel %vm1568_vm3, %v5491_v20, -inf }
0x1ec6   : > { %v5453_v55 = vpop.f32.mrf.mxu1 }
0x1ec7   : > { %v5482_v46 = vmul.f32 0.17677669, %v5453_v55  ;;  %v5497_v36 = vsel %vm1568_vm3, %v5489_v62, -inf  ;;  %v5492_v48 = vadd.f32 %v5484_v47, %v7934_v56 }
0x1ec8   : > { %5498 = vmax.xlane.f32.xlu1 %v5497_v36  ;;  %v6677_v1 = vpop.f32.mrf.mxu1 }
0x1ec9   : > { %v5490_v52 = vadd.f32 %v5482_v46, %v7934_v56  ;;  %v5506_v6 = vsel %vm1568_vm3, %v5492_v48, -inf  ;;  %v5487_v3 = vmul.f32 0.17677669, %v6677_v1 }
0x1eca   : > { %v5466_v54 = vpop.f32.mrf.mxu1 }
0x1ecb   : > { %v5485_v50 = vmul.f32 0.17677669, %v5466_v54  ;;  %v5500_v57 = vsel %vm1568_vm3, %v5490_v52, -inf  ;;  %v5495_v32 = vadd.f32 %v5487_v3, %v7934_v56 }
0x1ecc   : > { %5507 = vmax.xlane.f32.xlu1 %v5506_v6  ;;  %5501 = vmax.xlane.f32.xlu0 %v5500_v57  ;;  %v6678_v19 = vpop.f32.mrf.mxu1 }
0x1ecd   : > { %v5488_v29 = vmul.f32 0.17677669, %v6678_v19  ;;  %v5493_v42 = vadd.f32 %v5485_v50, %v7934_v56  ;;  %v5515_v15 = vsel %vm1568_vm3, %v5495_v32, -inf }
0x1ece   : > { %v5469_v23 = vpop.f32.mrf.mxu1 }
0x1ecf   : > { %v5486_v26 = vmul.f32 0.17677669, %v5469_v23  ;;  %v5509_v38 = vsel %vm1568_vm3, %v5493_v42, -inf  ;;  %v5496_v11 = vadd.f32 %v5488_v29, %v7934_v56 }
0x1ed0   : > { %5504 = vmax.xlane.f32.xlu0 %v5503_v33 }
0x1ed1   : > { %v5494_v9 = vadd.f32 %v5486_v26, %v7934_v56  ;;  %v5518_v16 = vsel %vm1568_vm3, %v5496_v11, -inf }
0x1ed3   : > { %v5512_v53 = vsel %vm1568_vm3, %v5494_v9, -inf }
0x1ed4   : > { %5510 = vmax.xlane.f32.xlu0 %v5509_v38  ;;  %5513 = vmax.xlane.f32.xlu1 %v5512_v53 }
0x1ed8   : > { %5516 = vmax.xlane.f32.xlu0 %v5515_v15  ;;  %5519 = vmax.xlane.f32.xlu1 %v5518_v16 }
0x1f51   : > { %v5499_v61 = vpop.xlane.xlu1 %5498 }
0x1f52   : > { %v5521_v21 = vsub.f32 %v5489_v62, %v5499_v61 }
0x1f54   : > { %v5529_v56 = vmul.f32 1.442695, %v5521_v21 }
0x1f55   : > { %v5508_v49 = vpop.xlane.xlu1 %5507  ;;  %v5502_v27 = vpop.xlane.xlu0 %5501 }
0x1f56   : > { %v5524_v17 = vsub.f32 %v5492_v48, %v5508_v49  ;;  %v5522_v37 = vsub.f32 %v5490_v52, %v5502_v27 }
0x1f58   : > { %v5531_v44 = vmul.f32 1.442695, %v5522_v37  ;;  %v5535_v63 = vmul.f32 1.442695, %v5524_v17 }
0x1f59   : > { %v5505_v0 = vpop.xlane.xlu0 %5504 }
0x1f5a   : > { %v5523_v7 = vsub.f32 %v5491_v20, %v5505_v0  ;;  %7011 = vpow2.f32 %v5531_v44 }
0x1f5b   : > { %7013 = vpow2.f32 %v5535_v63 }
0x1f5c   : > { %v5533_v18 = vmul.f32 1.442695, %v5523_v7 }
0x1f5d   : > { %v5511_v39 = vpop.xlane.xlu0 %5510  ;;  %v5514_v24 = vpop.xlane.xlu1 %5513 }
0x1f5e   : > { %7015 = vpow2.f32 %v5533_v18  ;;  %v5526_v5 = vsub.f32 %v5494_v9, %v5514_v24  ;;  %v5525_v8 = vsub.f32 %v5493_v42, %v5511_v39 }
0x1f5f   : > { %7017 = vpow2.f32 %v5529_v56 }
0x1f60   : > { %v5539_v45 = vmul.f32 1.442695, %v5526_v5  ;;  %v5537_v51 = vmul.f32 1.442695, %v5525_v8  ;;  %v6837_v5 = vld [vmem:[%s7422_s9 + $0x8] sm:$0xff]   ;;  %v6838_v8 = vld [vmem:[%s7422_s9] sm:$0xff]  }
0x1f61   : > { %v5517_v41 = vpop.xlane.xlu0 %5516  ;;  %v5520_v14 = vpop.xlane.xlu1 %5519  ;;  %6689 = vmatprep.subr.bf16.mxu1 %v6837_v5 }
0x1f62   : > { %v5527_v35 = vsub.f32 %v5495_v32, %v5517_v41  ;;  %v5528_v28 = vsub.f32 %v5496_v11, %v5520_v14  ;;  %7019 = vpow2.f32 %v5539_v45  ;;  %6690 = vmatpush3.bf16.msra.mxu1 %v6837_v5 }
0x1f63   : > { %6691 = vmatprep.subr.bf16.mxu1 %v6838_v8 }
0x1f64   : > { %v5541_v59 = vmul.f32 1.442695, %v5527_v35  ;;  %v5543_v12 = vmul.f32 1.442695, %v5528_v28 }
0x1f66   : > { %7021 = vpow2.f32 %v5541_v59  ;;  %6692 = vmatpush3.bf16.msra.mxu1 %v6838_v8 }
0x1f67   : > { %7023 = vpow2.f32 %v5543_v12  ;;  %v7012_v30 = vpop.eup %7011 }
0x1f68   : > { %7025 = vpow2.f32 %v5537_v51  ;;  %v5548_v40 = vsel %vm1568_vm3, %v7012_v30, 0.0  ;;  %v7014_v60 = vpop.eup %7013 }
0x1f69   : > { %5549 = vadd.xlane.f32.xlu1 %v5548_v40  ;;  %v5554_v55 = vsel %vm1568_vm3, %v7014_v60, 0.0 }
0x1f6b   : > { %v7016_v47 = vpop.eup %7015 }
0x1f6c   : > { %v5551_v62 = vsel %vm1568_vm3, %v7016_v47, 0.0  ;;  %v7018_v13 = vpop.eup %7017 }
0x1f6d   : > { %5552 = vadd.xlane.f32.xlu0 %v5551_v62  ;;  %5555 = vadd.xlane.f32.xlu1 %v5554_v55  ;;  %v5545_v36 = vsel %vm1568_vm3, %v7018_v13, 0.0 }
0x1f6f   : > { %v7020_v46 = vpop.eup %7019 }
0x1f70   : > { %v5560_v48 = vsel %vm1568_vm3, %v7020_v46, 0.0 }
0x1f71   : > { %5546 = vadd.xlane.f32.xlu0 %v5545_v36  ;;  %5561 = vadd.xlane.f32.xlu1 %v5560_v48 }
0x1f73   : > { %v7022_v1 = vpop.eup %7021 }
0x1f74   : > { %v7024_v52 = vpop.eup %7023  ;;  %v5563_v54 = vsel %vm1568_vm3, %v7022_v1, 0.0 }
0x1f75   : > { %v7026_v20 = vpop.eup %7025  ;;  %5564 = vadd.xlane.f32.xlu0 %v5563_v54  ;;  %v5566_v50 = vsel %vm1568_vm3, %v7024_v52, 0.0 }
0x1f76   : > { %5567 = vadd.xlane.f32.xlu1 %v5566_v50  ;;  %v5557_v6 = vsel %vm1568_vm3, %v7026_v20, 0.0 }
0x1f79   : > { %5558 = vadd.xlane.f32.xlu0 %v5557_v6 }
0x1f8f   : > { %5590 = vrot.lane.b32.xlu0 %v8372_v34, %s7197_s22  ;;  %s1419_s22 = scalar_lea.vmem %s7432_s4, %s8515_s0 }
0x1ff2   : > { %v5550_v57 = vpop.xlane.xlu1 %5549 }
0x1ff6   : > { %v5553_v19 = vpop.xlane.xlu0 %5552  ;;  %v5556_v23 = vpop.xlane.xlu1 %5555 }
0x1ff7   : > { %7027 = vrcp.f32 %v5553_v19 }
0x1ff8   : > { %7029 = vrcp.f32 %v5556_v23 }
0x1ff9   : > { %7031 = vrcp.f32 %v5550_v57 }
0x1ffa   : > { %v5547_v33 = vpop.xlane.xlu0 %5546  ;;  %v5562_v3 = vpop.xlane.xlu1 %5561 }
0x1ffb   : > { %7033 = vrcp.f32 %v5547_v33 }
0x1ffe   : > { %v5565_v29 = vpop.xlane.xlu0 %5564 }
0x1fff   : > { %7035 = vrcp.f32 %v5565_v29  ;;  %v5568_v26 = vpop.xlane.xlu1 %5567 }
0x2000   : > { %7037 = vrcp.f32 %v5568_v26 }
0x2001   : > { %7039 = vrcp.f32 %v5562_v3 }
0x2002   : > { %v5559_v42 = vpop.xlane.xlu0 %5558 }
0x2003   : > { %7041 = vrcp.f32 %v5559_v42 }
0x2004   : > { %v7028_v9 = vpop.eup %7027 }
0x2005   : > { %v7030_v38 = vpop.eup %7029  ;;  %v5579_v15 = vmul.f32 %v7028_v9, %v7016_v47 }
0x2006   : > { %v7032_v53 = vpop.eup %7031  ;;  %v5591_v34 = vpop.permute.xlu0 %5590  ;;  %v5580_v16 = vmul.f32 %v7030_v38, %v7014_v60 }
0x2007   : > { %v5605_v32 = vsel %vm3434_vm6, %v5591_v34, 0  ;;  %6712 = vmatprep.subr.msk.bf16.mxu0 %vm3434_vm6, %v5591_v34  ;;  %v5578_v49 = vmul.f32 %v7032_v53, %v7012_v30 }
0x2008   : > { %v7034_v11 = vpop.eup %7033  ;;  %6680 = vmatpush3.bf16.msra.mxu0 %v5605_v32  ;;  %v5586_v37 = vpack.c.bf16 %v5580_v16, %v5579_v15 }
0x2009   : > { %v5577_v61 = vmul.f32 %v7034_v11, %v7018_v13  ;;  %v6134_v13 = vld [vmem:[#allocation6] ss:$0 sm:$0xff] }
0x200b   : > { %v5585_v27 = vpack.c.bf16 %v5578_v49, %v5577_v61 }
0x200c   : > { %v7036_v17 = vpop.eup %7035 }
0x200d   : > { %v7038_v21 = vpop.eup %7037  ;;  %6681 = vmatprep.mubr.msk.bf16.mxu0 %vm1568_vm3, %v5585_v27  ;;  %v5583_v0 = vmul.f32 %v7036_v17, %v7022_v1 }
0x200e   : > { %v7040_v44 = vpop.eup %7039  ;;  %6682 = vmatmul.mubr.msk.bf16.vlgmr.msra.gmra.mxu0 %vm1568_vm3, %v5586_v37  ;;  %v5584_v7 = vmul.f32 %v7038_v21, %v7024_v52 }
0x200f   : > { %v5582_v18 = vmul.f32 %v7040_v44, %v7020_v46 }
0x2010   : > { %v7042_v63 = vpop.eup %7041  ;;  %v5588_v24 = vpack.c.bf16 %v5584_v7, %v5583_v0 }
0x2011   : > { %v5581_v56 = vmul.f32 %v7042_v63, %v7026_v20 }
0x2013   : > { %v5587_v39 = vpack.c.bf16 %v5582_v18, %v5581_v56 }
0x2015   : > { %6685 = vmatprep.mubr.msk.bf16.mxu0 %vm1568_vm3, %v5587_v39 }
0x2016   : > { %6686 = vmatmul.mubr.msk.bf16.gmra.mxu0 %vm1568_vm3, %v5588_v24 }
0x20ce   : > { %v6683_v45 = vpop.f32.mrf.mxu0 }
0x20d0   : > { %v5641_v41 = vpop.f32.mrf.mxu0 }
0x20d2   : > { %v6684_v14 = vpop.f32.mrf.mxu0 }
0x20d3   : > { %v5673_v51 = vpack.c.bf16 %v6684_v14, %v6683_v45 }
0x20d4   : > { %v5644_v35 = vpop.f32.mrf.mxu0 }
0x20d5   : > { %v5672_v28 = vpack.c.bf16 %v5644_v35, %v5641_v41 }
0x20d6   : > { %v6687_v59 = vpop.f32.mrf.mxu0 }
0x20d7   : > { %6693 = vmatprep.mubr.msk.bf16.mxu1 %vm1441_vm1, %v5672_v28 }
0x20d8   : > { %v5657_v12 = vpop.f32.mrf.mxu0  ;;  %6694 = vmatmul.mubr.msk.bf16.vlgmr.msra.gmra.mxu1 %vm1441_vm1, %v5673_v51 }
0x20da   : > { %v6688_v30 = vpop.f32.mrf.mxu0 }
0x20db   : > { %v5675_v47 = vpack.c.bf16 %v6688_v30, %v6687_v59 }
0x20dc   : > { %v5660_v40 = vpop.f32.mrf.mxu0 }
0x20dd   : > { %v5674_v60 = vpack.c.bf16 %v5660_v40, %v5657_v12 }
0x20df   : > { %6697 = vmatprep.mubr.msk.bf16.mxu1 %vm1441_vm1, %v5674_v60 }
0x20e0   : > { %6698 = vmatmul.mubr.msk.bf16.gmra.mxu1 %vm1441_vm1, %v5675_v47 }
0x2198   : > { %v6695_v62 = vpop.f32.mrf.mxu1 }
0x2199   : > { %v5771_v55 = vadd.f32 %v6695_v62, %v8282_v2 }
0x219a   : > { %v5738_v46 = vpop.f32.mrf.mxu1 }
0x219b   : > { %v5786_v36 = vadd.f32 %v6134_v13, %v5771_v55  ;;  %v5769_v48 = vadd.f32 %v5738_v46, %v8279_v31 }
0x219c   : > { %v6696_v1 = vpop.f32.mrf.mxu1 }
0x219d   : > { %5794 = vst.msk [vmem:[%s1419_s22 + $0x10] sm:$0xff] %vm1441_vm1, %v5786_v36  ;;  %v5784_v52 = vadd.f32 %v6134_v13, %v5769_v48  ;;  %v5772_v54 = vadd.f32 %v6696_v1, %v8287_v25 }
0x219e   : > { %v5741_v20 = vpop.f32.mrf.mxu1 }
0x219f   : > { %5792 = vst.msk [vmem:[%s1419_s22] sm:$0xff] %vm1441_vm1, %v5784_v52  ;;  %v5787_v50 = vadd.f32 %v6134_v13, %v5772_v54  ;;  %v5770_v6 = vadd.f32 %v5741_v20, %v8289_v58 }
0x21a0   : > { %v6699_v57 = vpop.f32.mrf.mxu1 }
0x21a1   : > { %5795 = vst.msk [vmem:[%s1419_s22 + $0x18] sm:$0xff] %vm1441_vm1, %v5787_v50  ;;  %v5785_v2 = vadd.f32 %v6134_v13, %v5770_v6  ;;  %v5775_v19 = vadd.f32 %v6699_v57, %v8313_v4 }
0x21a2   : > { %v5754_v23 = vpop.f32.mrf.mxu1 }
0x21a3   : > { %5793 = vst.msk [vmem:[%s1419_s22 + $0x8] sm:$0xff] %vm1441_vm1, %v5785_v2  ;;  %v5790_v31 = vadd.f32 %v6134_v13, %v5775_v19  ;;  %v5773_v33 = vadd.f32 %v5754_v23, %v8303_v10 }
0x21a4   : > { %v6700_v3 = vpop.f32.mrf.mxu1 }
0x21a5   : > { %5798 = vst.msk [vmem:[%s1419_s22 + $0x30] sm:$0xff] %vm1441_vm1, %v5790_v31  ;;  %v5788_v25 = vadd.f32 %v6134_v13, %v5773_v33  ;;  %v5776_v29 = vadd.f32 %v6700_v3, %v8321_v22 }
0x21a6   : > { %v5757_v26 = vpop.f32.mrf.mxu1 }
0x21a7   : > { %5796 = vst.msk [vmem:[%s1419_s22 + $0x20] sm:$0xff] %vm1441_vm1, %v5788_v25  ;;  %v5791_v58 = vadd.f32 %v6134_v13, %v5776_v29  ;;  %v5774_v42 = vadd.f32 %v5757_v26, %v8323_v43 }
0x21a9   : > { %5799 = vst.msk [vmem:[%s1419_s22 + $0x38] sm:$0xff] %vm1441_vm1, %v5791_v58  ;;  %v5789_v4 = vadd.f32 %v6134_v13, %v5774_v42 }
0x21ab   : > { %5797 = vst.msk [vmem:[%s1419_s22 + $0x28] sm:$0xff] %vm1441_vm1, %v5789_v4 }
0x21ac PF: > { %s103_s7 = sadd.s32 1, %s7145_s7  }
0x21ad   : > { %p100_p8 = scmp.ge.s32.totalorder %s103_s7, 4  }
0x21af   :  { %102 = sbr.rel (!%p100_p8) target bundleno = 90 (0x5a), region = 294 }
0x21b4   :  { %5821 = vsyncpa [#allocation3], 1 }
0x21b5   :  { %5823 = vsyncpa [#allocation3 + $0x1], 1 }
0x21b6   :  { %5824 = vsyncpa [#allocation5], 1 }

</bundles_post_ra>
